<compile_context>
chip_gen: v6e
topology: v6e:2x2x1
jax: 0.10.0
libtpu: 0.0.40
codegen_flags: <defaults>
</compile_context>

<pallas_src>
import functools

import jax
import jax.numpy as jnp
from jax.experimental import pallas as pl
from jax.experimental.pallas import tpu as pltpu


# --------------------------------------------------------------------------
# Kernels
# --------------------------------------------------------------------------
def _encoder_kernel(src_ref, bmask_ref, hmask_ref,
                    wq_ref, bq_ref, wk_ref, bk_ref, wv_ref, bv_ref,
                    wo_ref, bo_ref, ln1g_ref, ln1b_ref,
                    w1_ref, b1_ref, w2_ref, b2_ref,
                    ln2g_ref, ln2b_ref, o_ref,
                    *, num_heads, head_dim):
    """Fused nn.TransformerEncoderLayer (post-norm, relu, dropout=identity).

    src: (S*B, E) in the torch seq-first flattened order (row = s*B + b).
    bmask: (S*B, S*B) float 1.0 where rows belong to the same batch element.
    hmask: (H, E) float, hmask[h, e] = 1.0 iff column e belongs to head h.
    """
    src = src_ref[...]                                     # (SB, E)
    bmask = bmask_ref[...]                                 # (SB, SB)
    scale = 1.0 / float(head_dim) ** 0.5

    # QKV projections (weights pre-transposed to (E, E)).
    q = jnp.dot(src, wq_ref[...], preferred_element_type=jnp.float32) + bq_ref[...]
    k = jnp.dot(src, wk_ref[...], preferred_element_type=jnp.float32) + bk_ref[...]
    v = jnp.dot(src, wv_ref[...], preferred_element_type=jnp.float32) + bv_ref[...]

    # Multi-head attention: per head, zero the other heads' columns of q / v.
    # Contracting the masked q against full k over E equals the per-head
    # Dh-contraction; the per-head outputs land on disjoint columns so the
    # concatenation is just a sum.
    neg_big = (1.0 - bmask) * 1e30
    attn = jnp.zeros_like(src)
    for h in range(num_heads):                             # H=4, unrolled
        hm = hmask_ref[h:h + 1, :]                         # (1, E)
        qh = q * hm * scale
        vh = v * hm
        s = jax.lax.dot_general(qh, k, (((1,), (1,)), ((), ())),
                                preferred_element_type=jnp.float32)  # (SB, SB)
        s = s - neg_big                                    # mask cross-batch
        s = s - jnp.max(s, axis=-1, keepdims=True)
        e = jnp.exp(s)
        p = e * pl.reciprocal(jnp.sum(e, axis=-1, keepdims=True), approx=True)
        attn = attn + jnp.dot(p, vh, preferred_element_type=jnp.float32)

    attn = jnp.dot(attn, wo_ref[...], preferred_element_type=jnp.float32) + bo_ref[...]

    # Residual + LayerNorm1 (eps=1e-5, PyTorch default); dropout1 = identity.
    h1 = src + attn
    mean = jnp.mean(h1, axis=-1, keepdims=True)
    var = jnp.mean((h1 - mean) ** 2, axis=-1, keepdims=True)
    h1 = (h1 - mean) * jax.lax.rsqrt(var + 1e-5) * ln1g_ref[...] + ln1b_ref[...]

    # Feed-forward block (dropouts = identity).
    ff = jnp.dot(h1, w1_ref[...], preferred_element_type=jnp.float32) + b1_ref[...]
    ff = jnp.maximum(ff, 0.0)
    ff = jnp.dot(ff, w2_ref[...], preferred_element_type=jnp.float32) + b2_ref[...]

    # Residual + LayerNorm2.
    h2 = h1 + ff
    mean = jnp.mean(h2, axis=-1, keepdims=True)
    var = jnp.mean((h2 - mean) ** 2, axis=-1, keepdims=True)
    o_ref[...] = (h2 - mean) * jax.lax.rsqrt(var + 1e-5) * ln2g_ref[...] + ln2b_ref[...]


def _head_kernel(em_ref, tr_ref, wfc_ref, bfc_ref, wout_ref, bout_ref, o_ref):
    """x = em*tr; relu(x @ Wfc + bfc); (dropout=id); @ Wout + bout; softmax."""
    x = em_ref[...] * tr_ref[...]                          # (B, S*E)
    h = jnp.dot(x, wfc_ref[...], preferred_element_type=jnp.float32) + bfc_ref[...]
    h = jnp.maximum(h, 0.0)
    # TODO(synk): nn.Dropout(0.2) treated as identity (eval-mode semantics).
    logits = jnp.dot(h, wout_ref[...], preferred_element_type=jnp.float32) + bout_ref[...]
    logits = logits - jnp.max(logits, axis=-1, keepdims=True)
    e = jnp.exp(logits)
    o_ref[...] = e / jnp.sum(e, axis=-1, keepdims=True)    # exact for the sum check


# --------------------------------------------------------------------------
# Pallas wrappers (single grid step, full-array blocks, everything in VMEM)
# --------------------------------------------------------------------------
def _full_spec(shape):
    nd = len(shape)
    return pl.BlockSpec(shape, lambda i, _z=(0,) * nd: _z)


def encoder_layer(src, bmask, hmask, p, num_heads, head_dim):
    SB, E = src.shape
    kernel = functools.partial(_encoder_kernel,
                               num_heads=num_heads, head_dim=head_dim)
    args = (src, bmask, hmask,
            p["wq_t"], p["bq"], p["wk_t"], p["bk"], p["wv_t"], p["bv"],
            p["wo_t"], p["bo"], p["ln1_g"], p["ln1_b"],
            p["ffn_w1_t"], p["ffn_b1"], p["ffn_w2_t"], p["ffn_b2"],
            p["ln2_g"], p["ln2_b"])
    return pl.pallas_call(
        kernel,
        out_shape=jax.ShapeDtypeStruct((SB, E), jnp.float32),
        grid=(1,),
        in_specs=[_full_spec(a.shape) for a in args],
        out_specs=_full_spec((SB, E)),
        compiler_params=pltpu.CompilerParams(dimension_semantics=("arbitrary",)),
    )(*args)


def head_classifier(em2d, tr2d, p):
    B = em2d.shape[0]
    n_out = p["out_w_t"].shape[1]
    args = (em2d, tr2d, p["fc_w_t"], p["fc_b"], p["out_w_t"], p["out_b"])
    return pl.pallas_call(
        _head_kernel,
        out_shape=jax.ShapeDtypeStruct((B, n_out), jnp.float32),
        grid=(1,),
        in_specs=[_full_spec(a.shape) for a in args],
        out_specs=_full_spec((B, n_out)),
        compiler_params=pltpu.CompilerParams(dimension_semantics=("arbitrary",)),
    )(*args)


# --------------------------------------------------------------------------
# Parameters (deterministic synthetic init; weights stored PRE-TRANSPOSED)
# --------------------------------------------------------------------------
def init_params(key, seq_len, embd_dim, num_vocab, dim_ff=2048):
    E = embd_dim
    ks = jax.random.split(key, 16)

    def rnd(k, shape, scale=0.02):
        return jax.random.normal(k, shape, dtype=jnp.float32) * scale

    emb = rnd(ks[0], (num_vocab, E), scale=1.0)
    emb = emb.at[0].set(0.0)  # padding_idx=0

    return {
        "embd": emb,
        # attention in_proj split into q/k/v, stored as (K, N) = W^T
        "wq_t": rnd(ks[1], (E, E)), "bq": rnd(ks[2], (1, E)),
        "wk_t": rnd(ks[3], (E, E)), "bk": rnd(ks[4], (1, E)),
        "wv_t": rnd(ks[5], (E, E)), "bv": rnd(ks[6], (1, E)),
        "wo_t": rnd(ks[7], (E, E)), "bo": rnd(ks[8], (1, E)),
        "ln1_g": jnp.ones((1, E), jnp.float32),
        "ln1_b": jnp.zeros((1, E), jnp.float32),
        "ln2_g": jnp.ones((1, E), jnp.float32),
        "ln2_b": jnp.zeros((1, E), jnp.float32),
        "ffn_w1_t": rnd(ks[9], (E, dim_ff)), "ffn_b1": rnd(ks[10], (1, dim_ff)),
        "ffn_w2_t": rnd(ks[11], (dim_ff, E)), "ffn_b2": rnd(ks[12], (1, E)),
        "fc_w_t": rnd(ks[13], (seq_len * E, 1024)), "fc_b": rnd(ks[14], (1, 1024)),
        "out_w_t": rnd(ks[15], (1024, 5)), "out_b": jnp.zeros((1, 5), jnp.float32),
    }


# --------------------------------------------------------------------------
# Forward (mirrors AttentionModelQuery.forward, eval-mode dropouts)
# --------------------------------------------------------------------------
def forward(X, params, seq_len, embd_dim, nhead=4):
    B, S = X.shape
    E = embd_dim
    H = nhead
    Dh = E // H
    SB = S * B

    # Embedding lookup (XLA gather; padding row 0 is all-zero).
    em_out = jnp.take(params["embd"], X, axis=0)           # (B, S, E)

    # torch: tr_in = em_out.reshape(seq_len, -1, embd_dim)  -> pure reshape;
    # flattened seq-first layout is just em_out.reshape(S*B, E).
    src = em_out.reshape(SB, E)

    # Same-batch mask (rows of src belong to batch r % B) and head-column mask.
    rows = jnp.arange(SB, dtype=jnp.int32)
    bmask = ((rows[:, None] % B) == (rows[None, :] % B)).astype(jnp.float32)
    cols = jnp.arange(E, dtype=jnp.int32)
    heads = jnp.arange(H, dtype=jnp.int32)
    hmask = ((cols[None, :] // Dh) == heads[:, None]).astype(jnp.float32)

    tr = encoder_layer(src, bmask, hmask, params, H, Dh)   # (S*B, E)

    # torch: x = em_out * tr_out.reshape(-1, S, E); x = x.reshape(-1, S*E)
    # (pure reshapes of the same flat buffers)
    em2d = em_out.reshape(B, S * E)
    tr2d = tr.reshape(B, S * E)
    return head_classifier(em2d, tr2d, params)             # (B, 5)


# --------------------------------------------------------------------------
if __name__ == "__main__":
    seq_len, embd_dim, num_vocab = 8, 32, 50
    batch = 2

    key = jax.random.PRNGKey(0)
    pkey, xkey = jax.random.split(key)
    params = init_params(pkey, seq_len, embd_dim, num_vocab)
    X = jax.random.randint(xkey, (batch, seq_len), 0, num_vocab, dtype=jnp.int32)

    fwd = jax.jit(forward, static_argnums=(2, 3, 4))
    out = fwd(X, params, seq_len, embd_dim, 4)
    out = jax.block_until_ready(out)

    assert out.shape == (batch, 5), out.shape
    assert bool(jnp.allclose(jnp.sum(out, axis=-1), 1.0, atol=1e-4))
    print("KERNEL_OK")
</pallas_src>

<mosaic_0001>
module attributes {stable_mosaic.version = 11 : i64} {
  func.func @_head_kernel(%arg0: i32, %arg1: memref<2x256xf32, #tpu.memory_space<vmem>>, %arg2: memref<2x256xf32, #tpu.memory_space<vmem>>, %arg3: memref<256x1024xf32, #tpu.memory_space<vmem>>, %arg4: memref<1x1024xf32, #tpu.memory_space<vmem>>, %arg5: memref<1024x5xf32, #tpu.memory_space<vmem>>, %arg6: memref<1x5xf32, #tpu.memory_space<vmem>>, %arg7: memref<2x5xf32, #tpu.memory_space<vmem>>) attributes {dimension_semantics = [#tpu.dimension_semantics<arbitrary>], iteration_bounds = array<i64: 1>, scalar_prefetch = 0 : i64, scratch_operands = 0 : i64, tpu.core_type = #tpu.core_type<tc>, window_params = [{pipeline_mode = #tpu.pipeline_mode<synchronous>, transform_indices = @transform_0, window_bounds = array<i64: 2, 256>}, {pipeline_mode = #tpu.pipeline_mode<synchronous>, transform_indices = @transform_1, window_bounds = array<i64: 2, 256>}, {pipeline_mode = #tpu.pipeline_mode<synchronous>, transform_indices = @transform_2, window_bounds = array<i64: 256, 1024>}, {pipeline_mode = #tpu.pipeline_mode<synchronous>, transform_indices = @transform_3, window_bounds = array<i64: 1, 1024>}, {pipeline_mode = #tpu.pipeline_mode<synchronous>, transform_indices = @transform_4, window_bounds = array<i64: 1024, 5>}, {pipeline_mode = #tpu.pipeline_mode<synchronous>, transform_indices = @transform_5, window_bounds = array<i64: 1, 5>}, {pipeline_mode = #tpu.pipeline_mode<synchronous>, transform_indices = @transform_6, window_bounds = array<i64: 2, 5>}]} {
    %c0 = arith.constant 0 : index
    %c0_0 = arith.constant 0 : index
    %0 = vector.load %arg1[%c0, %c0_0] : memref<2x256xf32, #tpu.memory_space<vmem>>, vector<2x256xf32>
    %c0_1 = arith.constant 0 : index
    %c0_2 = arith.constant 0 : index
    %1 = vector.load %arg2[%c0_1, %c0_2] : memref<2x256xf32, #tpu.memory_space<vmem>>, vector<2x256xf32>
    %2 = arith.mulf %0, %1 : vector<2x256xf32>
    %c0_3 = arith.constant 0 : index
    %c0_4 = arith.constant 0 : index
    %3 = vector.load %arg3[%c0_3, %c0_4] : memref<256x1024xf32, #tpu.memory_space<vmem>>, vector<256x1024xf32>
    %cst = arith.constant dense<0.000000e+00> : vector<2x1024xf32>
    %4 = tpu.matmul %2, %3, %cst {dimension_numbers = #tpu.dot_dimension_numbers<[1], [0], [0], [1], [0, 0, 1, 1], [], []>} : vector<2x256xf32>, vector<256x1024xf32>, vector<2x1024xf32> -> vector<2x1024xf32>
    %c0_5 = arith.constant 0 : index
    %c0_6 = arith.constant 0 : index
    %5 = vector.load %arg4[%c0_5, %c0_6] : memref<1x1024xf32, #tpu.memory_space<vmem>>, vector<1x1024xf32>
    %6 = vector.broadcast %5 : vector<1x1024xf32> to vector<2x1024xf32>
    %7 = arith.addf %4, %6 : vector<2x1024xf32>
    %cst_7 = arith.constant 0.000000e+00 : f32
    %8 = vector.broadcast %cst_7 : f32 to vector<2x1024xf32>
    %9 = arith.maximumf %7, %8 : vector<2x1024xf32>
    %c0_8 = arith.constant 0 : index
    %c0_9 = arith.constant 0 : index
    %10 = vector.load %arg5[%c0_8, %c0_9] : memref<1024x5xf32, #tpu.memory_space<vmem>>, vector<1024x5xf32>
    %cst_10 = arith.constant dense<0.000000e+00> : vector<2x5xf32>
    %11 = tpu.matmul %9, %10, %cst_10 {dimension_numbers = #tpu.dot_dimension_numbers<[1], [0], [0], [1], [0, 0, 1, 1], [], []>} : vector<2x1024xf32>, vector<1024x5xf32>, vector<2x5xf32> -> vector<2x5xf32>
    %c0_11 = arith.constant 0 : index
    %c0_12 = arith.constant 0 : index
    %12 = vector.load %arg6[%c0_11, %c0_12] : memref<1x5xf32, #tpu.memory_space<vmem>>, vector<1x5xf32>
    %13 = vector.broadcast %12 : vector<1x5xf32> to vector<2x5xf32>
    %14 = arith.addf %11, %13 : vector<2x5xf32>
    %cst_13 = arith.constant dense<0xFF800000> : vector<2xf32>
    %15 = vector.multi_reduction <maximumf>, %14, %cst_13 [1] : vector<2x5xf32> to vector<2xf32>
    %16 = vector.shape_cast %15 : vector<2xf32> to vector<2x1xf32>
    %17 = vector.broadcast %16 : vector<2x1xf32> to vector<2x5xf32>
    %18 = arith.subf %14, %17 : vector<2x5xf32>
    %19 = math.exp %18 : vector<2x5xf32>
    %cst_14 = arith.constant dense<0.000000e+00> : vector<2xf32>
    %20 = vector.multi_reduction <add>, %19, %cst_14 [1] : vector<2x5xf32> to vector<2xf32>
    %21 = vector.shape_cast %20 : vector<2xf32> to vector<2x1xf32>
    %22 = vector.broadcast %21 : vector<2x1xf32> to vector<2x5xf32>
    %23 = arith.divf %19, %22 : vector<2x5xf32>
    %c0_15 = arith.constant 0 : index
    %c0_16 = arith.constant 0 : index
    %24 = vector.load %arg7[%c0_15, %c0_16] : memref<2x5xf32, #tpu.memory_space<vmem>>, vector<2x5xf32>
    tpu.vector_store %arg7[%c0_15, %c0_16], %23 {strides = array<i32>} : memref<2x5xf32, #tpu.memory_space<vmem>>, vector<2x5xf32>,
    return
  }
  func.func @transform_0(%arg0: i32) -> (i32, i32) {
    %c0_i32 = arith.constant 0 : i32
    %c0_i32_0 = arith.constant 0 : i32
    %c0_i32_1 = arith.constant 0 : i32
    return %c0_i32, %c0_i32_0 : i32, i32
  }
  func.func @transform_1(%arg0: i32) -> (i32, i32) {
    %c0_i32 = arith.constant 0 : i32
    %c0_i32_0 = arith.constant 0 : i32
    %c0_i32_1 = arith.constant 0 : i32
    return %c0_i32, %c0_i32_0 : i32, i32
  }
  func.func @transform_2(%arg0: i32) -> (i32, i32) {
    %c0_i32 = arith.constant 0 : i32
    %c0_i32_0 = arith.constant 0 : i32
    %c0_i32_1 = arith.constant 0 : i32
    return %c0_i32, %c0_i32_0 : i32, i32
  }
  func.func @transform_3(%arg0: i32) -> (i32, i32) {
    %c0_i32 = arith.constant 0 : i32
    %c0_i32_0 = arith.constant 0 : i32
    %c0_i32_1 = arith.constant 0 : i32
    return %c0_i32, %c0_i32_0 : i32, i32
  }
  func.func @transform_4(%arg0: i32) -> (i32, i32) {
    %c0_i32 = arith.constant 0 : i32
    %c0_i32_0 = arith.constant 0 : i32
    %c0_i32_1 = arith.constant 0 : i32
    return %c0_i32, %c0_i32_0 : i32, i32
  }
  func.func @transform_5(%arg0: i32) -> (i32, i32) {
    %c0_i32 = arith.constant 0 : i32
    %c0_i32_0 = arith.constant 0 : i32
    %c0_i32_1 = arith.constant 0 : i32
    return %c0_i32, %c0_i32_0 : i32, i32
  }
  func.func @transform_6(%arg0: i32) -> (i32, i32) {
    %c0_i32 = arith.constant 0 : i32
    %c0_i32_0 = arith.constant 0 : i32
    %c0_i32_1 = arith.constant 0 : i32
    return %c0_i32, %c0_i32_0 : i32, i32
  }
}

module attributes {stable_mosaic.version = 11 : i64} {
  func.func @_encoder_kernel(%arg0: i32, %arg1: memref<16x32xf32, #tpu.memory_space<vmem>>, %arg2: memref<16x16xf32, #tpu.memory_space<vmem>>, %arg3: memref<4x32xf32, #tpu.memory_space<vmem>>, %arg4: memref<32x32xf32, #tpu.memory_space<vmem>>, %arg5: memref<1x32xf32, #tpu.memory_space<vmem>>, %arg6: memref<32x32xf32, #tpu.memory_space<vmem>>, %arg7: memref<1x32xf32, #tpu.memory_space<vmem>>, %arg8: memref<32x32xf32, #tpu.memory_space<vmem>>, %arg9: memref<1x32xf32, #tpu.memory_space<vmem>>, %arg10: memref<32x32xf32, #tpu.memory_space<vmem>>, %arg11: memref<1x32xf32, #tpu.memory_space<vmem>>, %arg12: memref<1x32xf32, #tpu.memory_space<vmem>>, %arg13: memref<1x32xf32, #tpu.memory_space<vmem>>, %arg14: memref<32x2048xf32, #tpu.memory_space<vmem>>, %arg15: memref<1x2048xf32, #tpu.memory_space<vmem>>, %arg16: memref<2048x32xf32, #tpu.memory_space<vmem>>, %arg17: memref<1x32xf32, #tpu.memory_space<vmem>>, %arg18: memref<1x32xf32, #tpu.memory_space<vmem>>, %arg19: memref<1x32xf32, #tpu.memory_space<vmem>>, %arg20: memref<16x32xf32, #tpu.memory_space<vmem>>) attributes {dimension_semantics = [#tpu.dimension_semantics<arbitrary>], iteration_bounds = array<i64: 1>, scalar_prefetch = 0 : i64, scratch_operands = 0 : i64, tpu.core_type = #tpu.core_type<tc>, window_params = [{pipeline_mode = #tpu.pipeline_mode<synchronous>, transform_indices = @transform_0, window_bounds = array<i64: 16, 32>}, {pipeline_mode = #tpu.pipeline_mode<synchronous>, transform_indices = @transform_1, window_bounds = array<i64: 16, 16>}, {pipeline_mode = #tpu.pipeline_mode<synchronous>, transform_indices = @transform_2, window_bounds = array<i64: 4, 32>}, {pipeline_mode = #tpu.pipeline_mode<synchronous>, transform_indices = @transform_3, window_bounds = array<i64: 32, 32>}, {pipeline_mode = #tpu.pipeline_mode<synchronous>, transform_indices = @transform_4, window_bounds = array<i64: 1, 32>}, {pipeline_mode = #tpu.pipeline_mode<synchronous>, transform_indices = @transform_5, window_bounds = array<i64: 32, 32>}, {pipeline_mode = #tpu.pipeline_mode<synchronous>, transform_indices = @transform_6, window_bounds = array<i64: 1, 32>}, {pipeline_mode = #tpu.pipeline_mode<synchronous>, transform_indices = @transform_7, window_bounds = array<i64: 32, 32>}, {pipeline_mode = #tpu.pipeline_mode<synchronous>, transform_indices = @transform_8, window_bounds = array<i64: 1, 32>}, {pipeline_mode = #tpu.pipeline_mode<synchronous>, transform_indices = @transform_9, window_bounds = array<i64: 32, 32>}, {pipeline_mode = #tpu.pipeline_mode<synchronous>, transform_indices = @transform_10, window_bounds = array<i64: 1, 32>}, {pipeline_mode = #tpu.pipeline_mode<synchronous>, transform_indices = @transform_11, window_bounds = array<i64: 1, 32>}, {pipeline_mode = #tpu.pipeline_mode<synchronous>, transform_indices = @transform_12, window_bounds = array<i64: 1, 32>}, {pipeline_mode = #tpu.pipeline_mode<synchronous>, transform_indices = @transform_13, window_bounds = array<i64: 32, 2048>}, {pipeline_mode = #tpu.pipeline_mode<synchronous>, transform_indices = @transform_14, window_bounds = array<i64: 1, 2048>}, {pipeline_mode = #tpu.pipeline_mode<synchronous>, transform_indices = @transform_15, window_bounds = array<i64: 2048, 32>}, {pipeline_mode = #tpu.pipeline_mode<synchronous>, transform_indices = @transform_16, window_bounds = array<i64: 1, 32>}, {pipeline_mode = #tpu.pipeline_mode<synchronous>, transform_indices = @transform_17, window_bounds = array<i64: 1, 32>}, {pipeline_mode = #tpu.pipeline_mode<synchronous>, transform_indices = @transform_18, window_bounds = array<i64: 1, 32>}, {pipeline_mode = #tpu.pipeline_mode<synchronous>, transform_indices = @transform_19, window_bounds = array<i64: 16, 32>}]} {
    %c0 = arith.constant 0 : index
    %c0_0 = arith.constant 0 : index
    %0 = vector.load %arg1[%c0, %c0_0] : memref<16x32xf32, #tpu.memory_space<vmem>>, vector<16x32xf32>
    %c0_1 = arith.constant 0 : index
    %c0_2 = arith.constant 0 : index
    %1 = vector.load %arg2[%c0_1, %c0_2] : memref<16x16xf32, #tpu.memory_space<vmem>>, vector<16x16xf32>
    %c0_3 = arith.constant 0 : index
    %c0_4 = arith.constant 0 : index
    %2 = vector.load %arg4[%c0_3, %c0_4] : memref<32x32xf32, #tpu.memory_space<vmem>>, vector<32x32xf32>
    %cst = arith.constant dense<0.000000e+00> : vector<16x32xf32>
    %3 = tpu.matmul %0, %2, %cst {dimension_numbers = #tpu.dot_dimension_numbers<[1], [0], [0], [1], [0, 0, 1, 1], [], []>} : vector<16x32xf32>, vector<32x32xf32>, vector<16x32xf32> -> vector<16x32xf32>
    %c0_5 = arith.constant 0 : index
    %c0_6 = arith.constant 0 : index
    %4 = vector.load %arg5[%c0_5, %c0_6] : memref<1x32xf32, #tpu.memory_space<vmem>>, vector<1x32xf32>
    %5 = vector.broadcast %4 : vector<1x32xf32> to vector<16x32xf32>
    %6 = arith.addf %3, %5 : vector<16x32xf32>
    %c0_7 = arith.constant 0 : index
    %c0_8 = arith.constant 0 : index
    %7 = vector.load %arg6[%c0_7, %c0_8] : memref<32x32xf32, #tpu.memory_space<vmem>>, vector<32x32xf32>
    %cst_9 = arith.constant dense<0.000000e+00> : vector<16x32xf32>
    %8 = tpu.matmul %0, %7, %cst_9 {dimension_numbers = #tpu.dot_dimension_numbers<[1], [0], [0], [1], [0, 0, 1, 1], [], []>} : vector<16x32xf32>, vector<32x32xf32>, vector<16x32xf32> -> vector<16x32xf32>
    %c0_10 = arith.constant 0 : index
    %c0_11 = arith.constant 0 : index
    %9 = vector.load %arg7[%c0_10, %c0_11] : memref<1x32xf32, #tpu.memory_space<vmem>>, vector<1x32xf32>
    %10 = vector.broadcast %9 : vector<1x32xf32> to vector<16x32xf32>
    %11 = arith.addf %8, %10 : vector<16x32xf32>
    %c0_12 = arith.constant 0 : index
    %c0_13 = arith.constant 0 : index
    %12 = vector.load %arg8[%c0_12, %c0_13] : memref<32x32xf32, #tpu.memory_space<vmem>>, vector<32x32xf32>
    %cst_14 = arith.constant dense<0.000000e+00> : vector<16x32xf32>
    %13 = tpu.matmul %0, %12, %cst_14 {dimension_numbers = #tpu.dot_dimension_numbers<[1], [0], [0], [1], [0, 0, 1, 1], [], []>} : vector<16x32xf32>, vector<32x32xf32>, vector<16x32xf32> -> vector<16x32xf32>
    %c0_15 = arith.constant 0 : index
    %c0_16 = arith.constant 0 : index
    %14 = vector.load %arg9[%c0_15, %c0_16] : memref<1x32xf32, #tpu.memory_space<vmem>>, vector<1x32xf32>
    %15 = vector.broadcast %14 : vector<1x32xf32> to vector<16x32xf32>
    %16 = arith.addf %13, %15 : vector<16x32xf32>
    %cst_17 = arith.constant 1.000000e+00 : f32
    %17 = vector.broadcast %cst_17 : f32 to vector<16x16xf32>
    %18 = arith.subf %17, %1 : vector<16x16xf32>
    %cst_18 = arith.constant 1.000000e+30 : f32
    %19 = vector.broadcast %cst_18 : f32 to vector<16x16xf32>
    %20 = arith.mulf %18, %19 : vector<16x16xf32>
    %cst_19 = arith.constant 0.000000e+00 : f32
    %21 = vector.broadcast %cst_19 : f32 to vector<16x32xf32>
    %c0_20 = arith.constant 0 : index
    %c0_21 = arith.constant 0 : index
    %22 = vector.load %arg3[%c0_20, %c0_21] : memref<4x32xf32, #tpu.memory_space<vmem>>, vector<1x32xf32>
    %23 = vector.broadcast %22 : vector<1x32xf32> to vector<16x32xf32>
    %24 = arith.mulf %6, %23 : vector<16x32xf32>
    %cst_22 = arith.constant 0.353553385 : f32
    %25 = vector.broadcast %cst_22 : f32 to vector<16x32xf32>
    %26 = arith.mulf %24, %25 : vector<16x32xf32>
    %27 = vector.broadcast %22 : vector<1x32xf32> to vector<16x32xf32>
    %28 = arith.mulf %16, %27 : vector<16x32xf32>
    %cst_23 = arith.constant dense<0.000000e+00> : vector<16x16xf32>
    %29 = tpu.matmul %26, %11, %cst_23 {dimension_numbers = #tpu.dot_dimension_numbers<[1], [1], [0], [0], [0, 0, 1, 0], [], []>} : vector<16x32xf32>, vector<16x32xf32>, vector<16x16xf32> -> vector<16x16xf32>
    %30 = arith.subf %29, %20 : vector<16x16xf32>
    %cst_24 = arith.constant dense<0xFF800000> : vector<16xf32>
    %31 = vector.multi_reduction <maximumf>, %30, %cst_24 [1] : vector<16x16xf32> to vector<16xf32>
    %32 = vector.shape_cast %31 : vector<16xf32> to vector<16x1xf32>
    %33 = vector.broadcast %32 : vector<16x1xf32> to vector<16x16xf32>
    %34 = arith.subf %30, %33 : vector<16x16xf32>
    %35 = math.exp %34 : vector<16x16xf32>
    %cst_25 = arith.constant dense<0.000000e+00> : vector<16xf32>
    %36 = vector.multi_reduction <add>, %35, %cst_25 [1] : vector<16x16xf32> to vector<16xf32>
    %37 = vector.shape_cast %36 : vector<16xf32> to vector<16x1xf32>
    %38 = tpu.reciprocal %37 {approx = true} : vector<16x1xf32> -> vector<16x1xf32>
    %39 = vector.broadcast %38 : vector<16x1xf32> to vector<16x16xf32>
    %40 = arith.mulf %35, %39 : vector<16x16xf32>
    %cst_26 = arith.constant dense<0.000000e+00> : vector<16x32xf32>
    %41 = tpu.matmul %40, %28, %cst_26 {dimension_numbers = #tpu.dot_dimension_numbers<[1], [0], [0], [1], [0, 0, 1, 1], [], []>} : vector<16x16xf32>, vector<16x32xf32>, vector<16x32xf32> -> vector<16x32xf32>
    %42 = arith.addf %21, %41 : vector<16x32xf32>
    %c1 = arith.constant 1 : index
    %c0_27 = arith.constant 0 : index
    %43 = vector.load %arg3[%c1, %c0_27] : memref<4x32xf32, #tpu.memory_space<vmem>>, vector<1x32xf32>
    %44 = vector.broadcast %43 : vector<1x32xf32> to vector<16x32xf32>
    %45 = arith.mulf %6, %44 : vector<16x32xf32>
    %cst_28 = arith.constant 0.353553385 : f32
    %46 = vector.broadcast %cst_28 : f32 to vector<16x32xf32>
    %47 = arith.mulf %45, %46 : vector<16x32xf32>
    %48 = vector.broadcast %43 : vector<1x32xf32> to vector<16x32xf32>
    %49 = arith.mulf %16, %48 : vector<16x32xf32>
    %cst_29 = arith.constant dense<0.000000e+00> : vector<16x16xf32>
    %50 = tpu.matmul %47, %11, %cst_29 {dimension_numbers = #tpu.dot_dimension_numbers<[1], [1], [0], [0], [0, 0, 1, 0], [], []>} : vector<16x32xf32>, vector<16x32xf32>, vector<16x16xf32> -> vector<16x16xf32>
    %51 = arith.subf %50, %20 : vector<16x16xf32>
    %cst_30 = arith.constant dense<0xFF800000> : vector<16xf32>
    %52 = vector.multi_reduction <maximumf>, %51, %cst_30 [1] : vector<16x16xf32> to vector<16xf32>
    %53 = vector.shape_cast %52 : vector<16xf32> to vector<16x1xf32>
    %54 = vector.broadcast %53 : vector<16x1xf32> to vector<16x16xf32>
    %55 = arith.subf %51, %54 : vector<16x16xf32>
    %56 = math.exp %55 : vector<16x16xf32>
    %cst_31 = arith.constant dense<0.000000e+00> : vector<16xf32>
    %57 = vector.multi_reduction <add>, %56, %cst_31 [1] : vector<16x16xf32> to vector<16xf32>
    %58 = vector.shape_cast %57 : vector<16xf32> to vector<16x1xf32>
    %59 = tpu.reciprocal %58 {approx = true} : vector<16x1xf32> -> vector<16x1xf32>
    %60 = vector.broadcast %59 : vector<16x1xf32> to vector<16x16xf32>
    %61 = arith.mulf %56, %60 : vector<16x16xf32>
    %cst_32 = arith.constant dense<0.000000e+00> : vector<16x32xf32>
    %62 = tpu.matmul %61, %49, %cst_32 {dimension_numbers = #tpu.dot_dimension_numbers<[1], [0], [0], [1], [0, 0, 1, 1], [], []>} : vector<16x16xf32>, vector<16x32xf32>, vector<16x32xf32> -> vector<16x32xf32>
    %63 = arith.addf %42, %62 : vector<16x32xf32>
    %c2 = arith.constant 2 : index
    %c0_33 = arith.constant 0 : index
    %64 = vector.load %arg3[%c2, %c0_33] : memref<4x32xf32, #tpu.memory_space<vmem>>, vector<1x32xf32>
    %65 = vector.broadcast %64 : vector<1x32xf32> to vector<16x32xf32>
    %66 = arith.mulf %6, %65 : vector<16x32xf32>
    %cst_34 = arith.constant 0.353553385 : f32
    %67 = vector.broadcast %cst_34 : f32 to vector<16x32xf32>
    %68 = arith.mulf %66, %67 : vector<16x32xf32>
    %69 = vector.broadcast %64 : vector<1x32xf32> to vector<16x32xf32>
    %70 = arith.mulf %16, %69 : vector<16x32xf32>
    %cst_35 = arith.constant dense<0.000000e+00> : vector<16x16xf32>
    %71 = tpu.matmul %68, %11, %cst_35 {dimension_numbers = #tpu.dot_dimension_numbers<[1], [1], [0], [0], [0, 0, 1, 0], [], []>} : vector<16x32xf32>, vector<16x32xf32>, vector<16x16xf32> -> vector<16x16xf32>
    %72 = arith.subf %71, %20 : vector<16x16xf32>
    %cst_36 = arith.constant dense<0xFF800000> : vector<16xf32>
    %73 = vector.multi_reduction <maximumf>, %72, %cst_36 [1] : vector<16x16xf32> to vector<16xf32>
    %74 = vector.shape_cast %73 : vector<16xf32> to vector<16x1xf32>
    %75 = vector.broadcast %74 : vector<16x1xf32> to vector<16x16xf32>
    %76 = arith.subf %72, %75 : vector<16x16xf32>
    %77 = math.exp %76 : vector<16x16xf32>
    %cst_37 = arith.constant dense<0.000000e+00> : vector<16xf32>
    %78 = vector.multi_reduction <add>, %77, %cst_37 [1] : vector<16x16xf32> to vector<16xf32>
    %79 = vector.shape_cast %78 : vector<16xf32> to vector<16x1xf32>
    %80 = tpu.reciprocal %79 {approx = true} : vector<16x1xf32> -> vector<16x1xf32>
    %81 = vector.broadcast %80 : vector<16x1xf32> to vector<16x16xf32>
    %82 = arith.mulf %77, %81 : vector<16x16xf32>
    %cst_38 = arith.constant dense<0.000000e+00> : vector<16x32xf32>
    %83 = tpu.matmul %82, %70, %cst_38 {dimension_numbers = #tpu.dot_dimension_numbers<[1], [0], [0], [1], [0, 0, 1, 1], [], []>} : vector<16x16xf32>, vector<16x32xf32>, vector<16x32xf32> -> vector<16x32xf32>
    %84 = arith.addf %63, %83 : vector<16x32xf32>
    %c3 = arith.constant 3 : index
    %c0_39 = arith.constant 0 : index
    %85 = vector.load %arg3[%c3, %c0_39] : memref<4x32xf32, #tpu.memory_space<vmem>>, vector<1x32xf32>
    %86 = vector.broadcast %85 : vector<1x32xf32> to vector<16x32xf32>
    %87 = arith.mulf %6, %86 : vector<16x32xf32>
    %cst_40 = arith.constant 0.353553385 : f32
    %88 = vector.broadcast %cst_40 : f32 to vector<16x32xf32>
    %89 = arith.mulf %87, %88 : vector<16x32xf32>
    %90 = vector.broadcast %85 : vector<1x32xf32> to vector<16x32xf32>
    %91 = arith.mulf %16, %90 : vector<16x32xf32>
    %cst_41 = arith.constant dense<0.000000e+00> : vector<16x16xf32>
    %92 = tpu.matmul %89, %11, %cst_41 {dimension_numbers = #tpu.dot_dimension_numbers<[1], [1], [0], [0], [0, 0, 1, 0], [], []>} : vector<16x32xf32>, vector<16x32xf32>, vector<16x16xf32> -> vector<16x16xf32>
    %93 = arith.subf %92, %20 : vector<16x16xf32>
    %cst_42 = arith.constant dense<0xFF800000> : vector<16xf32>
    %94 = vector.multi_reduction <maximumf>, %93, %cst_42 [1] : vector<16x16xf32> to vector<16xf32>
    %95 = vector.shape_cast %94 : vector<16xf32> to vector<16x1xf32>
    %96 = vector.broadcast %95 : vector<16x1xf32> to vector<16x16xf32>
    %97 = arith.subf %93, %96 : vector<16x16xf32>
    %98 = math.exp %97 : vector<16x16xf32>
    %cst_43 = arith.constant dense<0.000000e+00> : vector<16xf32>
    %99 = vector.multi_reduction <add>, %98, %cst_43 [1] : vector<16x16xf32> to vector<16xf32>
    %100 = vector.shape_cast %99 : vector<16xf32> to vector<16x1xf32>
    %101 = tpu.reciprocal %100 {approx = true} : vector<16x1xf32> -> vector<16x1xf32>
    %102 = vector.broadcast %101 : vector<16x1xf32> to vector<16x16xf32>
    %103 = arith.mulf %98, %102 : vector<16x16xf32>
    %cst_44 = arith.constant dense<0.000000e+00> : vector<16x32xf32>
    %104 = tpu.matmul %103, %91, %cst_44 {dimension_numbers = #tpu.dot_dimension_numbers<[1], [0], [0], [1], [0, 0, 1, 1], [], []>} : vector<16x16xf32>, vector<16x32xf32>, vector<16x32xf32> -> vector<16x32xf32>
    %105 = arith.addf %84, %104 : vector<16x32xf32>
    %c0_45 = arith.constant 0 : index
    %c0_46 = arith.constant 0 : index
    %106 = vector.load %arg10[%c0_45, %c0_46] : memref<32x32xf32, #tpu.memory_space<vmem>>, vector<32x32xf32>
    %cst_47 = arith.constant dense<0.000000e+00> : vector<16x32xf32>
    %107 = tpu.matmul %105, %106, %cst_47 {dimension_numbers = #tpu.dot_dimension_numbers<[1], [0], [0], [1], [0, 0, 1, 1], [], []>} : vector<16x32xf32>, vector<32x32xf32>, vector<16x32xf32> -> vector<16x32xf32>
    %c0_48 = arith.constant 0 : index
    %c0_49 = arith.constant 0 : index
    %108 = vector.load %arg11[%c0_48, %c0_49] : memref<1x32xf32, #tpu.memory_space<vmem>>, vector<1x32xf32>
    %109 = vector.broadcast %108 : vector<1x32xf32> to vector<16x32xf32>
    %110 = arith.addf %107, %109 : vector<16x32xf32>
    %111 = arith.addf %0, %110 : vector<16x32xf32>
    %cst_50 = arith.constant dense<0.000000e+00> : vector<16xf32>
    %112 = vector.multi_reduction <add>, %111, %cst_50 [1] : vector<16x32xf32> to vector<16xf32>
    %113 = vector.shape_cast %112 : vector<16xf32> to vector<16x1xf32>
    %cst_51 = arith.constant 3.200000e+01 : f32
    %114 = vector.broadcast %cst_51 : f32 to vector<16x1xf32>
    %115 = arith.divf %113, %114 : vector<16x1xf32>
    %116 = vector.broadcast %115 : vector<16x1xf32> to vector<16x32xf32>
    %117 = arith.subf %111, %116 : vector<16x32xf32>
    %118 = arith.mulf %117, %117 : vector<16x32xf32>
    %cst_52 = arith.constant dense<0.000000e+00> : vector<16xf32>
    %119 = vector.multi_reduction <add>, %118, %cst_52 [1] : vector<16x32xf32> to vector<16xf32>
    %120 = vector.shape_cast %119 : vector<16xf32> to vector<16x1xf32>
    %cst_53 = arith.constant 3.200000e+01 : f32
    %121 = vector.broadcast %cst_53 : f32 to vector<16x1xf32>
    %122 = arith.divf %120, %121 : vector<16x1xf32>
    %123 = vector.broadcast %115 : vector<16x1xf32> to vector<16x32xf32>
    %124 = arith.subf %111, %123 : vector<16x32xf32>
    %cst_54 = arith.constant 9.99999974E-6 : f32
    %125 = vector.broadcast %cst_54 : f32 to vector<16x1xf32>
    %126 = arith.addf %122, %125 : vector<16x1xf32>
    %127 = math.rsqrt %126 : vector<16x1xf32>
    %128 = vector.broadcast %127 : vector<16x1xf32> to vector<16x32xf32>
    %129 = arith.mulf %124, %128 : vector<16x32xf32>
    %c0_55 = arith.constant 0 : index
    %c0_56 = arith.constant 0 : index
    %130 = vector.load %arg12[%c0_55, %c0_56] : memref<1x32xf32, #tpu.memory_space<vmem>>, vector<1x32xf32>
    %131 = vector.broadcast %130 : vector<1x32xf32> to vector<16x32xf32>
    %132 = arith.mulf %129, %131 : vector<16x32xf32>
    %c0_57 = arith.constant 0 : index
    %c0_58 = arith.constant 0 : index
    %133 = vector.load %arg13[%c0_57, %c0_58] : memref<1x32xf32, #tpu.memory_space<vmem>>, vector<1x32xf32>
    %134 = vector.broadcast %133 : vector<1x32xf32> to vector<16x32xf32>
    %135 = arith.addf %132, %134 : vector<16x32xf32>
    %c0_59 = arith.constant 0 : index
    %c0_60 = arith.constant 0 : index
    %136 = vector.load %arg14[%c0_59, %c0_60] : memref<32x2048xf32, #tpu.memory_space<vmem>>, vector<32x2048xf32>
    %cst_61 = arith.constant dense<0.000000e+00> : vector<16x2048xf32>
    %137 = tpu.matmul %135, %136, %cst_61 {dimension_numbers = #tpu.dot_dimension_numbers<[1], [0], [0], [1], [0, 0, 1, 1], [], []>} : vector<16x32xf32>, vector<32x2048xf32>, vector<16x2048xf32> -> vector<16x2048xf32>
    %c0_62 = arith.constant 0 : index
    %c0_63 = arith.constant 0 : index
    %138 = vector.load %arg15[%c0_62, %c0_63] : memref<1x2048xf32, #tpu.memory_space<vmem>>, vector<1x2048xf32>
    %139 = vector.broadcast %138 : vector<1x2048xf32> to vector<16x2048xf32>
    %140 = arith.addf %137, %139 : vector<16x2048xf32>
    %cst_64 = arith.constant 0.000000e+00 : f32
    %141 = vector.broadcast %cst_64 : f32 to vector<16x2048xf32>
    %142 = arith.maximumf %140, %141 : vector<16x2048xf32>
    %c0_65 = arith.constant 0 : index
    %c0_66 = arith.constant 0 : index
    %143 = vector.load %arg16[%c0_65, %c0_66] : memref<2048x32xf32, #tpu.memory_space<vmem>>, vector<2048x32xf32>
    %cst_67 = arith.constant dense<0.000000e+00> : vector<16x32xf32>
    %144 = tpu.matmul %142, %143, %cst_67 {dimension_numbers = #tpu.dot_dimension_numbers<[1], [0], [0], [1], [0, 0, 1, 1], [], []>} : vector<16x2048xf32>, vector<2048x32xf32>, vector<16x32xf32> -> vector<16x32xf32>
    %c0_68 = arith.constant 0 : index
    %c0_69 = arith.constant 0 : index
    %145 = vector.load %arg17[%c0_68, %c0_69] : memref<1x32xf32, #tpu.memory_space<vmem>>, vector<1x32xf32>
    %146 = vector.broadcast %145 : vector<1x32xf32> to vector<16x32xf32>
    %147 = arith.addf %144, %146 : vector<16x32xf32>
    %148 = arith.addf %135, %147 : vector<16x32xf32>
    %cst_70 = arith.constant dense<0.000000e+00> : vector<16xf32>
    %149 = vector.multi_reduction <add>, %148, %cst_70 [1] : vector<16x32xf32> to vector<16xf32>
    %150 = vector.shape_cast %149 : vector<16xf32> to vector<16x1xf32>
    %cst_71 = arith.constant 3.200000e+01 : f32
    %151 = vector.broadcast %cst_71 : f32 to vector<16x1xf32>
    %152 = arith.divf %150, %151 : vector<16x1xf32>
    %153 = vector.broadcast %152 : vector<16x1xf32> to vector<16x32xf32>
    %154 = arith.subf %148, %153 : vector<16x32xf32>
    %155 = arith.mulf %154, %154 : vector<16x32xf32>
    %cst_72 = arith.constant dense<0.000000e+00> : vector<16xf32>
    %156 = vector.multi_reduction <add>, %155, %cst_72 [1] : vector<16x32xf32> to vector<16xf32>
    %157 = vector.shape_cast %156 : vector<16xf32> to vector<16x1xf32>
    %cst_73 = arith.constant 3.200000e+01 : f32
    %158 = vector.broadcast %cst_73 : f32 to vector<16x1xf32>
    %159 = arith.divf %157, %158 : vector<16x1xf32>
    %160 = vector.broadcast %152 : vector<16x1xf32> to vector<16x32xf32>
    %161 = arith.subf %148, %160 : vector<16x32xf32>
    %cst_74 = arith.constant 9.99999974E-6 : f32
    %162 = vector.broadcast %cst_74 : f32 to vector<16x1xf32>
    %163 = arith.addf %159, %162 : vector<16x1xf32>
    %164 = math.rsqrt %163 : vector<16x1xf32>
    %165 = vector.broadcast %164 : vector<16x1xf32> to vector<16x32xf32>
    %166 = arith.mulf %161, %165 : vector<16x32xf32>
    %c0_75 = arith.constant 0 : index
    %c0_76 = arith.constant 0 : index
    %167 = vector.load %arg18[%c0_75, %c0_76] : memref<1x32xf32, #tpu.memory_space<vmem>>, vector<1x32xf32>
    %168 = vector.broadcast %167 : vector<1x32xf32> to vector<16x32xf32>
    %169 = arith.mulf %166, %168 : vector<16x32xf32>
    %c0_77 = arith.constant 0 : index
    %c0_78 = arith.constant 0 : index
    %170 = vector.load %arg19[%c0_77, %c0_78] : memref<1x32xf32, #tpu.memory_space<vmem>>, vector<1x32xf32>
    %171 = vector.broadcast %170 : vector<1x32xf32> to vector<16x32xf32>
    %172 = arith.addf %169, %171 : vector<16x32xf32>
    %c0_79 = arith.constant 0 : index
    %c0_80 = arith.constant 0 : index
    %173 = vector.load %arg20[%c0_79, %c0_80] : memref<16x32xf32, #tpu.memory_space<vmem>>, vector<16x32xf32>
    tpu.vector_store %arg20[%c0_79, %c0_80], %172 {strides = array<i32>} : memref<16x32xf32, #tpu.memory_space<vmem>>, vector<16x32xf32>,
    return
  }
  func.func @transform_0(%arg0: i32) -> (i32, i32) {
    %c0_i32 = arith.constant 0 : i32
    %c0_i32_0 = arith.constant 0 : i32
    %c0_i32_1 = arith.constant 0 : i32
    return %c0_i32, %c0_i32_0 : i32, i32
  }
  func.func @transform_1(%arg0: i32) -> (i32, i32) {
    %c0_i32 = arith.constant 0 : i32
    %c0_i32_0 = arith.constant 0 : i32
    %c0_i32_1 = arith.constant 0 : i32
    return %c0_i32, %c0_i32_0 : i32, i32
  }
  func.func @transform_2(%arg0: i32) -> (i32, i32) {
    %c0_i32 = arith.constant 0 : i32
    %c0_i32_0 = arith.constant 0 : i32
    %c0_i32_1 = arith.constant 0 : i32
    return %c0_i32, %c0_i32_0 : i32, i32
  }
  func.func @transform_3(%arg0: i32) -> (i32, i32) {
    %c0_i32 = arith.constant 0 : i32
    %c0_i32_0 = arith.constant 0 : i32
    %c0_i32_1 = arith.constant 0 : i32
    return %c0_i32, %c0_i32_0 : i32, i32
  }
  func.func @transform_4(%arg0: i32) -> (i32, i32) {
    %c0_i32 = arith.constant 0 : i32
    %c0_i32_0 = arith.constant 0 : i32
    %c0_i32_1 = arith.constant 0 : i32
    return %c0_i32, %c0_i32_0 : i32, i32
  }
  func.func @transform_5(%arg0: i32) -> (i32, i32) {
    %c0_i32 = arith.constant 0 : i32
    %c0_i32_0 = arith.constant 0 : i32
    %c0_i32_1 = arith.constant 0 : i32
    return %c0_i32, %c0_i32_0 : i32, i32
  }
  func.func @transform_6(%arg0: i32) -> (i32, i32) {
    %c0_i32 = arith.constant 0 : i32
    %c0_i32_0 = arith.constant 0 : i32
    %c0_i32_1 = arith.constant 0 : i32
    return %c0_i32, %c0_i32_0 : i32, i32
  }
  func.func @transform_7(%arg0: i32) -> (i32, i32) {
    %c0_i32 = arith.constant 0 : i32
    %c0_i32_0 = arith.constant 0 : i32
    %c0_i32_1 = arith.constant 0 : i32
    return %c0_i32, %c0_i32_0 : i32, i32
  }
  func.func @transform_8(%arg0: i32) -> (i32, i32) {
    %c0_i32 = arith.constant 0 : i32
    %c0_i32_0 = arith.constant 0 : i32
    %c0_i32_1 = arith.constant 0 : i32
    return %c0_i32, %c0_i32_0 : i32, i32
  }
  func.func @transform_9(%arg0: i32) -> (i32, i32) {
    %c0_i32 = arith.constant 0 : i32
    %c0_i32_0 = arith.constant 0 : i32
    %c0_i32_1 = arith.constant 0 : i32
    return %c0_i32, %c0_i32_0 : i32, i32
  }
  func.func @transform_10(%arg0: i32) -> (i32, i32) {
    %c0_i32 = arith.constant 0 : i32
    %c0_i32_0 = arith.constant 0 : i32
    %c0_i32_1 = arith.constant 0 : i32
    return %c0_i32, %c0_i32_0 : i32, i32
  }
  func.func @transform_11(%arg0: i32) -> (i32, i32) {
    %c0_i32 = arith.constant 0 : i32
    %c0_i32_0 = arith.constant 0 : i32
    %c0_i32_1 = arith.constant 0 : i32
    return %c0_i32, %c0_i32_0 : i32, i32
  }
  func.func @transform_12(%arg0: i32) -> (i32, i32) {
    %c0_i32 = arith.constant 0 : i32
    %c0_i32_0 = arith.constant 0 : i32
    %c0_i32_1 = arith.constant 0 : i32
    return %c0_i32, %c0_i32_0 : i32, i32
  }
  func.func @transform_13(%arg0: i32) -> (i32, i32) {
    %c0_i32 = arith.constant 0 : i32
    %c0_i32_0 = arith.constant 0 : i32
    %c0_i32_1 = arith.constant 0 : i32
    return %c0_i32, %c0_i32_0 : i32, i32
  }
  func.func @transform_14(%arg0: i32) -> (i32, i32) {
    %c0_i32 = arith.constant 0 : i32
    %c0_i32_0 = arith.constant 0 : i32
    %c0_i32_1 = arith.constant 0 : i32
    return %c0_i32, %c0_i32_0 : i32, i32
  }
  func.func @transform_15(%arg0: i32) -> (i32, i32) {
    %c0_i32 = arith.constant 0 : i32
    %c0_i32_0 = arith.constant 0 : i32
    %c0_i32_1 = arith.constant 0 : i32
    return %c0_i32, %c0_i32_0 : i32, i32
  }
  func.func @transform_16(%arg0: i32) -> (i32, i32) {
    %c0_i32 = arith.constant 0 : i32
    %c0_i32_0 = arith.constant 0 : i32
    %c0_i32_1 = arith.constant 0 : i32
    return %c0_i32, %c0_i32_0 : i32, i32
  }
  func.func @transform_17(%arg0: i32) -> (i32, i32) {
    %c0_i32 = arith.constant 0 : i32
    %c0_i32_0 = arith.constant 0 : i32
    %c0_i32_1 = arith.constant 0 : i32
    return %c0_i32, %c0_i32_0 : i32, i32
  }
  func.func @transform_18(%arg0: i32) -> (i32, i32) {
    %c0_i32 = arith.constant 0 : i32
    %c0_i32_0 = arith.constant 0 : i32
    %c0_i32_1 = arith.constant 0 : i32
    return %c0_i32, %c0_i32_0 : i32, i32
  }
  func.func @transform_19(%arg0: i32) -> (i32, i32) {
    %c0_i32 = arith.constant 0 : i32
    %c0_i32_0 = arith.constant 0 : i32
    %c0_i32_1 = arith.constant 0 : i32
    return %c0_i32, %c0_i32_0 : i32, i32
  }
}

</mosaic_0001>

<bundles_post_ra>
// kernel: forward.3
= control target key start
LH: loop header
LB: loop body
LE: loop exit
PB: predicated region body
PF: predicated region fallthrough
CT: control target
= control target key end

     0   :  { %s2481_s0 = inlined_call_operand.vmem [shape: f32[2,256], index: 0, kind: input, shape index: {}]   ;;  %s2482_s1 = inlined_call_operand.vmem [shape: f32[2,256], index: 1, kind: input, shape index: {}]   ;;  %s2483_s2 = inlined_call_operand.vmem [shape: f32[256,1024], index: 2, kind: input, shape index: {}]   ;;  %s2484_s3 = inlined_call_operand.vmem [shape: f32[1,1024], index: 3, kind: input, shape index: {}]   ;;  %s2485_s4 = inlined_call_operand.vmem [shape: f32[1024,5], index: 4, kind: input, shape index: {}]   ;;  %s2486_s5 = inlined_call_operand.vmem [shape: f32[1,5], index: 5, kind: input, shape index: {}]   ;;  %s2487_s6 = inlined_call_operand.hbm [shape: f32[2,5], index: 6, kind: output, shape index: {}]  }
   0x1   :  { %v148_v0 = vld [vmem:[%s2483_s2 + $0x3c8] sm:$0xff]  ;;  %v150_v1 = vld [vmem:[%s2483_s2 + $0x3d8] sm:$0xff]  ;;  %v147_v2 = vld [vmem:[%s2483_s2 + $0x3c0] sm:$0xff] }
   0x2   :  { %336 = vmatprep.subr.mxu0 %v148_v0  ;;  %407 = vmatprep.subr.mxu1 %v150_v1  ;;  %v149_v3 = vld [vmem:[%s2483_s2 + $0x3d0] sm:$0xff]  ;;  %v140_v4 = vld [vmem:[%s2483_s2 + $0x388] sm:$0xff]  ;;  %v142_v5 = vld [vmem:[%s2483_s2 + $0x398] sm:$0xff] }
   0x3   :  { %337 = vmatpush1.msra.mxu0 %v147_v2  ;;  %408 = vmatpush1.msra.mxu1 %v149_v3  ;;  %v139_v6 = vld [vmem:[%s2483_s2 + $0x380] sm:$0xff]  ;;  %v141_v7 = vld [vmem:[%s2483_s2 + $0x390] sm:$0xff]  ;;  %v132_v8 = vld [vmem:[%s2483_s2 + $0x348] sm:$0xff] }
   0x4   :  { %338 = vmatprep.subr.mxu0 %v140_v4  ;;  %409 = vmatprep.subr.mxu1 %v142_v5  ;;  %v134_v9 = vld [vmem:[%s2483_s2 + $0x358] sm:$0xff]  ;;  %v131_v10 = vld [vmem:[%s2483_s2 + $0x340] sm:$0xff]  ;;  %v133_v11 = vld [vmem:[%s2483_s2 + $0x350] sm:$0xff] }
   0x5   :  { %339 = vmatpush1.msra.mxu0 %v139_v6  ;;  %410 = vmatpush1.msra.mxu1 %v141_v7  ;;  %v124_v12 = vld [vmem:[%s2483_s2 + $0x308] sm:$0xff]  ;;  %v126_v13 = vld [vmem:[%s2483_s2 + $0x318] sm:$0xff]  ;;  %v123_v14 = vld [vmem:[%s2483_s2 + $0x300] sm:$0xff] }
   0x6   :  { %340 = vmatprep.subr.mxu0 %v132_v8  ;;  %411 = vmatprep.subr.mxu1 %v134_v9  ;;  %v125_v15 = vld [vmem:[%s2483_s2 + $0x310] sm:$0xff]  ;;  %v116_v16 = vld [vmem:[%s2483_s2 + $0x2c8] sm:$0xff]  ;;  %v118_v17 = vld [vmem:[%s2483_s2 + $0x2d8] sm:$0xff] }
   0x7   :  { %341 = vmatpush1.msra.mxu0 %v131_v10  ;;  %412 = vmatpush1.msra.mxu1 %v133_v11  ;;  %v115_v18 = vld [vmem:[%s2483_s2 + $0x2c0] sm:$0xff]  ;;  %v117_v19 = vld [vmem:[%s2483_s2 + $0x2d0] sm:$0xff]  ;;  %v108_v20 = vld [vmem:[%s2483_s2 + $0x288] sm:$0xff] }
   0x8   :  { %342 = vmatprep.subr.mxu0 %v124_v12  ;;  %413 = vmatprep.subr.mxu1 %v126_v13  ;;  %v110_v21 = vld [vmem:[%s2483_s2 + $0x298] sm:$0xff]  ;;  %v107_v22 = vld [vmem:[%s2483_s2 + $0x280] sm:$0xff]  ;;  %v109_v23 = vld [vmem:[%s2483_s2 + $0x290] sm:$0xff] }
   0x9   :  { %343 = vmatpush1.msra.mxu0 %v123_v14  ;;  %414 = vmatpush1.msra.mxu1 %v125_v15  ;;  %v100_v24 = vld [vmem:[%s2483_s2 + $0x248] sm:$0xff]  ;;  %v102_v25 = vld [vmem:[%s2483_s2 + $0x258] sm:$0xff]  ;;  %v99_v26 = vld [vmem:[%s2483_s2 + $0x240] sm:$0xff] }
   0xa   :  { %344 = vmatprep.subr.mxu0 %v116_v16  ;;  %415 = vmatprep.subr.mxu1 %v118_v17  ;;  %v101_v27 = vld [vmem:[%s2483_s2 + $0x250] sm:$0xff]  ;;  %v92_v28 = vld [vmem:[%s2483_s2 + $0x208] sm:$0xff]  ;;  %v94_v29 = vld [vmem:[%s2483_s2 + $0x218] sm:$0xff] }
   0xb   :  { %345 = vmatpush1.msra.mxu0 %v115_v18  ;;  %416 = vmatpush1.msra.mxu1 %v117_v19  ;;  %v91_v30 = vld [vmem:[%s2483_s2 + $0x200] sm:$0xff]  ;;  %v93_v31 = vld [vmem:[%s2483_s2 + $0x210] sm:$0xff]  ;;  %v84_v32 = vld [vmem:[%s2483_s2 + $0x1c8] sm:$0xff] }
   0xc   :  { %346 = vmatprep.subr.mxu0 %v108_v20  ;;  %417 = vmatprep.subr.mxu1 %v110_v21  ;;  %v86_v33 = vld [vmem:[%s2483_s2 + $0x1d8] sm:$0xff]  ;;  %v83_v34 = vld [vmem:[%s2483_s2 + $0x1c0] sm:$0xff]  ;;  %v85_v35 = vld [vmem:[%s2483_s2 + $0x1d0] sm:$0xff] }
   0xd   :  { %347 = vmatpush1.msra.mxu0 %v107_v22  ;;  %418 = vmatpush1.msra.mxu1 %v109_v23  ;;  %v76_v36 = vld [vmem:[%s2483_s2 + $0x188] sm:$0xff]  ;;  %v78_v37 = vld [vmem:[%s2483_s2 + $0x198] sm:$0xff]  ;;  %v75_v38 = vld [vmem:[%s2483_s2 + $0x180] sm:$0xff] }
   0xe   :  { %348 = vmatprep.subr.mxu0 %v100_v24  ;;  %419 = vmatprep.subr.mxu1 %v102_v25  ;;  %v77_v39 = vld [vmem:[%s2483_s2 + $0x190] sm:$0xff]  ;;  %v68_v40 = vld [vmem:[%s2483_s2 + $0x148] sm:$0xff]  ;;  %v70_v41 = vld [vmem:[%s2483_s2 + $0x158] sm:$0xff] }
   0xf   :  { %349 = vmatpush1.msra.mxu0 %v99_v26  ;;  %420 = vmatpush1.msra.mxu1 %v101_v27  ;;  %v67_v42 = vld [vmem:[%s2483_s2 + $0x140] sm:$0xff]  ;;  %v69_v43 = vld [vmem:[%s2483_s2 + $0x150] sm:$0xff]  ;;  %v60_v44 = vld [vmem:[%s2483_s2 + $0x108] sm:$0xff] }
  0x10   :  { %350 = vmatprep.subr.mxu0 %v92_v28  ;;  %421 = vmatprep.subr.mxu1 %v94_v29  ;;  %v62_v45 = vld [vmem:[%s2483_s2 + $0x118] sm:$0xff]  ;;  %v59_v46 = vld [vmem:[%s2483_s2 + $0x100] sm:$0xff]  ;;  %v61_v47 = vld [vmem:[%s2483_s2 + $0x110] sm:$0xff] }
  0x11   :  { %351 = vmatpush1.msra.mxu0 %v91_v30  ;;  %422 = vmatpush1.msra.mxu1 %v93_v31  ;;  %v52_v48 = vld [vmem:[%s2483_s2 + $0xc8] sm:$0xff]  ;;  %v54_v49 = vld [vmem:[%s2483_s2 + $0xd8] sm:$0xff]  ;;  %v51_v50 = vld [vmem:[%s2483_s2 + $0xc0] sm:$0xff]  ;;  %v285_v30 = vlaneseq  ;;  %v1239_v31 = vmov 1983009808  }
  0x12   :  { %352 = vmatprep.subr.mxu0 %v84_v32  ;;  %423 = vmatprep.subr.mxu1 %v86_v33  ;;  %v53_v51 = vld [vmem:[%s2483_s2 + $0xd0] sm:$0xff]  ;;  %v44_v52 = vld [vmem:[%s2483_s2 + $0x88] sm:$0xff]  ;;  %v46_v53 = vld [vmem:[%s2483_s2 + $0x98] sm:$0xff]  ;;  %v327_v32 = vunpack.c.l.s4 %v1239_v31 }
  0x13   :  { %353 = vmatpush1.msra.mxu0 %v83_v34  ;;  %424 = vmatpush1.msra.mxu1 %v85_v35  ;;  %v43_v54 = vld [vmem:[%s2483_s2 + $0x80] sm:$0xff]  ;;  %v45_v55 = vld [vmem:[%s2483_s2 + $0x90] sm:$0xff]  ;;  %v36_v56 = vld [vmem:[%s2483_s2 + $0x48] sm:$0xff] }
  0x14   :  { %354 = vmatprep.subr.mxu0 %v76_v36  ;;  %425 = vmatprep.subr.mxu1 %v78_v37  ;;  %v38_v57 = vld [vmem:[%s2483_s2 + $0x58] sm:$0xff]  ;;  %v35_v58 = vld [vmem:[%s2483_s2 + $0x40] sm:$0xff]  ;;  %v37_v59 = vld [vmem:[%s2483_s2 + $0x50] sm:$0xff] }
  0x15   :  { %355 = vmatpush1.msra.mxu0 %v75_v38  ;;  %426 = vmatpush1.msra.mxu1 %v77_v39  ;;  %v28_v60 = vld [vmem:[%s2483_s2 + $0x8] sm:$0xff]  ;;  %v30_v61 = vld [vmem:[%s2483_s2 + $0x18] sm:$0xff]  ;;  %v27_v62 = vld [vmem:[%s2483_s2] sm:$0xff] }
  0x16   :  { %356 = vmatprep.subr.mxu0 %v68_v40  ;;  %427 = vmatprep.subr.mxu1 %v70_v41  ;;  %v29_v63 = vld [vmem:[%s2483_s2 + $0x10] sm:$0xff]  ;;  %v276_v0 = vld [vmem:[%s2483_s2 + $0x7c8] sm:$0xff]  ;;  %v278_v1 = vld [vmem:[%s2483_s2 + $0x7d8] sm:$0xff] }
  0x17   :  { %357 = vmatpush1.msra.mxu0 %v67_v42  ;;  %428 = vmatpush1.msra.mxu1 %v69_v43  ;;  %v275_v2 = vld [vmem:[%s2483_s2 + $0x7c0] sm:$0xff]  ;;  %v277_v3 = vld [vmem:[%s2483_s2 + $0x7d0] sm:$0xff]  ;;  %v268_v4 = vld [vmem:[%s2483_s2 + $0x788] sm:$0xff]  ;;  %v1585_v42 = vshrl.u32 %v285_v30, 7  ;;  %v328_v43 = vunpack.c.0.s8 %v327_v32 }
  0x18   :  { %358 = vmatprep.subr.mxu0 %v60_v44  ;;  %429 = vmatprep.subr.mxu1 %v62_v45  ;;  %v270_v5 = vld [vmem:[%s2483_s2 + $0x798] sm:$0xff]  ;;  %v267_v6 = vld [vmem:[%s2483_s2 + $0x780] sm:$0xff]  ;;  %v269_v7 = vld [vmem:[%s2483_s2 + $0x790] sm:$0xff] }
  0x19   :  { %359 = vmatpush1.msra.mxu0 %v59_v46  ;;  %430 = vmatpush1.msra.mxu1 %v61_v47  ;;  %v260_v8 = vld [vmem:[%s2483_s2 + $0x748] sm:$0xff]  ;;  %v262_v9 = vld [vmem:[%s2483_s2 + $0x758] sm:$0xff]  ;;  %v259_v10 = vld [vmem:[%s2483_s2 + $0x740] sm:$0xff] }
  0x1a   :  { %360 = vmatprep.subr.mxu0 %v52_v48  ;;  %431 = vmatprep.subr.mxu1 %v54_v49  ;;  %v261_v11 = vld [vmem:[%s2483_s2 + $0x750] sm:$0xff]  ;;  %v252_v12 = vld [vmem:[%s2483_s2 + $0x708] sm:$0xff]  ;;  %v254_v13 = vld [vmem:[%s2483_s2 + $0x718] sm:$0xff] }
  0x1b   :  { %361 = vmatpush1.msra.mxu0 %v51_v50  ;;  %432 = vmatpush1.msra.mxu1 %v53_v51  ;;  %v251_v14 = vld [vmem:[%s2483_s2 + $0x700] sm:$0xff]  ;;  %v253_v15 = vld [vmem:[%s2483_s2 + $0x710] sm:$0xff]  ;;  %v244_v16 = vld [vmem:[%s2483_s2 + $0x6c8] sm:$0xff] }
  0x1c   :  { %362 = vmatprep.subr.mxu0 %v44_v52  ;;  %433 = vmatprep.subr.mxu1 %v46_v53  ;;  %v246_v17 = vld [vmem:[%s2483_s2 + $0x6d8] sm:$0xff]  ;;  %v243_v18 = vld [vmem:[%s2483_s2 + $0x6c0] sm:$0xff]  ;;  %v245_v19 = vld [vmem:[%s2483_s2 + $0x6d0] sm:$0xff] }
  0x1d   :  { %363 = vmatpush1.msra.mxu0 %v43_v54  ;;  %434 = vmatpush1.msra.mxu1 %v45_v55  ;;  %v236_v20 = vld [vmem:[%s2483_s2 + $0x688] sm:$0xff]  ;;  %v238_v21 = vld [vmem:[%s2483_s2 + $0x698] sm:$0xff]  ;;  %v235_v22 = vld [vmem:[%s2483_s2 + $0x680] sm:$0xff]  ;;  %v331_v54 = vsub.s32 %v328_v43, %v1585_v42 }
  0x1e   :  { %364 = vmatprep.subr.mxu0 %v36_v56  ;;  %435 = vmatprep.subr.mxu1 %v38_v57  ;;  %v237_v23 = vld [vmem:[%s2483_s2 + $0x690] sm:$0xff]  ;;  %v228_v24 = vld [vmem:[%s2483_s2 + $0x648] sm:$0xff]  ;;  %v230_v25 = vld [vmem:[%s2483_s2 + $0x658] sm:$0xff] }
  0x1f   :  { %365 = vmatpush1.msra.mxu0 %v35_v58  ;;  %436 = vmatpush1.msra.mxu1 %v37_v59  ;;  %v227_v26 = vld [vmem:[%s2483_s2 + $0x640] sm:$0xff]  ;;  %v229_v27 = vld [vmem:[%s2483_s2 + $0x650] sm:$0xff]  ;;  %v220_v28 = vld [vmem:[%s2483_s2 + $0x608] sm:$0xff] }
  0x20   :  { %366 = vmatprep.subr.mxu0 %v28_v60  ;;  %437 = vmatprep.subr.mxu1 %v30_v61  ;;  %v222_v29 = vld [vmem:[%s2483_s2 + $0x618] sm:$0xff]  ;;  %v219_v33 = vld [vmem:[%s2483_s2 + $0x600] sm:$0xff]  ;;  %v221_v34 = vld [vmem:[%s2483_s2 + $0x610] sm:$0xff] }
  0x21   :  { %367 = vmatpush1.msra.mxu0 %v27_v62  ;;  %438 = vmatpush1.msra.mxu1 %v29_v63  ;;  %v212_v35 = vld [vmem:[%s2483_s2 + $0x5c8] sm:$0xff]  ;;  %v214_v36 = vld [vmem:[%s2483_s2 + $0x5d8] sm:$0xff]  ;;  %v211_v37 = vld [vmem:[%s2483_s2 + $0x5c0] sm:$0xff] }
  0x22   :  { %368 = vmatprep.subr.mxu0 %v276_v0  ;;  %439 = vmatprep.subr.mxu1 %v278_v1  ;;  %v213_v38 = vld [vmem:[%s2483_s2 + $0x5d0] sm:$0xff]  ;;  %v204_v39 = vld [vmem:[%s2483_s2 + $0x588] sm:$0xff]  ;;  %v206_v40 = vld [vmem:[%s2483_s2 + $0x598] sm:$0xff] }
  0x23   :  { %369 = vmatpush2.msra.mxu0 %v275_v2  ;;  %440 = vmatpush2.msra.mxu1 %v277_v3  ;;  %v203_v41 = vld [vmem:[%s2483_s2 + $0x580] sm:$0xff]  ;;  %v205_v44 = vld [vmem:[%s2483_s2 + $0x590] sm:$0xff]  ;;  %v196_v47 = vld [vmem:[%s2483_s2 + $0x548] sm:$0xff] }
  0x24   :  { %370 = vmatprep.subr.mxu0 %v268_v4  ;;  %441 = vmatprep.subr.mxu1 %v270_v5  ;;  %v24_v45 = vld [vmem:[%s2481_s0] sm:$0xf]  ;;  %v198_v48 = vld [vmem:[%s2483_s2 + $0x558] sm:$0xff]  ;;  %v197_v50 = vld [vmem:[%s2483_s2 + $0x550] sm:$0xff] }
  0x25   :  { %371 = vmatpush2.msra.mxu0 %v267_v6  ;;  %442 = vmatpush2.msra.mxu1 %v269_v7  ;;  %v25_v46 = vld [vmem:[%s2482_s1] sm:$0xf]  ;;  %v188_v51 = vld [vmem:[%s2483_s2 + $0x508] sm:$0xff]  ;;  %v190_v52 = vld [vmem:[%s2483_s2 + $0x518] sm:$0xff] }
  0x26   :  { %372 = vmatprep.subr.mxu0 %v260_v8  ;;  %443 = vmatprep.subr.mxu1 %v262_v9  ;;  %v195_v49 = vld [vmem:[%s2483_s2 + $0x540] sm:$0xff]  ;;  %v26_v53 = vmul.f32 %v25_v46, %v24_v45  ;;  %v189_v56 = vld [vmem:[%s2483_s2 + $0x510] sm:$0xff]  ;;  %v180_v57 = vld [vmem:[%s2483_s2 + $0x4c8] sm:$0xff] }
  0x27   :  { %373 = vmatpush2.msra.mxu0 %v259_v10  ;;  %444 = vmatpush2.msra.mxu1 %v261_v11  ;;  %v187_v55 = vld [vmem:[%s2483_s2 + $0x500] sm:$0xff]  ;;  %v182_v58 = vld [vmem:[%s2483_s2 + $0x4d8] sm:$0xff]  ;;  %v181_v60 = vld [vmem:[%s2483_s2 + $0x4d0] sm:$0xff] }
  0x28   :  { %374 = vmatprep.subr.mxu0 %v252_v12  ;;  %445 = vmatprep.subr.mxu1 %v254_v13  ;;  %v179_v59 = vld [vmem:[%s2483_s2 + $0x4c0] sm:$0xff]  ;;  %v172_v61 = vld [vmem:[%s2483_s2 + $0x488] sm:$0xff]  ;;  %v174_v62 = vld [vmem:[%s2483_s2 + $0x498] sm:$0xff]  ;;  %v1639_v63 = vrot.slane %v26_v53, %v331_v54 }
  0x29   :  { %375 = vmatpush2.msra.mxu0 %v251_v14  ;;  %446 = vmatpush2.msra.mxu1 %v253_v15  ;;  %v171_v0 = vld [vmem:[%s2483_s2 + $0x480] sm:$0xff]  ;;  %v173_v1 = vld [vmem:[%s2483_s2 + $0x490] sm:$0xff]  ;;  %v164_v2 = vld [vmem:[%s2483_s2 + $0x448] sm:$0xff] }
  0x2a   :  { %376 = vmatprep.subr.mxu0 %v244_v16  ;;  %447 = vmatprep.subr.mxu1 %v246_v17  ;;  %v166_v3 = vld [vmem:[%s2483_s2 + $0x458] sm:$0xff]  ;;  %v163_v4 = vld [vmem:[%s2483_s2 + $0x440] sm:$0xff]  ;;  %v165_v5 = vld [vmem:[%s2483_s2 + $0x450] sm:$0xff]  ;;  %v1667_v8 = vcombine.high %v1639_v63, %v1639_v63 }
  0x2b   :  { %377 = vmatpush2.msra.mxu0 %v243_v18  ;;  %448 = vmatpush2.msra.mxu1 %v245_v19  ;;  %v156_v6 = vld [vmem:[%s2483_s2 + $0x408] sm:$0xff]  ;;  %v158_v7 = vld [vmem:[%s2483_s2 + $0x418] sm:$0xff]  ;;  %v155_v9 = vld [vmem:[%s2483_s2 + $0x400] sm:$0xff] }
  0x2c   :  { %378 = vmatprep.subr.mxu0 %v236_v20  ;;  %449 = vmatprep.subr.mxu1 %v238_v21  ;;  %v157_v10 = vld [vmem:[%s2483_s2 + $0x410] sm:$0xff]  ;;  %v152_v11 = vld [vmem:[%s2483_s2 + $0x3e8] sm:$0xff]  ;;  %v154_v12 = vld [vmem:[%s2483_s2 + $0x3f8] sm:$0xff] }
  0x2d   :  { %379 = vmatpush2.msra.mxu0 %v235_v22  ;;  %450 = vmatpush2.msra.mxu1 %v237_v23  ;;  %v151_v13 = vld [vmem:[%s2483_s2 + $0x3e0] sm:$0xff]  ;;  %v153_v14 = vld [vmem:[%s2483_s2 + $0x3f0] sm:$0xff]  ;;  %v144_v15 = vld [vmem:[%s2483_s2 + $0x3a8] sm:$0xff] }
  0x2e   :  { %380 = vmatprep.subr.mxu0 %v228_v24  ;;  %451 = vmatprep.subr.mxu1 %v230_v25  ;;  %v146_v16 = vld [vmem:[%s2483_s2 + $0x3b8] sm:$0xff]  ;;  %v143_v17 = vld [vmem:[%s2483_s2 + $0x3a0] sm:$0xff]  ;;  %v145_v18 = vld [vmem:[%s2483_s2 + $0x3b0] sm:$0xff] }
  0x2f   :  { %381 = vmatpush2.msra.mxu0 %v227_v26  ;;  %452 = vmatpush2.msra.mxu1 %v229_v27  ;;  %v136_v19 = vld [vmem:[%s2483_s2 + $0x368] sm:$0xff]  ;;  %v138_v20 = vld [vmem:[%s2483_s2 + $0x378] sm:$0xff]  ;;  %v135_v21 = vld [vmem:[%s2483_s2 + $0x360] sm:$0xff] }
  0x30   :  { %382 = vmatprep.subr.mxu0 %v220_v28  ;;  %453 = vmatprep.subr.mxu1 %v222_v29  ;;  %v137_v22 = vld [vmem:[%s2483_s2 + $0x370] sm:$0xff]  ;;  %v128_v23 = vld [vmem:[%s2483_s2 + $0x328] sm:$0xff]  ;;  %v130_v24 = vld [vmem:[%s2483_s2 + $0x338] sm:$0xff] }
  0x31   :  { %383 = vmatpush2.msra.mxu0 %v219_v33  ;;  %454 = vmatpush2.msra.mxu1 %v221_v34  ;;  %v127_v25 = vld [vmem:[%s2483_s2 + $0x320] sm:$0xff]  ;;  %v129_v26 = vld [vmem:[%s2483_s2 + $0x330] sm:$0xff]  ;;  %v120_v27 = vld [vmem:[%s2483_s2 + $0x2e8] sm:$0xff] }
  0x32   :  { %384 = vmatprep.subr.mxu0 %v212_v35  ;;  %455 = vmatprep.subr.mxu1 %v214_v36  ;;  %v122_v28 = vld [vmem:[%s2483_s2 + $0x2f8] sm:$0xff]  ;;  %v119_v29 = vld [vmem:[%s2483_s2 + $0x2e0] sm:$0xff]  ;;  %v121_v30 = vld [vmem:[%s2483_s2 + $0x2f0] sm:$0xff] }
  0x33   :  { %385 = vmatpush2.msra.mxu0 %v211_v37  ;;  %456 = vmatpush2.msra.mxu1 %v213_v38  ;;  %v112_v31 = vld [vmem:[%s2483_s2 + $0x2a8] sm:$0xff]  ;;  %v114_v32 = vld [vmem:[%s2483_s2 + $0x2b8] sm:$0xff]  ;;  %v111_v33 = vld [vmem:[%s2483_s2 + $0x2a0] sm:$0xff] }
  0x34   :  { %386 = vmatprep.subr.mxu0 %v204_v39  ;;  %457 = vmatprep.subr.mxu1 %v206_v40  ;;  %v113_v34 = vld [vmem:[%s2483_s2 + $0x2b0] sm:$0xff]  ;;  %v104_v35 = vld [vmem:[%s2483_s2 + $0x268] sm:$0xff]  ;;  %v106_v36 = vld [vmem:[%s2483_s2 + $0x278] sm:$0xff] }
  0x35   :  { %387 = vmatpush2.msra.mxu0 %v203_v41  ;;  %458 = vmatpush2.msra.mxu1 %v205_v44  ;;  %v103_v37 = vld [vmem:[%s2483_s2 + $0x260] sm:$0xff]  ;;  %v105_v38 = vld [vmem:[%s2483_s2 + $0x270] sm:$0xff]  ;;  %v96_v39 = vld [vmem:[%s2483_s2 + $0x228] sm:$0xff] }
  0x36   :  { %388 = vmatprep.subr.mxu0 %v196_v47  ;;  %459 = vmatprep.subr.mxu1 %v198_v48  ;;  %v98_v40 = vld [vmem:[%s2483_s2 + $0x238] sm:$0xff]  ;;  %v95_v41 = vld [vmem:[%s2483_s2 + $0x220] sm:$0xff]  ;;  %v97_v43 = vld [vmem:[%s2483_s2 + $0x230] sm:$0xff] }
  0x37   :  { %389 = vmatpush2.msra.mxu0 %v195_v49  ;;  %460 = vmatpush2.msra.mxu1 %v197_v50  ;;  %v88_v44 = vld [vmem:[%s2483_s2 + $0x1e8] sm:$0xff]  ;;  %v90_v45 = vld [vmem:[%s2483_s2 + $0x1f8] sm:$0xff]  ;;  %v87_v46 = vld [vmem:[%s2483_s2 + $0x1e0] sm:$0xff] }
  0x38   :  { %390 = vmatprep.subr.mxu0 %v188_v51  ;;  %461 = vmatprep.subr.mxu1 %v190_v52  ;;  %v89_v47 = vld [vmem:[%s2483_s2 + $0x1f0] sm:$0xff]  ;;  %v80_v48 = vld [vmem:[%s2483_s2 + $0x1a8] sm:$0xff]  ;;  %v82_v49 = vld [vmem:[%s2483_s2 + $0x1b8] sm:$0xff] }
  0x39   :  { %391 = vmatpush2.msra.mxu0 %v187_v55  ;;  %462 = vmatpush2.msra.mxu1 %v189_v56  ;;  %v79_v50 = vld [vmem:[%s2483_s2 + $0x1a0] sm:$0xff]  ;;  %v81_v51 = vld [vmem:[%s2483_s2 + $0x1b0] sm:$0xff]  ;;  %v72_v52 = vld [vmem:[%s2483_s2 + $0x168] sm:$0xff] }
  0x3a   :  { %392 = vmatprep.subr.mxu0 %v180_v57  ;;  %463 = vmatprep.subr.mxu1 %v182_v58  ;;  %v74_v53 = vld [vmem:[%s2483_s2 + $0x178] sm:$0xff]  ;;  %v71_v54 = vld [vmem:[%s2483_s2 + $0x160] sm:$0xff]  ;;  %v73_v55 = vld [vmem:[%s2483_s2 + $0x170] sm:$0xff] }
  0x3b   :  { %393 = vmatpush2.msra.mxu0 %v179_v59  ;;  %464 = vmatpush2.msra.mxu1 %v181_v60  ;;  %v64_v56 = vld [vmem:[%s2483_s2 + $0x128] sm:$0xff]  ;;  %v66_v57 = vld [vmem:[%s2483_s2 + $0x138] sm:$0xff]  ;;  %v63_v58 = vld [vmem:[%s2483_s2 + $0x120] sm:$0xff] }
  0x3c   :  { %394 = vmatprep.subr.mxu0 %v172_v61  ;;  %465 = vmatprep.subr.mxu1 %v174_v62  ;;  %v65_v59 = vld [vmem:[%s2483_s2 + $0x130] sm:$0xff]  ;;  %v56_v60 = vld [vmem:[%s2483_s2 + $0xe8] sm:$0xff]  ;;  %v58_v61 = vld [vmem:[%s2483_s2 + $0xf8] sm:$0xff] }
  0x3d   :  { %395 = vmatpush2.msra.mxu0 %v171_v0  ;;  %466 = vmatpush2.msra.mxu1 %v173_v1  ;;  %v55_v62 = vld [vmem:[%s2483_s2 + $0xe0] sm:$0xff]  ;;  %v57_v0 = vld [vmem:[%s2483_s2 + $0xf0] sm:$0xff]  ;;  %v48_v1 = vld [vmem:[%s2483_s2 + $0xa8] sm:$0xff] }
  0x3e   :  { %396 = vmatprep.subr.mxu0 %v164_v2  ;;  %467 = vmatprep.subr.mxu1 %v166_v3  ;;  %v50_v2 = vld [vmem:[%s2483_s2 + $0xb8] sm:$0xff]  ;;  %v47_v3 = vld [vmem:[%s2483_s2 + $0xa0] sm:$0xff] }
  0x3f   :  { %397 = vmatpush2.msra.mxu0 %v163_v4  ;;  %468 = vmatpush2.msra.mxu1 %v165_v5  ;;  %v49_v4 = vld [vmem:[%s2483_s2 + $0xb0] sm:$0xff]  ;;  %v40_v5 = vld [vmem:[%s2483_s2 + $0x68] sm:$0xff] }
  0x40   :  { %398 = vmatprep.subr.mxu0 %v156_v6  ;;  %469 = vmatprep.subr.mxu1 %v158_v7  ;;  %v42_v6 = vld [vmem:[%s2483_s2 + $0x78] sm:$0xff]  ;;  %v39_v7 = vld [vmem:[%s2483_s2 + $0x60] sm:$0xff] }
  0x41   :  { %399 = vmatpush2.msra.mxu0 %v155_v9  ;;  %400 = vmatprep.mubr.f32.mxu0 %v1667_v8  ;;  %v41_v9 = vld [vmem:[%s2483_s2 + $0x70] sm:$0xff] }
  0x42   :  { %470 = vmatpush2.msra.mxu1 %v157_v10  ;;  %471 = vmatprep.mubr.f32.mxu1 %v1667_v8  ;;  %v32_v10 = vld [vmem:[%s2483_s2 + $0x28] sm:$0xff] }
  0x43   :  { %401 = vmatmul.mubr.f32.vlgmr.msra.gmra.mxu0 %v1639_v63  ;;  %472 = vmatmul.mubr.f32.vlgmr.msra.gmra.mxu1 %v1639_v63 }
  0x44   :  { %478 = vmatprep.subr.mxu0 %v152_v11  ;;  %549 = vmatprep.subr.mxu1 %v154_v12  ;;  %v34_v11 = vld [vmem:[%s2483_s2 + $0x38] sm:$0xff]  ;;  %v31_v12 = vld [vmem:[%s2483_s2 + $0x20] sm:$0xff] }
  0x45   :  { %479 = vmatpush1.msra.mxu0 %v151_v13  ;;  %550 = vmatpush1.msra.mxu1 %v153_v14  ;;  %v33_v13 = vld [vmem:[%s2483_s2 + $0x30] sm:$0xff]  ;;  %v280_v14 = vld [vmem:[%s2483_s2 + $0x7e8] sm:$0xff] }
  0x46   :  { %480 = vmatprep.subr.mxu0 %v144_v15  ;;  %551 = vmatprep.subr.mxu1 %v146_v16  ;;  %v282_v15 = vld [vmem:[%s2483_s2 + $0x7f8] sm:$0xff]  ;;  %v279_v16 = vld [vmem:[%s2483_s2 + $0x7e0] sm:$0xff] }
  0x47   :  { %481 = vmatpush1.msra.mxu0 %v143_v17  ;;  %552 = vmatpush1.msra.mxu1 %v145_v18  ;;  %v281_v17 = vld [vmem:[%s2483_s2 + $0x7f0] sm:$0xff]  ;;  %v272_v18 = vld [vmem:[%s2483_s2 + $0x7a8] sm:$0xff] }
  0x48   :  { %482 = vmatprep.subr.mxu0 %v136_v19  ;;  %553 = vmatprep.subr.mxu1 %v138_v20  ;;  %v274_v19 = vld [vmem:[%s2483_s2 + $0x7b8] sm:$0xff]  ;;  %v271_v20 = vld [vmem:[%s2483_s2 + $0x7a0] sm:$0xff] }
  0x49   :  { %483 = vmatpush1.msra.mxu0 %v135_v21  ;;  %554 = vmatpush1.msra.mxu1 %v137_v22  ;;  %v273_v21 = vld [vmem:[%s2483_s2 + $0x7b0] sm:$0xff]  ;;  %v264_v22 = vld [vmem:[%s2483_s2 + $0x768] sm:$0xff] }
  0x4a   :  { %484 = vmatprep.subr.mxu0 %v128_v23  ;;  %555 = vmatprep.subr.mxu1 %v130_v24  ;;  %v266_v23 = vld [vmem:[%s2483_s2 + $0x778] sm:$0xff]  ;;  %v263_v24 = vld [vmem:[%s2483_s2 + $0x760] sm:$0xff] }
  0x4b   :  { %485 = vmatpush1.msra.mxu0 %v127_v25  ;;  %556 = vmatpush1.msra.mxu1 %v129_v26  ;;  %v265_v25 = vld [vmem:[%s2483_s2 + $0x770] sm:$0xff]  ;;  %v256_v26 = vld [vmem:[%s2483_s2 + $0x728] sm:$0xff] }
  0x4c   :  { %486 = vmatprep.subr.mxu0 %v120_v27  ;;  %557 = vmatprep.subr.mxu1 %v122_v28  ;;  %v258_v27 = vld [vmem:[%s2483_s2 + $0x738] sm:$0xff] }
  0x4d   :  { %487 = vmatpush1.msra.mxu0 %v119_v29  ;;  %558 = vmatpush1.msra.mxu1 %v121_v30 }
  0x4e   :  { %488 = vmatprep.subr.mxu0 %v112_v31  ;;  %559 = vmatprep.subr.mxu1 %v114_v32 }
  0x4f   :  { %489 = vmatpush1.msra.mxu0 %v111_v33  ;;  %560 = vmatpush1.msra.mxu1 %v113_v34 }
  0x50   :  { %490 = vmatprep.subr.mxu0 %v104_v35  ;;  %561 = vmatprep.subr.mxu1 %v106_v36 }
  0x51   :  { %491 = vmatpush1.msra.mxu0 %v103_v37  ;;  %562 = vmatpush1.msra.mxu1 %v105_v38 }
  0x52   :  { %492 = vmatprep.subr.mxu0 %v96_v39  ;;  %563 = vmatprep.subr.mxu1 %v98_v40 }
  0x53   :  { %493 = vmatpush1.msra.mxu0 %v95_v41  ;;  %564 = vmatpush1.msra.mxu1 %v97_v43 }
  0x54   :  { %494 = vmatprep.subr.mxu0 %v88_v44  ;;  %565 = vmatprep.subr.mxu1 %v90_v45 }
  0x55   :  { %495 = vmatpush1.msra.mxu0 %v87_v46  ;;  %566 = vmatpush1.msra.mxu1 %v89_v47 }
  0x56   :  { %496 = vmatprep.subr.mxu0 %v80_v48  ;;  %567 = vmatprep.subr.mxu1 %v82_v49 }
  0x57   :  { %497 = vmatpush1.msra.mxu0 %v79_v50  ;;  %568 = vmatpush1.msra.mxu1 %v81_v51 }
  0x58   :  { %498 = vmatprep.subr.mxu0 %v72_v52  ;;  %569 = vmatprep.subr.mxu1 %v74_v53 }
  0x59   :  { %499 = vmatpush1.msra.mxu0 %v71_v54  ;;  %570 = vmatpush1.msra.mxu1 %v73_v55 }
  0x5a   :  { %500 = vmatprep.subr.mxu0 %v64_v56  ;;  %571 = vmatprep.subr.mxu1 %v66_v57 }
  0x5b   :  { %501 = vmatpush1.msra.mxu0 %v63_v58  ;;  %572 = vmatpush1.msra.mxu1 %v65_v59 }
  0x5c   :  { %502 = vmatprep.subr.mxu0 %v56_v60  ;;  %573 = vmatprep.subr.mxu1 %v58_v61 }
  0x5d   :  { %503 = vmatpush1.msra.mxu0 %v55_v62  ;;  %574 = vmatpush1.msra.mxu1 %v57_v0 }
  0x5e   :  { %504 = vmatprep.subr.mxu0 %v48_v1  ;;  %575 = vmatprep.subr.mxu1 %v50_v2 }
  0x5f   :  { %505 = vmatpush1.msra.mxu0 %v47_v3  ;;  %576 = vmatpush1.msra.mxu1 %v49_v4 }
  0x60   :  { %506 = vmatprep.subr.mxu0 %v40_v5  ;;  %577 = vmatprep.subr.mxu1 %v42_v6 }
  0x61   :  { %507 = vmatpush1.msra.mxu0 %v39_v7  ;;  %578 = vmatpush1.msra.mxu1 %v41_v9 }
  0x62   :  { %508 = vmatprep.subr.mxu0 %v32_v10  ;;  %579 = vmatprep.subr.mxu1 %v34_v11 }
  0x63   :  { %509 = vmatpush1.msra.mxu0 %v31_v12  ;;  %580 = vmatpush1.msra.mxu1 %v33_v13 }
  0x64   :  { %510 = vmatprep.subr.mxu0 %v280_v14  ;;  %581 = vmatprep.subr.mxu1 %v282_v15 }
  0x65   :  { %511 = vmatpush2.msra.mxu0 %v279_v16  ;;  %582 = vmatpush2.msra.mxu1 %v281_v17 }
  0x66   :  { %512 = vmatprep.subr.mxu0 %v272_v18  ;;  %583 = vmatprep.subr.mxu1 %v274_v19 }
  0x67   :  { %513 = vmatpush2.msra.mxu0 %v271_v20  ;;  %584 = vmatpush2.msra.mxu1 %v273_v21 }
  0x68   :  { %11 = vsyncpa [#allocation3], 0  ;;  %514 = vmatprep.subr.mxu0 %v264_v22  ;;  %585 = vmatprep.subr.mxu1 %v266_v23  ;;  %v255_v28 = vld [vmem:[%s2483_s2 + $0x720] sm:$0xff]  ;;  %v257_v29 = vld [vmem:[%s2483_s2 + $0x730] sm:$0xff]  ;;  %vm1043_vm0 = vcmask 33792  }
  0x69   :  { %515 = vmatpush2.msra.mxu0 %v263_v24  ;;  %586 = vmatpush2.msra.mxu1 %v265_v25  ;;  %v248_v30 = vld [vmem:[%s2483_s2 + $0x6e8] sm:$0xff]  ;;  %v250_v31 = vld [vmem:[%s2483_s2 + $0x6f8] sm:$0xff]  ;;  %v247_v32 = vld [vmem:[%s2483_s2 + $0x6e0] sm:$0xff] }
  0x6a   :  { %516 = vmatprep.subr.mxu0 %v256_v26  ;;  %587 = vmatprep.subr.mxu1 %v258_v27  ;;  %v249_v33 = vld [vmem:[%s2483_s2 + $0x6f0] sm:$0xff]  ;;  %v240_v34 = vld [vmem:[%s2483_s2 + $0x6a8] sm:$0xff]  ;;  %v242_v35 = vld [vmem:[%s2483_s2 + $0x6b8] sm:$0xff] }
  0x6b   :  { %517 = vmatpush2.msra.mxu0 %v255_v28  ;;  %588 = vmatpush2.msra.mxu1 %v257_v29  ;;  %v239_v36 = vld [vmem:[%s2483_s2 + $0x6a0] sm:$0xff]  ;;  %v241_v37 = vld [vmem:[%s2483_s2 + $0x6b0] sm:$0xff]  ;;  %v232_v38 = vld [vmem:[%s2483_s2 + $0x668] sm:$0xff] }
  0x6c   :  { %518 = vmatprep.subr.mxu0 %v248_v30  ;;  %589 = vmatprep.subr.mxu1 %v250_v31  ;;  %v234_v39 = vld [vmem:[%s2483_s2 + $0x678] sm:$0xff]  ;;  %v231_v40 = vld [vmem:[%s2483_s2 + $0x660] sm:$0xff]  ;;  %v233_v41 = vld [vmem:[%s2483_s2 + $0x670] sm:$0xff] }
  0x6d   :  { %519 = vmatpush2.msra.mxu0 %v247_v32  ;;  %590 = vmatpush2.msra.mxu1 %v249_v33  ;;  %v224_v43 = vld [vmem:[%s2483_s2 + $0x628] sm:$0xff]  ;;  %v226_v44 = vld [vmem:[%s2483_s2 + $0x638] sm:$0xff]  ;;  %v223_v45 = vld [vmem:[%s2483_s2 + $0x620] sm:$0xff] }
  0x6e   :  { %520 = vmatprep.subr.mxu0 %v240_v34  ;;  %591 = vmatprep.subr.mxu1 %v242_v35  ;;  %v225_v46 = vld [vmem:[%s2483_s2 + $0x630] sm:$0xff]  ;;  %v216_v47 = vld [vmem:[%s2483_s2 + $0x5e8] sm:$0xff]  ;;  %v218_v48 = vld [vmem:[%s2483_s2 + $0x5f8] sm:$0xff] }
  0x6f   :  { %521 = vmatpush2.msra.mxu0 %v239_v36  ;;  %592 = vmatpush2.msra.mxu1 %v241_v37  ;;  %v215_v49 = vld [vmem:[%s2483_s2 + $0x5e0] sm:$0xff]  ;;  %v217_v50 = vld [vmem:[%s2483_s2 + $0x5f0] sm:$0xff]  ;;  %v208_v51 = vld [vmem:[%s2483_s2 + $0x5a8] sm:$0xff] }
  0x70   :  { %522 = vmatprep.subr.mxu0 %v232_v38  ;;  %593 = vmatprep.subr.mxu1 %v234_v39  ;;  %v210_v52 = vld [vmem:[%s2483_s2 + $0x5b8] sm:$0xff]  ;;  %v207_v53 = vld [vmem:[%s2483_s2 + $0x5a0] sm:$0xff]  ;;  %v209_v54 = vld [vmem:[%s2483_s2 + $0x5b0] sm:$0xff] }
  0x71   :  { %523 = vmatpush2.msra.mxu0 %v231_v40  ;;  %594 = vmatpush2.msra.mxu1 %v233_v41  ;;  %v200_v55 = vld [vmem:[%s2483_s2 + $0x568] sm:$0xff]  ;;  %v202_v56 = vld [vmem:[%s2483_s2 + $0x578] sm:$0xff]  ;;  %v199_v57 = vld [vmem:[%s2483_s2 + $0x560] sm:$0xff] }
  0x72   :  { %524 = vmatprep.subr.mxu0 %v224_v43  ;;  %595 = vmatprep.subr.mxu1 %v226_v44  ;;  %v201_v58 = vld [vmem:[%s2483_s2 + $0x570] sm:$0xff]  ;;  %v192_v59 = vld [vmem:[%s2483_s2 + $0x528] sm:$0xff]  ;;  %v194_v60 = vld [vmem:[%s2483_s2 + $0x538] sm:$0xff] }
  0x73   :  { %525 = vmatpush2.msra.mxu0 %v223_v45  ;;  %596 = vmatpush2.msra.mxu1 %v225_v46  ;;  %v191_v61 = vld [vmem:[%s2483_s2 + $0x520] sm:$0xff]  ;;  %v193_v62 = vld [vmem:[%s2483_s2 + $0x530] sm:$0xff]  ;;  %v184_v0 = vld [vmem:[%s2483_s2 + $0x4e8] sm:$0xff] }
  0x74   :  { %526 = vmatprep.subr.mxu0 %v216_v47  ;;  %597 = vmatprep.subr.mxu1 %v218_v48  ;;  %v186_v1 = vld [vmem:[%s2483_s2 + $0x4f8] sm:$0xff]  ;;  %v183_v2 = vld [vmem:[%s2483_s2 + $0x4e0] sm:$0xff]  ;;  %v185_v3 = vld [vmem:[%s2483_s2 + $0x4f0] sm:$0xff] }
  0x75   :  { %527 = vmatpush2.msra.mxu0 %v215_v49  ;;  %598 = vmatpush2.msra.mxu1 %v217_v50  ;;  %v176_v4 = vld [vmem:[%s2483_s2 + $0x4a8] sm:$0xff]  ;;  %v178_v5 = vld [vmem:[%s2483_s2 + $0x4b8] sm:$0xff]  ;;  %v175_v6 = vld [vmem:[%s2483_s2 + $0x4a0] sm:$0xff] }
  0x76   :  { %528 = vmatprep.subr.mxu0 %v208_v51  ;;  %599 = vmatprep.subr.mxu1 %v210_v52  ;;  %v177_v7 = vld [vmem:[%s2483_s2 + $0x4b0] sm:$0xff]  ;;  %v168_v9 = vld [vmem:[%s2483_s2 + $0x468] sm:$0xff]  ;;  %v170_v10 = vld [vmem:[%s2483_s2 + $0x478] sm:$0xff] }
  0x77   :  { %529 = vmatpush2.msra.mxu0 %v207_v53  ;;  %600 = vmatpush2.msra.mxu1 %v209_v54  ;;  %v167_v11 = vld [vmem:[%s2483_s2 + $0x460] sm:$0xff]  ;;  %v169_v12 = vld [vmem:[%s2483_s2 + $0x470] sm:$0xff]  ;;  %v160_v13 = vld [vmem:[%s2483_s2 + $0x428] sm:$0xff] }
  0x78   :  { %530 = vmatprep.subr.mxu0 %v200_v55  ;;  %601 = vmatprep.subr.mxu1 %v202_v56  ;;  %v162_v14 = vld [vmem:[%s2483_s2 + $0x438] sm:$0xff]  ;;  %v159_v15 = vld [vmem:[%s2483_s2 + $0x420] sm:$0xff]  ;;  %v161_v16 = vld [vmem:[%s2483_s2 + $0x430] sm:$0xff] }
  0x79   :  { %531 = vmatpush2.msra.mxu0 %v199_v57  ;;  %602 = vmatpush2.msra.mxu1 %v201_v58  ;;  %v659_v17 = vld [vmem:[%s2485_s4 + $0xf8] sm:$0xff]  ;;  %v658_v21 = vld [vmem:[%s2485_s4 + $0xf0] sm:$0xff]  ;;  %v689_v24 = vld [vmem:[%s2485_s4 + $0x1e8] sm:$0xff] }
  0x7a   :  { %532 = vmatprep.subr.mxu0 %v192_v59  ;;  %603 = vmatprep.subr.mxu1 %v194_v60  ;;  %v691_v18 = vld [vmem:[%s2485_s4 + $0x1f8] sm:$0xff]  ;;  %v642_v22 = vld [vmem:[%s2485_s4 + $0x70] sm:$0xff]  ;;  %v641_v25 = vld [vmem:[%s2485_s4 + $0x68] sm:$0xff] }
  0x7b   :  { %533 = vmatpush2.msra.mxu0 %v191_v61  ;;  %604 = vmatpush2.msra.mxu1 %v193_v62  ;;  %v643_v19 = vld [vmem:[%s2485_s4 + $0x78] sm:$0xff]  ;;  %v674_v23 = vld [vmem:[%s2485_s4 + $0x170] sm:$0xff]  ;;  %v673_v26 = vld [vmem:[%s2485_s4 + $0x168] sm:$0xff] }
  0x7c   :  { %534 = vmatprep.subr.mxu0 %v184_v0  ;;  %605 = vmatprep.subr.mxu1 %v186_v1  ;;  %v675_v20 = vld [vmem:[%s2485_s4 + $0x178] sm:$0xff]  ;;  %v656_v27 = vld [vmem:[%s2485_s4 + $0xe0] sm:$0xff]  ;;  %v654_v35 = vld [vmem:[%s2485_s4 + $0xd0] sm:$0xff] }
  0x7d   :  { %535 = vmatpush2.msra.mxu0 %v183_v2  ;;  %606 = vmatpush2.msra.mxu1 %v185_v3  ;;  %v688_v28 = vld [vmem:[%s2485_s4 + $0x1e0] sm:$0xff]  ;;  %v655_v31 = vld [vmem:[%s2485_s4 + $0xd8] sm:$0xff]  ;;  %v686_v36 = vld [vmem:[%s2485_s4 + $0x1d0] sm:$0xff] }
  0x7e   :  { %536 = vmatprep.subr.mxu0 %v176_v4  ;;  %607 = vmatprep.subr.mxu1 %v178_v5  ;;  %v640_v29 = vld [vmem:[%s2485_s4 + $0x60] sm:$0xff]  ;;  %v687_v32 = vld [vmem:[%s2485_s4 + $0x1d8] sm:$0xff]  ;;  %v638_v37 = vld [vmem:[%s2485_s4 + $0x50] sm:$0xff] }
  0x7f   :  { %537 = vmatpush2.msra.mxu0 %v175_v6  ;;  %608 = vmatpush2.msra.mxu1 %v177_v7  ;;  %v672_v30 = vld [vmem:[%s2485_s4 + $0x160] sm:$0xff]  ;;  %v639_v33 = vld [vmem:[%s2485_s4 + $0x58] sm:$0xff]  ;;  %v670_v38 = vld [vmem:[%s2485_s4 + $0x150] sm:$0xff] }
  0x80   :  { %538 = vmatprep.subr.mxu0 %v168_v9  ;;  %609 = vmatprep.subr.mxu1 %v170_v10  ;;  %v671_v34 = vld [vmem:[%s2485_s4 + $0x158] sm:$0xff]  ;;  %v653_v39 = vld [vmem:[%s2485_s4 + $0xc8] sm:$0xff]  ;;  %v652_v44 = vld [vmem:[%s2485_s4 + $0xc0] sm:$0xff] }
  0x81   :  { %539 = vmatpush2.msra.mxu0 %v167_v11  ;;  %610 = vmatpush2.msra.mxu1 %v169_v12  ;;  %v685_v40 = vld [vmem:[%s2485_s4 + $0x1c8] sm:$0xff]  ;;  %v684_v45 = vld [vmem:[%s2485_s4 + $0x1c0] sm:$0xff]  ;;  %v651_v48 = vld [vmem:[%s2485_s4 + $0xb8] sm:$0xff] }
  0x82   :  { %540 = vmatprep.subr.mxu0 %v160_v13  ;;  %611 = vmatprep.subr.mxu1 %v162_v14  ;;  %v637_v41 = vld [vmem:[%s2485_s4 + $0x48] sm:$0xff]  ;;  %v636_v46 = vld [vmem:[%s2485_s4 + $0x40] sm:$0xff]  ;;  %v683_v49 = vld [vmem:[%s2485_s4 + $0x1b8] sm:$0xff] }
  0x83   :  { %541 = vmatpush2.msra.mxu0 %v159_v15  ;;  %542 = vmatprep.mubr.f32.mxu0 %v1667_v8  ;;  %v669_v43 = vld [vmem:[%s2485_s4 + $0x148] sm:$0xff]  ;;  %v668_v47 = vld [vmem:[%s2485_s4 + $0x140] sm:$0xff]  ;;  %v635_v50 = vld [vmem:[%s2485_s4 + $0x38] sm:$0xff] }
  0x84   :  { %612 = vmatpush2.msra.mxu1 %v161_v16  ;;  %613 = vmatprep.mubr.f32.mxu1 %v1667_v8  ;;  %v690_v8 = vld [vmem:[%s2485_s4 + $0x1f0] sm:$0xff]  ;;  %v667_v51 = vld [vmem:[%s2485_s4 + $0x138] sm:$0xff]  ;;  %v649_v56 = vld [vmem:[%s2485_s4 + $0xa8] sm:$0xff] }
  0x85   :  { %543 = vmatmul.mubr.f32.vlgmr.msra.gmra.mxu0 %v1639_v63  ;;  %614 = vmatmul.mubr.f32.vlgmr.msra.gmra.mxu1 %v1639_v63  ;;  %v657_v63 = vld [vmem:[%s2485_s4 + $0xe8] sm:$0xff]  ;;  %v650_v52 = vld [vmem:[%s2485_s4 + $0xb0] sm:$0xff]  ;;  %v648_v60 = vld [vmem:[%s2485_s4 + $0xa0] sm:$0xff] }
  0x86   :  { %1071 = vmatprep.subr.mxu0 %v659_v17  ;;  %1106 = vmatprep.subr.mxu1 %v691_v18  ;;  %v682_v53 = vld [vmem:[%s2485_s4 + $0x1b0] sm:$0xff]  ;;  %v681_v57 = vld [vmem:[%s2485_s4 + $0x1a8] sm:$0xff]  ;;  %v680_v61 = vld [vmem:[%s2485_s4 + $0x1a0] sm:$0xff] }
  0x87   :  { %1072 = vmatpush3.msra.mxu0 %v643_v19  ;;  %1107 = vmatpush3.msra.mxu1 %v675_v20  ;;  %v634_v54 = vld [vmem:[%s2485_s4 + $0x30] sm:$0xff]  ;;  %v633_v58 = vld [vmem:[%s2485_s4 + $0x28] sm:$0xff]  ;;  %v632_v62 = vld [vmem:[%s2485_s4 + $0x20] sm:$0xff]  ;;  %v295_v20 = vsub.s32 2, %v1585_v42 }
  0x88   :  { %1073 = vmatprep.subr.mxu0 %v658_v21  ;;  %1108 = vmatprep.subr.mxu1 %v690_v8  ;;  %v666_v55 = vld [vmem:[%s2485_s4 + $0x130] sm:$0xff]  ;;  %v665_v59 = vld [vmem:[%s2485_s4 + $0x128] sm:$0xff]  ;;  %v664_v0 = vld [vmem:[%s2485_s4 + $0x120] sm:$0xff]  ;;  %v287_v21 = vsub.s32 0, %v1585_v42 }
  0x89   :  { %1074 = vmatpush3.msra.mxu0 %v642_v22  ;;  %1109 = vmatpush3.msra.mxu1 %v674_v23  ;;  %v647_v1 = vld [vmem:[%s2485_s4 + $0x98] sm:$0xff]  ;;  %v646_v5 = vld [vmem:[%s2485_s4 + $0x90] sm:$0xff]  ;;  %v645_v10 = vld [vmem:[%s2485_s4 + $0x88] sm:$0xff]  ;;  %v291_v22 = vsub.s32 1, %v1585_v42  ;;  %v299_v23 = vsub.s32 3, %v1585_v42 }
  0x8a   :  { %1075 = vmatprep.subr.mxu0 %v657_v63  ;;  %1110 = vmatprep.subr.mxu1 %v689_v24  ;;  %v679_v2 = vld [vmem:[%s2485_s4 + $0x198] sm:$0xff]  ;;  %v678_v6 = vld [vmem:[%s2485_s4 + $0x190] sm:$0xff]  ;;  %v677_v11 = vld [vmem:[%s2485_s4 + $0x188] sm:$0xff] }
  0x8b   :  { %1076 = vmatpush3.msra.mxu0 %v641_v25  ;;  %1111 = vmatpush3.msra.mxu1 %v673_v26  ;;  %v631_v3 = vld [vmem:[%s2485_s4 + $0x18] sm:$0xff]  ;;  %v630_v7 = vld [vmem:[%s2485_s4 + $0x10] sm:$0xff]  ;;  %v629_v12 = vld [vmem:[%s2485_s4 + $0x8] sm:$0xff] }
  0x8c   :  { %1077 = vmatprep.subr.mxu0 %v656_v27  ;;  %1112 = vmatprep.subr.mxu1 %v688_v28  ;;  %v663_v4 = vld [vmem:[%s2485_s4 + $0x118] sm:$0xff]  ;;  %v662_v9 = vld [vmem:[%s2485_s4 + $0x110] sm:$0xff]  ;;  %v661_v13 = vld [vmem:[%s2485_s4 + $0x108] sm:$0xff] }
  0x8d   :  { %1078 = vmatpush3.msra.mxu0 %v640_v29  ;;  %1113 = vmatpush3.msra.mxu1 %v672_v30  ;;  %v644_v14 = vld [vmem:[%s2485_s4 + $0x80] sm:$0xff]  ;;  %v723_v18 = vld [vmem:[%s2485_s4 + $0x2f8] sm:$0xff] }
  0x8e   :  { %1079 = vmatprep.subr.mxu0 %v655_v31  ;;  %1114 = vmatprep.subr.mxu1 %v687_v32  ;;  %v676_v15 = vld [vmem:[%s2485_s4 + $0x180] sm:$0xff]  ;;  %v755_v19 = vld [vmem:[%s2485_s4 + $0x3f8] sm:$0xff] }
  0x8f   :  { %1080 = vmatpush3.msra.mxu0 %v639_v33  ;;  %1115 = vmatpush3.msra.mxu1 %v671_v34  ;;  %v628_v16 = vld [vmem:[%s2485_s4] sm:$0xff] }
  0x90   :  { %1081 = vmatprep.subr.mxu0 %v654_v35  ;;  %1116 = vmatprep.subr.mxu1 %v686_v36  ;;  %v660_v17 = vld [vmem:[%s2485_s4 + $0x100] sm:$0xff] }
  0x91   :  { %1082 = vmatpush3.msra.mxu0 %v638_v37  ;;  %1117 = vmatpush3.msra.mxu1 %v670_v38  ;;  %v2270_v8 = vld [vmem:[%s2484_s3] sm:$0xff] }
  0x92   :  { %1083 = vmatprep.subr.mxu0 %v653_v39  ;;  %1118 = vmatprep.subr.mxu1 %v685_v40  ;;  %v296_v63 = vrot.slane %v2270_v8, %v295_v20  ;;  %v288_v24 = vrot.slane %v2270_v8, %v287_v21  ;;  %v292_v25 = vrot.slane %v2270_v8, %v291_v22  ;;  %v707_v39 = vld [vmem:[%s2485_s4 + $0x278] sm:$0xff]  ;;  %v712_v20 = vld [vmem:[%s2485_s4 + $0x2a0] sm:$0xff] }
  0x93   :  { %1084 = vmatpush3.msra.mxu0 %v637_v41  ;;  %1119 = vmatpush3.msra.mxu1 %v669_v43  ;;  %v300_v26 = vrot.slane %v2270_v8, %v299_v23  ;;  %v739_v40 = vld [vmem:[%s2485_s4 + $0x378] sm:$0xff]  ;;  %v722_v41 = vld [vmem:[%s2485_s4 + $0x2f0] sm:$0xff]  ;;  %v744_v21 = vld [vmem:[%s2485_s4 + $0x3a0] sm:$0xff] }
  0x94   :  { %1085 = vmatprep.subr.mxu0 %v652_v44  ;;  %1120 = vmatprep.subr.mxu1 %v684_v45  ;;  %v754_v43 = vld [vmem:[%s2485_s4 + $0x3f0] sm:$0xff]  ;;  %v696_v22 = vld [vmem:[%s2485_s4 + $0x220] sm:$0xff] }
  0x95   :  { %1086 = vmatpush3.msra.mxu0 %v636_v46  ;;  %1121 = vmatpush3.msra.mxu1 %v668_v47  ;;  %v706_v44 = vld [vmem:[%s2485_s4 + $0x270] sm:$0xff]  ;;  %v721_v46 = vld [vmem:[%s2485_s4 + $0x2e8] sm:$0xff]  ;;  %v728_v23 = vld [vmem:[%s2485_s4 + $0x320] sm:$0xff] }
  0x96   :  { %1087 = vmatprep.subr.mxu0 %v651_v48  ;;  %1122 = vmatprep.subr.mxu1 %v683_v49  ;;  %v738_v45 = vld [vmem:[%s2485_s4 + $0x370] sm:$0xff]  ;;  %v753_v47 = vld [vmem:[%s2485_s4 + $0x3e8] sm:$0xff] }
  0x97   :  { %1088 = vmatpush3.msra.mxu0 %v635_v50  ;;  %1123 = vmatpush3.msra.mxu1 %v667_v51  ;;  %v705_v48 = vld [vmem:[%s2485_s4 + $0x268] sm:$0xff]  ;;  %v720_v50 = vld [vmem:[%s2485_s4 + $0x2e0] sm:$0xff] }
  0x98   :  { %1089 = vmatprep.subr.mxu0 %v650_v52  ;;  %1124 = vmatprep.subr.mxu1 %v682_v53  ;;  %v737_v49 = vld [vmem:[%s2485_s4 + $0x368] sm:$0xff]  ;;  %v752_v51 = vld [vmem:[%s2485_s4 + $0x3e0] sm:$0xff] }
  0x99   :  { %1090 = vmatpush3.msra.mxu0 %v634_v54  ;;  %1125 = vmatpush3.msra.mxu1 %v666_v55  ;;  %v704_v52 = vld [vmem:[%s2485_s4 + $0x260] sm:$0xff]  ;;  %v719_v54 = vld [vmem:[%s2485_s4 + $0x2d8] sm:$0xff] }
  0x9a   :  { %1091 = vmatprep.subr.mxu0 %v649_v56  ;;  %1126 = vmatprep.subr.mxu1 %v681_v57  ;;  %v736_v53 = vld [vmem:[%s2485_s4 + $0x360] sm:$0xff]  ;;  %v751_v55 = vld [vmem:[%s2485_s4 + $0x3d8] sm:$0xff] }
  0x9b   :  { %1092 = vmatpush3.msra.mxu0 %v633_v58  ;;  %1127 = vmatpush3.msra.mxu1 %v665_v59  ;;  %v703_v56 = vld [vmem:[%s2485_s4 + $0x258] sm:$0xff]  ;;  %v718_v58 = vld [vmem:[%s2485_s4 + $0x2d0] sm:$0xff] }
  0x9c   :  { %1093 = vmatprep.subr.mxu0 %v648_v60  ;;  %1128 = vmatprep.subr.mxu1 %v680_v61  ;;  %v735_v57 = vld [vmem:[%s2485_s4 + $0x358] sm:$0xff]  ;;  %v750_v59 = vld [vmem:[%s2485_s4 + $0x3d0] sm:$0xff] }
  0x9d   :  { %1094 = vmatpush3.msra.mxu0 %v632_v62  ;;  %1129 = vmatpush3.msra.mxu1 %v664_v0  ;;  %v702_v60 = vld [vmem:[%s2485_s4 + $0x250] sm:$0xff]  ;;  %v717_v62 = vld [vmem:[%s2485_s4 + $0x2c8] sm:$0xff] }
  0x9e   :  { %1095 = vmatprep.subr.mxu0 %v647_v1  ;;  %1130 = vmatprep.subr.mxu1 %v679_v2  ;;  %v734_v61 = vld [vmem:[%s2485_s4 + $0x350] sm:$0xff]  ;;  %v749_v0 = vld [vmem:[%s2485_s4 + $0x3c8] sm:$0xff] }
  0x9f   :  { %1096 = vmatpush3.msra.mxu0 %v631_v3  ;;  %1131 = vmatpush3.msra.mxu1 %v663_v4  ;;  %v701_v1 = vld [vmem:[%s2485_s4 + $0x248] sm:$0xff]  ;;  %v716_v3 = vld [vmem:[%s2485_s4 + $0x2c0] sm:$0xff] }
  0xa0   :  { %1097 = vmatprep.subr.mxu0 %v646_v5  ;;  %1132 = vmatprep.subr.mxu1 %v678_v6  ;;  %v733_v2 = vld [vmem:[%s2485_s4 + $0x348] sm:$0xff]  ;;  %v748_v4 = vld [vmem:[%s2485_s4 + $0x3c0] sm:$0xff] }
  0xa1   :  { %1098 = vmatpush3.msra.mxu0 %v630_v7  ;;  %1133 = vmatpush3.msra.mxu1 %v662_v9  ;;  %v700_v5 = vld [vmem:[%s2485_s4 + $0x240] sm:$0xff]  ;;  %v715_v7 = vld [vmem:[%s2485_s4 + $0x2b8] sm:$0xff] }
  0xa2   :  { %1099 = vmatprep.subr.mxu0 %v645_v10  ;;  %1134 = vmatprep.subr.mxu1 %v677_v11  ;;  %v732_v6 = vld [vmem:[%s2485_s4 + $0x340] sm:$0xff]  ;;  %v747_v9 = vld [vmem:[%s2485_s4 + $0x3b8] sm:$0xff] }
  0xa3   :  { %1100 = vmatpush3.msra.mxu0 %v629_v12  ;;  %1135 = vmatpush3.msra.mxu1 %v661_v13  ;;  %v699_v10 = vld [vmem:[%s2485_s4 + $0x238] sm:$0xff]  ;;  %v714_v12 = vld [vmem:[%s2485_s4 + $0x2b0] sm:$0xff] }
  0xa4   :  { %1101 = vmatprep.subr.mxu0 %v644_v14  ;;  %1136 = vmatprep.subr.mxu1 %v676_v15  ;;  %v731_v11 = vld [vmem:[%s2485_s4 + $0x338] sm:$0xff]  ;;  %v746_v13 = vld [vmem:[%s2485_s4 + $0x3b0] sm:$0xff] }
  0xa5   :  { %1102 = vmatpush3.msra.mxu0 %v628_v16  ;;  %1137 = vmatpush3.msra.mxu1 %v660_v17  ;;  %v698_v14 = vld [vmem:[%s2485_s4 + $0x230] sm:$0xff]  ;;  %v713_v16 = vld [vmem:[%s2485_s4 + $0x2a8] sm:$0xff] }
  0xa6   :  { %1141 = vmatprep.subr.mxu0 %v723_v18  ;;  %1176 = vmatprep.subr.mxu1 %v755_v19  ;;  %v730_v15 = vld [vmem:[%s2485_s4 + $0x330] sm:$0xff]  ;;  %v745_v17 = vld [vmem:[%s2485_s4 + $0x3a8] sm:$0xff] }
  0xa7   :  { %v697_v18 = vld [vmem:[%s2485_s4 + $0x228] sm:$0xff] }
  0xa8   :  { %v729_v19 = vld [vmem:[%s2485_s4 + $0x328] sm:$0xff] }
 0x103   :  { %v402_v27 = vpop.f32.mrf.mxu0  ;;  %v473_v28 = vpop.f32.mrf.mxu1 }
 0x104   :  { %v474_v29 = vadd.f32 %v473_v28, %v296_v63  ;;  %v403_v30 = vadd.f32 %v402_v27, %v288_v24  ;;  %v711_v63 = vld [vmem:[%s2485_s4 + $0x298] sm:$0xff]  ;;  %v710_v27 = vld [vmem:[%s2485_s4 + $0x290] sm:$0xff] }
 0x105   :  { %v404_v31 = vpop.f32.mrf.mxu0  ;;  %v475_v32 = vpop.f32.mrf.mxu1  ;;  %v743_v24 = vld [vmem:[%s2485_s4 + $0x398] sm:$0xff]  ;;  %v742_v28 = vld [vmem:[%s2485_s4 + $0x390] sm:$0xff] }
 0x106   :  { %v405_v33 = vadd.f32 %v404_v31, %v292_v25  ;;  %v476_v34 = vadd.f32 %v475_v32, %v300_v26  ;;  %v622_v35 = vmax.f32 %v474_v29, 0.0  ;;  %v620_v38 = vmax.f32 %v403_v30, 0.0  ;;  %v695_v25 = vld [vmem:[%s2485_s4 + $0x218] sm:$0xff]  ;;  %v694_v29 = vld [vmem:[%s2485_s4 + $0x210] sm:$0xff]  ;;  %v709_v31 = vld [vmem:[%s2485_s4 + $0x288] sm:$0xff] }
 0x107   :  { %v727_v26 = vld [vmem:[%s2485_s4 + $0x318] sm:$0xff]  ;;  %v726_v30 = vld [vmem:[%s2485_s4 + $0x310] sm:$0xff]  ;;  %v741_v32 = vld [vmem:[%s2485_s4 + $0x388] sm:$0xff] }
 0x108   :  { %v621_v36 = vmax.f32 %v405_v33, 0.0  ;;  %v623_v37 = vmax.f32 %v476_v34, 0.0  ;;  %v693_v33 = vld [vmem:[%s2485_s4 + $0x208] sm:$0xff] }
 0x109   :  { %v725_v34 = vld [vmem:[%s2485_s4 + $0x308] sm:$0xff] }
 0x10a   :  { %827 = vmatprep.mubr.f32.mxu0 %v621_v36  ;;  %897 = vmatprep.mubr.f32.mxu1 %v623_v37  ;;  %v740_v36 = vld [vmem:[%s2485_s4 + $0x380] sm:$0xff] }
 0x10b   :  { %828 = vmatmul.mubr.f32.vlgmr.msra.gmra.mxu0 %v620_v38  ;;  %898 = vmatmul.mubr.f32.vlgmr.msra.gmra.mxu1 %v622_v35  ;;  %v708_v35 = vld [vmem:[%s2485_s4 + $0x280] sm:$0xff] }
 0x10c   :  { %1142 = vmatpush3.msra.mxu0 %v707_v39  ;;  %1177 = vmatpush3.msra.mxu1 %v739_v40  ;;  %v692_v37 = vld [vmem:[%s2485_s4 + $0x200] sm:$0xff]  ;;  %v311_v39 = vsub.s32 6, %v1585_v42  ;;  %v303_v40 = vsub.s32 4, %v1585_v42 }
 0x10d   :  { %1143 = vmatprep.subr.mxu0 %v722_v41  ;;  %1178 = vmatprep.subr.mxu1 %v754_v43  ;;  %v724_v38 = vld [vmem:[%s2485_s4 + $0x300] sm:$0xff]  ;;  %v307_v41 = vsub.s32 5, %v1585_v42  ;;  %v315_v43 = vsub.s32 7, %v1585_v42 }
 0x10e   :  { %1144 = vmatpush3.msra.mxu0 %v706_v44  ;;  %1179 = vmatpush3.msra.mxu1 %v738_v45  ;;  %v312_v44 = vrot.slane %v2270_v8, %v311_v39  ;;  %v304_v45 = vrot.slane %v2270_v8, %v303_v40 }
 0x10f   :  { %1145 = vmatprep.subr.mxu0 %v721_v46  ;;  %1180 = vmatprep.subr.mxu1 %v753_v47  ;;  %v308_v46 = vrot.slane %v2270_v8, %v307_v41  ;;  %v316_v47 = vrot.slane %v2270_v8, %v315_v43 }
 0x110   :  { %1146 = vmatpush3.msra.mxu0 %v705_v48  ;;  %1181 = vmatpush3.msra.mxu1 %v737_v49 }
 0x111   :  { %1147 = vmatprep.subr.mxu0 %v720_v50  ;;  %1182 = vmatprep.subr.mxu1 %v752_v51 }
 0x112   :  { %1148 = vmatpush3.msra.mxu0 %v704_v52  ;;  %1183 = vmatpush3.msra.mxu1 %v736_v53 }
 0x113   :  { %1149 = vmatprep.subr.mxu0 %v719_v54  ;;  %1184 = vmatprep.subr.mxu1 %v751_v55 }
 0x114   :  { %1150 = vmatpush3.msra.mxu0 %v703_v56  ;;  %1185 = vmatpush3.msra.mxu1 %v735_v57 }
 0x115   :  { %1151 = vmatprep.subr.mxu0 %v718_v58  ;;  %1186 = vmatprep.subr.mxu1 %v750_v59 }
 0x116   :  { %1152 = vmatpush3.msra.mxu0 %v702_v60  ;;  %1187 = vmatpush3.msra.mxu1 %v734_v61 }
 0x117   :  { %1153 = vmatprep.subr.mxu0 %v717_v62  ;;  %1188 = vmatprep.subr.mxu1 %v749_v0  ;;  %v1070_v62 = vld [vmem:[%s2486_s5] ss:$0 sm:$0xff]  ;;  %s1240_s5 = smov [#allocation2]  }
 0x118   :  { %1154 = vmatpush3.msra.mxu0 %v701_v1  ;;  %1189 = vmatpush3.msra.mxu1 %v733_v2  ;;  %s1062_s19 = sshll.u32 %s1240_s5, 4  ;;  %s1063_s19 = int_to_ptr.vmem [resolvable:$true] %s1062_s19 }
 0x119   :  { %1155 = vmatprep.subr.mxu0 %v716_v3  ;;  %1190 = vmatprep.subr.mxu1 %v748_v4  ;;  %s1217_s20 = scalar_lea.vmem %s1063_s19, 32  ;;  %p1222_p1 = scmp.lt.s32.totalorder %s1063_s19, %s1063_s19 }
 0x11a   :  { %1156 = vmatpush3.msra.mxu0 %v700_v5  ;;  %1191 = vmatpush3.msra.mxu1 %v732_v6  ;;  %p1218_p0 = scmp.ne.s32.totalorder %s1063_s19, %s1217_s20  ;;  %p1223_p2 = scmp.lt.s32.totalorder %s1217_s20, %s1217_s20 }
 0x11b   :  { %1157 = vmatprep.subr.mxu0 %v715_v7  ;;  %1192 = vmatprep.subr.mxu1 %v747_v9 }
 0x11c   :  { %1158 = vmatpush3.msra.mxu0 %v699_v10  ;;  %1193 = vmatpush3.msra.mxu1 %v731_v11  ;;  %p1224_p3 = por %p1223_p2, %p1222_p1 }
 0x11d   :  { %1159 = vmatprep.subr.mxu0 %v714_v12  ;;  %1194 = vmatprep.subr.mxu1 %v746_v13 }
 0x11e   :  { %1160 = vmatpush3.msra.mxu0 %v698_v14  ;;  %1195 = vmatpush3.msra.mxu1 %v730_v15  ;;  %p1225_p4 = pnand %p1224_p3, %p1218_p0 }
 0x11f   :  { %1161 = vmatprep.subr.mxu0 %v713_v16  ;;  %1196 = vmatprep.subr.mxu1 %v745_v17 }
 0x120   :  { %1162 = vmatpush3.msra.mxu0 %v697_v18  ;;  %1197 = vmatpush3.msra.mxu1 %v729_v19 }
 0x121   :  { %1163 = vmatprep.subr.mxu0 %v712_v20  ;;  %1198 = vmatprep.subr.mxu1 %v744_v21 }
 0x122   :  { %1164 = vmatpush3.msra.mxu0 %v696_v22  ;;  %1199 = vmatpush3.msra.mxu1 %v728_v23 }
 0x123   :  { %1165 = vmatprep.subr.mxu0 %v711_v63  ;;  %1200 = vmatprep.subr.mxu1 %v743_v24 }
 0x124   :  { %1166 = vmatpush3.msra.mxu0 %v695_v25  ;;  %1201 = vmatpush3.msra.mxu1 %v727_v26 }
 0x125   :  { %1167 = vmatprep.subr.mxu0 %v710_v27  ;;  %1202 = vmatprep.subr.mxu1 %v742_v28 }
 0x126   :  { %1168 = vmatpush3.msra.mxu0 %v694_v29  ;;  %1203 = vmatpush3.msra.mxu1 %v726_v30 }
 0x127   :  { %1169 = vmatprep.subr.mxu0 %v709_v31  ;;  %1204 = vmatprep.subr.mxu1 %v741_v32 }
 0x128   :  { %1170 = vmatpush3.msra.mxu0 %v693_v33  ;;  %1205 = vmatpush3.msra.mxu1 %v725_v34 }
 0x129   :  { %1171 = vmatprep.subr.mxu0 %v708_v35  ;;  %1206 = vmatprep.subr.mxu1 %v740_v36 }
 0x12a   :  { %1172 = vmatpush3.msra.mxu0 %v692_v37  ;;  %1207 = vmatpush3.msra.mxu1 %v724_v38 }
 0x145   :  { %v544_v48 = vpop.f32.mrf.mxu0  ;;  %v615_v49 = vpop.f32.mrf.mxu1 }
 0x146   :  { %v616_v50 = vadd.f32 %v615_v49, %v312_v44  ;;  %v545_v51 = vadd.f32 %v544_v48, %v304_v45 }
 0x147   :  { %v546_v52 = vpop.f32.mrf.mxu0  ;;  %v617_v53 = vpop.f32.mrf.mxu1 }
 0x148   :  { %v547_v54 = vadd.f32 %v546_v52, %v308_v46  ;;  %v618_v55 = vadd.f32 %v617_v53, %v316_v47  ;;  %v626_v56 = vmax.f32 %v616_v50, 0.0  ;;  %v624_v42 = vmax.f32 %v545_v51, 0.0 }
 0x14a   :  { %v625_v57 = vmax.f32 %v547_v54, 0.0  ;;  %v627_v58 = vmax.f32 %v618_v55, 0.0 }
 0x14c   :  { %967 = vmatprep.mubr.f32.mxu0 %v625_v57  ;;  %1037 = vmatprep.mubr.f32.mxu1 %v627_v58 }
 0x14d   :  { %968 = vmatmul.mubr.f32.vlgmr.msra.gmra.mxu0 %v624_v42  ;;  %1038 = vmatmul.mubr.f32.vlgmr.msra.gmra.mxu1 %v626_v56 }
 0x1cb   :  { %v1103_v59 = vpop.f32.mrf.mxu0  ;;  %v1138_v61 = vpop.f32.mrf.mxu1 }
 0x1cd   :  { %v1104_v60 = vpop.f32.mrf.mxu0  ;;  %v1139_v0 = vpop.f32.mrf.mxu1 }
 0x1ce   :  { %v1105_v8 = vadd.f32 %v1104_v60, %v1103_v59  ;;  %v1140_v4 = vadd.f32 %v1139_v0, %v1138_v61 }
 0x1d0   :  { %v830_v1 = vadd.f32 %v1105_v8, %v1070_v62 }
 0x1d2   :  { %v900_v7 = vadd.f32 %v1140_v4, %v830_v1 }
 0x20d   :  { %v1173_v2 = vpop.f32.mrf.mxu0  ;;  %v1208_v3 = vpop.f32.mrf.mxu1 }
 0x20f   :  { %v1174_v5 = vpop.f32.mrf.mxu0  ;;  %v1209_v6 = vpop.f32.mrf.mxu1 }
 0x210   :  { %v1175_v9 = vadd.f32 %v1174_v5, %v1173_v2  ;;  %v1210_v11 = vadd.f32 %v1209_v6, %v1208_v3 }
 0x212   :  { %v970_v10 = vadd.f32 %v1175_v9, %v900_v7 }
 0x214   :  { %v1040_v12 = vadd.f32 %v1210_v11, %v970_v10 }
 0x216   :  { %v1044_v13 = vsel %vm1043_vm0, %v1040_v12, -inf }
 0x217   :  { %1045 = vmax.xlane.f32.xlu0 %v1044_v13 }
 0x2a0   :  { %v1046_v14 = vpop.xlane.xlu0 %1045 }
 0x2a1   :  { %v1047_v15 = vsub.f32 %v1040_v12, %v1046_v14 }
 0x2a3   :  { %v1048_v16 = vmul.f32 1.442695, %v1047_v15 }
 0x2a5   :  { %1213 = vpow2.f32 %v1048_v16 }
 0x2b2   :  { %v1214_v17 = vpop.eup %1213 }
 0x2b3   :  { %v1050_v18 = vsel %vm1043_vm0, %v1214_v17, 0.0 }
 0x2b4   :  { %1051 = vadd.xlane.f32.xlu0 %v1050_v18 }
 0x33d   :  { %v1052_v19 = vpop.xlane.xlu0 %1051 }
 0x33e   :  { %1215 = vrcp.f32 %v1052_v19 }
 0x34b   :  { %v1216_v20 = vpop.eup %1215 }
 0x34c   :  { %v1054_v21 = vmul.f32 %v1216_v20, %v1214_v17 }
 0x34e   :  { %1055 = vst.msk [vmem:[#allocation2] sm:$0x3] %vm1043_vm0, %v1054_v21 }
 0x34f   :  { %1228 = shalt.err (!%p1225_p4)
}
 0x350   :  { %1065 = dma.vmem_to_hbm [thread:$0]  %s1063_s19, 32, %s2487_s6, [#allocation3]  }
 0x351   :  { %1237 = dma.done.wait [#allocation3], 32  }
 0x352   :  { %1238 = vsyncadd [#allocation3], 4294967264 }
 0x353   :  { %1069 = vsyncpa [#allocation3], 1 }

// kernel: forward.2
= control target key start
LH: loop header
LB: loop body
LE: loop exit
PB: predicated region body
PF: predicated region fallthrough
CT: control target
= control target key end

     0   :  { %vm77_vm0 = vcmask 261120   ;;  %vm435_vm1 = vcmask 130048   ;;  %s5053_s3 = inlined_call_operand.vmem [shape: f32[32,32], index: 3, kind: input, shape index: {}]   ;;  %s5054_s5 = inlined_call_operand.vmem [shape: f32[32,32], index: 5, kind: input, shape index: {}]   ;;  %s5055_s0 = inlined_call_operand.vmem [shape: f32[16,32], index: 0, kind: input, shape index: {}]   ;;  %s5056_s7 = inlined_call_operand.vmem [shape: f32[32,32], index: 7, kind: input, shape index: {}]   ;;  %s5057_s4 = inlined_call_operand.vmem [shape: f32[1,32], index: 4, kind: input, shape index: {}]   ;;  %s5058_s6 = inlined_call_operand.vmem [shape: f32[1,32], index: 6, kind: input, shape index: {}]   ;;  %s5059_s2 = inlined_call_operand.vmem [shape: f32[4,32], index: 2, kind: input, shape index: {}]   ;;  %s5060_s8 = inlined_call_operand.vmem [shape: f32[1,32], index: 8, kind: input, shape index: {}]   ;;  %s5061_s1 = inlined_call_operand.vmem [shape: f32[16,16], index: 1, kind: input, shape index: {}]   ;;  %s5062_s9 = inlined_call_operand.vmem [shape: f32[32,32], index: 9, kind: input, shape index: {}]   ;;  %s5063_s10 = inlined_call_operand.vmem [shape: f32[1,32], index: 10, kind: input, shape index: {}]   ;;  %s5064_s13 = inlined_call_operand.vmem [shape: f32[32,2048], index: 13, kind: input, shape index: {}]   ;;  %s5065_s11 = inlined_call_operand.vmem [shape: f32[1,32], index: 11, kind: input, shape index: {}]   ;;  %s5066_s12 = inlined_call_operand.vmem [shape: f32[1,32], index: 12, kind: input, shape index: {}]   ;;  %s5067_s15 = inlined_call_operand.vmem [shape: f32[2048,32], index: 15, kind: input, shape index: {}]   ;;  %s5068_s14 = inlined_call_operand.vmem [shape: f32[1,2048], index: 14, kind: input, shape index: {}]   ;;  %s5069_s16 = inlined_call_operand.vmem [shape: f32[1,32], index: 16, kind: input, shape index: {}]   ;;  %s5070_s17 = inlined_call_operand.vmem [shape: f32[1,32], index: 17, kind: input, shape index: {}]   ;;  %s5071_s18 = inlined_call_operand.vmem [shape: f32[1,32], index: 18, kind: input, shape index: {}]   ;;  %s5072_s19 = inlined_call_operand.vmem [shape: f32[16,32], index: 19, kind: output, shape index: {}]  }
   0x1   :  { %5078 = sst [smem:[#allocation2_spill]] %s5053_s3  ;;  %v2990_v14 = vld [vmem:[%s5057_s4] ss:$0 sm:$0xff]  ;;  %v3020_v17 = vld [vmem:[%s5059_s2 + $0x3] ss:$0 sm:$0xff]  ;;  %v65_v53 = vld [vmem:[%s5061_s1 + $0x8] sm:$0xff] }
   0x2   :  { %5079 = sst [smem:[#allocation3_spill]] %s5054_s5  ;;  %v2993_v15 = vld [vmem:[%s5058_s6] ss:$0 sm:$0xff]  ;;  %v3004_v24 = vld [vmem:[%s5059_s2 + $0x1] ss:$0 sm:$0xff]  ;;  %v332_v55 = vsub.f32 1.0, %v65_v53 }
   0x3   :  { %5080 = sst [smem:[#allocation4_spill]] %s5055_s0  ;;  %v3725_v21 = vld [vmem:[%s5059_s2] ss:$0 sm:$0xff]  ;;  %v3737_v26 = vld [vmem:[%s5059_s2 + $0x2] ss:$0 sm:$0xff] }
   0x4   :  { %5081 = sst [smem:[#allocation5_spill]] %s5056_s7  ;;  %v2996_v34 = vld [vmem:[%s5060_s8] ss:$0 sm:$0xff]  ;;  %v3803_v58 = vmul.f32 1e+30, %v332_v55 }
   0x5   :  { %5082 = sst [smem:[#allocation6_spill]] %s5067_s15  ;;  %v64_v52 = vld [vmem:[%s5061_s1] sm:$0xff] }
   0x6   :  { %s5083_s20 = sld [smem:[#allocation2_spill]]  ;;  %v331_v54 = vsub.f32 1.0, %v64_v52 }
   0x7   :  { %s5084_s15 = sld [smem:[#allocation3_spill]] }
   0x8   :  { %s5085_s22 = sld [smem:[#allocation4_spill]]  ;;  %v3801_v56 = vmul.f32 1e+30, %v331_v54 }
   0x9   :  { %s5086_s24 = sld [smem:[#allocation5_spill]] }
   0xa   :  { %s5087_s26 = sld [smem:[#allocation6_spill]] }
   0xc   :  { %v69_v0 = vld [vmem:[%s5083_s20 + $0x18] sm:$0xff]  ;;  %v68_v2 = vld [vmem:[%s5083_s20 + $0x10] sm:$0xff]  ;;  %v67_v4 = vld [vmem:[%s5083_s20 + $0x8] sm:$0xff] }
   0xd   :  { %v162_v1 = vld [vmem:[%s5084_s15 + $0x18] sm:$0xff]  ;;  %3411 = vmatprep.subr.mxu0 %v69_v0  ;;  %v161_v3 = vld [vmem:[%s5084_s15 + $0x10] sm:$0xff]  ;;  %v160_v5 = vld [vmem:[%s5084_s15 + $0x8] sm:$0xff] }
   0xe   :  { %3422 = vmatprep.subr.mxu1 %v162_v1  ;;  %3412 = vmatpush3.msra.mxu0 %v69_v0  ;;  %v66_v6 = vld [vmem:[%s5083_s20] sm:$0xff]  ;;  %v3685_v9 = vld [vmem:[%s5085_s22 + $0x8] sm:$0xff] }
   0xf   :  { %3423 = vmatpush3.msra.mxu1 %v162_v1  ;;  %3413 = vmatprep.subr.mxu0 %v68_v2  ;;  %v159_v7 = vld [vmem:[%s5084_s15] sm:$0xff]  ;;  %v248_v10 = vld [vmem:[%s5086_s24 + $0x18] sm:$0xff]  ;;  %v247_v11 = vld [vmem:[%s5086_s24 + $0x10] sm:$0xff] }
  0x10   :  { %3424 = vmatprep.subr.mxu1 %v161_v3  ;;  %3414 = vmatpush3.msra.mxu0 %v68_v2  ;;  %v3680_v8 = vld [vmem:[%s5085_s22] sm:$0xff]  ;;  %v246_v12 = vld [vmem:[%s5086_s24 + $0x8] sm:$0xff] }
  0x11   :  { %3425 = vmatpush3.msra.mxu1 %v161_v3  ;;  %3415 = vmatprep.subr.mxu0 %v67_v4  ;;  %v245_v13 = vld [vmem:[%s5086_s24] sm:$0xff] }
  0x12   :  { %3426 = vmatprep.subr.mxu1 %v160_v5  ;;  %3416 = vmatpush3.msra.mxu0 %v67_v4 }
  0x13   :  { %3427 = vmatpush3.msra.mxu1 %v160_v5  ;;  %3417 = vmatprep.subr.mxu0 %v66_v6 }
  0x14   :  { %3428 = vmatprep.subr.mxu1 %v159_v7  ;;  %3418 = vmatpush3.msra.mxu0 %v66_v6 }
  0x15   :  { %3419 = vmatprep.mubr.msk.f32.mxu0 %vm77_vm0, %v3680_v8  ;;  %3429 = vmatpush3.msra.mxu1 %v159_v7 }
  0x16   :  { %3430 = vmatprep.mubr.msk.f32.mxu1 %vm77_vm0, %v3680_v8  ;;  %3420 = vmatmul.mubr.msk.f32.vlgmr.msra.gmra.mxu0 %vm77_vm0, %v3685_v9 }
  0x17   :  { %3431 = vmatmul.mubr.msk.f32.vlgmr.msra.gmra.mxu1 %vm77_vm0, %v3685_v9  ;;  %3433 = vmatprep.subr.mxu0 %v248_v10 }
  0x18   :  { %3441 = vmatprep.mubr.msk.f32.mxu0 %vm77_vm0, %v3680_v8  ;;  %3434 = vmatpush3.msra.mxu0 %v248_v10 }
  0x19   :  { %3435 = vmatprep.subr.mxu0 %v247_v11 }
  0x1a   :  { %3436 = vmatpush3.msra.mxu0 %v247_v11 }
  0x1b   :  { %3437 = vmatprep.subr.mxu0 %v246_v12 }
  0x1c   :  { %3438 = vmatpush3.msra.mxu0 %v246_v12 }
  0x1d   :  { %3439 = vmatprep.subr.mxu0 %v245_v13 }
  0x1e   :  { %3440 = vmatpush3.msra.mxu0 %v245_v13 }
  0x1f   :  { %3442 = vmatmul.mubr.msk.f32.vlgmr.msra.gmra.mxu0 %vm77_vm0, %v3685_v9 }
  0xd6   :  { %v3421_v16 = vpop.f32.mrf.mxu0 }
  0xd7   :  { %v3432_v18 = vpop.f32.mrf.mxu1  ;;  %v156_v19 = vadd.f32 %v3421_v16, %v2990_v14 }
  0xd8   :  { %v3720_v20 = vadd.f32 %v3432_v18, %v2993_v15  ;;  %v150_v22 = vpop.f32.mrf.mxu0 }
  0xd9   :  { %v236_v23 = vpop.f32.mrf.mxu1  ;;  %v3730_v25 = vmul.f32 %v3020_v17, %v156_v19  ;;  %v151_v27 = vadd.f32 %v2990_v14, %v150_v22  ;;  %v341_v29 = vmul.f32 %v3725_v21, %v156_v19  ;;  %v464_v30 = vmul.f32 %v3004_v24, %v156_v19 }
  0xda   :  { %3444 = vmatprep.subr.msk.mxu1 %vm77_vm0, %v3720_v20  ;;  %v3739_v28 = vadd.f32 %v2993_v15, %v236_v23  ;;  %3451 = vmatprep.subr.msk.mxu0 %vm77_vm0, %v3720_v20  ;;  %v742_v46 = vmul.f32 %v3737_v26, %v156_v19 }
  0xdb   :  { %3445 = vmatpush3.xpose.msk.msra.mxu1 %vm77_vm0, %v3720_v20  ;;  %3452 = vmatpush3.xpose.msk.msra.mxu0 %vm77_vm0, %v3720_v20  ;;  %v340_v31 = vmul.f32 %v3725_v21, %v151_v27  ;;  %v463_v32 = vmul.f32 %v3004_v24, %v151_v27  ;;  %v741_v33 = vmul.f32 %v3737_v26, %v151_v27  ;;  %v343_v38 = vmul.f32 0.35355338, %v341_v29 }
  0xdc   :  { %3446 = vmatprep.subr.msk.mxu1 %vm77_vm0, %v3739_v28  ;;  %3453 = vmatprep.subr.msk.mxu0 %vm77_vm0, %v3739_v28  ;;  %v3757_v35 = vmul.f32 %v3020_v17, %v151_v27  ;;  %v466_v40 = vmul.f32 0.35355338, %v464_v30  ;;  %v744_v49 = vmul.f32 0.35355338, %v742_v46 }
  0xdd   :  { %v342_v36 = vmul.f32 0.35355338, %v340_v31  ;;  %v465_v37 = vmul.f32 0.35355338, %v463_v32  ;;  %v743_v42 = vmul.f32 0.35355338, %v741_v33 }
  0xdf   :  { %3447 = vmatpush3.xpose.msk.msra.mxu1 %vm77_vm0, %v3739_v28  ;;  %3454 = vmatpush3.xpose.msk.msra.mxu0 %vm77_vm0, %v3739_v28  ;;  %v3443_v39 = vpop.f32.mrf.mxu0 }
  0xe0   :  { %3448 = vmatprep.mubr.msk.f32.mxu1 %vm77_vm0, %v342_v36  ;;  %3455 = vmatprep.mubr.msk.f32.mxu0 %vm77_vm0, %v465_v37  ;;  %v3765_v41 = vadd.f32 %v3443_v39, %v2996_v34 }
  0xe1   :  { %3472 = vmatprep.subr.msk.mxu0 %vm77_vm0, %v3720_v20  ;;  %v322_v43 = vpop.f32.mrf.mxu0 }
  0xe2   :  { %3449 = vmatmul.mubr.msk.f32.vlgmr.msra.gmra.mxu1 %vm77_vm0, %v343_v38  ;;  %3456 = vmatmul.mubr.msk.f32.vlgmr.msra.gmra.mxu0 %vm77_vm0, %v466_v40  ;;  %v3771_v44 = vadd.f32 %v2996_v34, %v322_v43  ;;  %v468_v45 = vmul.f32 %v3004_v24, %v3765_v41  ;;  %v3783_v48 = vmul.f32 %v3725_v21, %v3765_v41 }
  0xe3   :  { %3473 = vmatpush3.xpose.msk.msra.mxu0 %vm77_vm0, %v3720_v20  ;;  %3476 = vmatprep.mubr.msk.f32.mxu0 %vm77_vm0, %v743_v42  ;;  %v3790_v50 = vmul.f32 %v3020_v17, %v3765_v41 }
  0xe4   :  { %3474 = vmatprep.subr.msk.mxu0 %vm77_vm0, %v3739_v28  ;;  %3458 = vmatprep.subr.mxu1 %v468_v45  ;;  %v467_v47 = vmul.f32 %v3004_v24, %v3771_v44  ;;  %v3793_v51 = vmul.f32 %v3020_v17, %v3771_v44 }
  0xe5   :  { %3459 = vmatpush3.msra.mxu1 %v468_v45 }
  0xe6   :  { %3460 = vmatprep.subr.mxu1 %v467_v47 }
  0xe7   :  { %3475 = vmatpush3.xpose.msk.msra.mxu0 %vm77_vm0, %v3739_v28  ;;  %3461 = vmatpush3.msra.mxu1 %v467_v47 }
  0xe8   :  { %3465 = vmatprep.subr.mxu1 %v3783_v48 }
  0xea   :  { %3477 = vmatmul.mubr.msk.f32.vlgmr.msra.gmra.mxu0 %vm77_vm0, %v744_v49 }
 0x1a2   :  { %v3450_v57 = vpop.f32.mrf.mxu1  ;;  %v3457_v59 = vpop.f32.mrf.mxu0 }
 0x1a3   :  { %v434_v0 = vsub.f32 %v3450_v57, %v3803_v58  ;;  %v551_v2 = vsub.f32 %v3457_v59, %v3803_v58 }
 0x1a4   :  { %v424_v60 = vpop.f32.mrf.mxu1  ;;  %v541_v62 = vpop.f32.mrf.mxu0 }
 0x1a5   :  { %v433_v61 = vsub.f32 %v424_v60, %v3801_v56  ;;  %v550_v63 = vsub.f32 %v541_v62, %v3801_v56  ;;  %v439_v5 = vsel %vm435_vm1, %v434_v0, -inf  ;;  %v555_v7 = vsel %vm435_vm1, %v551_v2, -inf }
 0x1a7   :  { %v436_v1 = vsel %vm435_vm1, %v433_v61, -inf  ;;  %v552_v3 = vsel %vm435_vm1, %v550_v63, -inf }
 0x1a8   :  { %437 = vmax.xlane.f32.xlu1 %v436_v1  ;;  %553 = vmax.xlane.f32.xlu0 %v552_v3 }
 0x1aa   :  { %v3478_v4 = vpop.f32.mrf.mxu0 }
 0x1ab   :  { %v829_v6 = vsub.f32 %v3478_v4, %v3803_v58 }
 0x1ac   :  { %440 = vmax.xlane.f32.xlu1 %v439_v5  ;;  %v819_v10 = vpop.f32.mrf.mxu0  ;;  %556 = vmax.xlane.f32.xlu0 %v555_v7 }
 0x1ad   :  { %v828_v11 = vsub.f32 %v819_v10, %v3801_v56  ;;  %v833_v12 = vsel %vm435_vm1, %v829_v6, -inf }
 0x1af   :  { %v830_v13 = vsel %vm435_vm1, %v828_v11, -inf }
 0x1b0   :  { %834 = vmax.xlane.f32.xlu1 %v833_v12  ;;  %831 = vmax.xlane.f32.xlu0 %v830_v13 }
 0x231   :  { %v438_v14 = vpop.xlane.xlu1 %437  ;;  %v554_v15 = vpop.xlane.xlu0 %553 }
 0x232   :  { %v442_v16 = vsub.f32 %v433_v61, %v438_v14  ;;  %v558_v17 = vsub.f32 %v550_v63, %v554_v15  ;;  %v745_v14 = vmul.f32 %v3737_v26, %v3771_v44 }
 0x234   :  { %v560_v18 = vmul.f32 1.442695, %v558_v17  ;;  %v444_v19 = vmul.f32 1.442695, %v442_v16 }
 0x235   :  { %v441_v22 = vpop.xlane.xlu1 %440  ;;  %v557_v23 = vpop.xlane.xlu0 %556 }
 0x236   :  { %v443_v24 = vsub.f32 %v434_v0, %v441_v22  ;;  %3512 = vpow2.f32 %v560_v18  ;;  %v559_v27 = vsub.f32 %v551_v2, %v557_v23 }
 0x237   :  { %3514 = vpow2.f32 %v444_v19 }
 0x238   :  { %v562_v29 = vmul.f32 1.442695, %v559_v27  ;;  %v446_v30 = vmul.f32 1.442695, %v443_v24 }
 0x239   :  { %v835_v31 = vpop.xlane.xlu1 %834  ;;  %v832_v32 = vpop.xlane.xlu0 %831 }
 0x23a   :  { %v837_v33 = vsub.f32 %v829_v6, %v835_v31  ;;  %3516 = vpow2.f32 %v562_v29  ;;  %v836_v34 = vsub.f32 %v828_v11, %v832_v32  ;;  %v344_v6 = vmul.f32 %v3725_v21, %v3771_v44 }
 0x23b   :  { %3518 = vpow2.f32 %v446_v30  ;;  %v746_v11 = vmul.f32 %v3737_v26, %v3765_v41  ;;  %v943_v26 = vmul.f32 0.35355338, %v3730_v25 }
 0x23c   :  { %v838_v36 = vmul.f32 1.442695, %v836_v34  ;;  %v840_v37 = vmul.f32 1.442695, %v837_v33 }
 0x23e   :  { %3520 = vpow2.f32 %v838_v36 }
 0x23f   :  { %3522 = vpow2.f32 %v840_v37  ;;  %v1137_v37 = vld [vmem:[%s5062_s9 + $0x18] sm:$0xff] }
 0x240   :  { %3500 = vmatprep.subr.mxu0 %v1137_v37 }
 0x241   :  { %3501 = vmatpush3.msra.mxu0 %v1137_v37  ;;  %v3031_v37 = vld [vmem:[%s5066_s12] ss:$0 sm:$0xff] }
 0x243   :  { %v3513_v38 = vpop.eup %3512 }
 0x244   :  { %v564_v39 = vsel %vm435_vm1, %v3513_v38, 0.0  ;;  %v3515_v40 = vpop.eup %3514 }
 0x245   :  { %565 = vadd.xlane.f32.xlu0 %v564_v39  ;;  %v448_v45 = vsel %vm435_vm1, %v3515_v40, 0.0 }
 0x247   :  { %v3517_v42 = vpop.eup %3516 }
 0x248   :  { %v567_v43 = vsel %vm435_vm1, %v3517_v42, 0.0  ;;  %v3519_v46 = vpop.eup %3518 }
 0x249   :  { %568 = vadd.xlane.f32.xlu1 %v567_v43  ;;  %449 = vadd.xlane.f32.xlu0 %v448_v45  ;;  %v451_v52 = vsel %vm435_vm1, %v3519_v46, 0.0 }
 0x24b   :  { %v3521_v47 = vpop.eup %3520 }
 0x24c   :  { %v842_v49 = vsel %vm435_vm1, %v3521_v47, 0.0  ;;  %v3523_v53 = vpop.eup %3522 }
 0x24d   :  { %843 = vadd.xlane.f32.xlu0 %v842_v49  ;;  %452 = vadd.xlane.f32.xlu1 %v451_v52  ;;  %v845_v54 = vsel %vm435_vm1, %v3523_v53, 0.0  ;;  %v1134_v49 = vld [vmem:[%s5062_s9] sm:$0xff] }
 0x251   :  { %846 = vadd.xlane.f32.xlu1 %v845_v54 }
 0x2ce   :  { %v566_v55 = vpop.xlane.xlu0 %565 }
 0x2cf   :  { %3524 = vrcp.f32 %v566_v55 }
 0x2d2   :  { %v450_v57 = vpop.xlane.xlu0 %449  ;;  %v569_v59 = vpop.xlane.xlu1 %568 }
 0x2d3   :  { %3526 = vrcp.f32 %v450_v57  ;;  %v3027_v57 = vld [vmem:[%s5063_s10] ss:$0 sm:$0xff] }
 0x2d4   :  { %3528 = vrcp.f32 %v569_v59 }
 0x2d6   :  { %v844_v60 = vpop.xlane.xlu0 %843  ;;  %v453_v61 = vpop.xlane.xlu1 %452 }
 0x2d7   :  { %3530 = vrcp.f32 %v844_v60 }
 0x2d8   :  { %3532 = vrcp.f32 %v453_v61 }
 0x2da   :  { %v847_v62 = vpop.xlane.xlu1 %846 }
 0x2db   :  { %3534 = vrcp.f32 %v847_v62 }
 0x2dc   :  { %v3525_v63 = vpop.eup %3524 }
 0x2dd   :  { %v572_v0 = vmul.f32 %v3525_v63, %v3513_v38 }
 0x2df   :  { %3462 = vmatprep.mubr.msk.f32.mxu1 %vm435_vm1, %v572_v0 }
 0x2e0   :  { %v3527_v1 = vpop.eup %3526 }
 0x2e1   :  { %v3529_v2 = vpop.eup %3528  ;;  %v456_v3 = vmul.f32 %v3527_v1, %v3515_v40 }
 0x2e2   :  { %v573_v4 = vmul.f32 %v3529_v2, %v3517_v42 }
 0x2e4   :  { %v3531_v5 = vpop.eup %3530  ;;  %3463 = vmatmul.mubr.msk.f32.vlgmr.msra.gmra.mxu1 %vm435_vm1, %v573_v4 }
 0x2e5   :  { %v3533_v7 = vpop.eup %3532  ;;  %3466 = vmatpush3.msra.mxu1 %v3783_v48  ;;  %3469 = vmatprep.mubr.msk.f32.mxu1 %vm435_vm1, %v456_v3  ;;  %v850_v10 = vmul.f32 %v3531_v5, %v3521_v47  ;;  %v942_v48 = vmul.f32 0.35355338, %v3757_v35  ;;  %v1135_v47 = vld [vmem:[%s5062_s9 + $0x8] sm:$0xff] }
 0x2e6   :  { %3467 = vmatprep.subr.mxu1 %v344_v6  ;;  %v457_v12 = vmul.f32 %v3533_v7, %v3519_v46  ;;  %v1136_v46 = vld [vmem:[%s5062_s9 + $0x10] sm:$0xff] }
 0x2e7   :  { %3468 = vmatpush3.msra.mxu1 %v344_v6  ;;  %3502 = vmatprep.subr.mxu0 %v1136_v46 }
 0x2e8   :  { %v3535_v13 = vpop.eup %3534  ;;  %3479 = vmatprep.subr.mxu1 %v746_v11  ;;  %3470 = vmatmul.mubr.msk.f32.vlgmr.msra.gmra.mxu1 %vm435_vm1, %v457_v12 }
 0x2e9   :  { %3480 = vmatpush3.msra.mxu1 %v746_v11  ;;  %3483 = vmatprep.mubr.msk.f32.mxu1 %vm435_vm1, %v850_v10  ;;  %v851_v21 = vmul.f32 %v3535_v13, %v3523_v53  ;;  %v1322_v13 = vld [vmem:[%s5064_s13 + $0x188] sm:$0xff] }
 0x2ea   :  { %3481 = vmatprep.subr.mxu1 %v745_v14  ;;  %3503 = vmatpush3.msra.mxu0 %v1136_v46  ;;  %v1309_v46 = vld [vmem:[%s5064_s13 + $0x120] sm:$0xff] }
 0x2eb   :  { %3482 = vmatpush3.msra.mxu1 %v745_v14  ;;  %3504 = vmatprep.subr.mxu0 %v1135_v47  ;;  %v1324_v14 = vld [vmem:[%s5064_s13 + $0x198] sm:$0xff] }
 0x2ec   :  { %3486 = vmatprep.subr.msk.mxu1 %vm77_vm0, %v3720_v20  ;;  %3484 = vmatmul.mubr.msk.f32.vlgmr.msra.gmra.mxu1 %vm435_vm1, %v851_v21  ;;  %v1321_v21 = vld [vmem:[%s5064_s13 + $0x180] sm:$0xff] }
 0x2ed   :  { %3487 = vmatpush3.xpose.msk.msra.mxu1 %vm77_vm0, %v3720_v20  ;;  %3490 = vmatprep.mubr.msk.f32.mxu1 %vm77_vm0, %v942_v48  ;;  %v1323_v48 = vld [vmem:[%s5064_s13 + $0x190] sm:$0xff] }
 0x2ee   :  { %3488 = vmatprep.subr.msk.mxu1 %vm77_vm0, %v3739_v28  ;;  %3505 = vmatpush3.msra.mxu0 %v1135_v47  ;;  %v1311_v47 = vld [vmem:[%s5064_s13 + $0x130] sm:$0xff] }
 0x2ef   :  { %3506 = vmatprep.subr.mxu0 %v1134_v49 }
 0x2f0   :  { %3507 = vmatpush3.msra.mxu0 %v1134_v49 }
 0x2f1   :  { %3489 = vmatpush3.xpose.msk.msra.mxu1 %vm77_vm0, %v3739_v28  ;;  %1528 = vmatprep.subr.mxu0 %v1324_v14  ;;  %v1334_v14 = vld [vmem:[%s5064_s13 + $0x1e8] sm:$0xff] }
 0x2f2   :  { %3493 = vmatprep.subr.mxu1 %v3790_v50 }
 0x2f4   :  { %3491 = vmatmul.mubr.msk.f32.vlgmr.msra.gmra.mxu1 %vm77_vm0, %v943_v26  ;;  %v1306_v26 = vld [vmem:[%s5064_s13 + $0x108] sm:$0xff] }
 0x2f5   :  { %3494 = vmatpush3.msra.mxu1 %v3790_v50 }
 0x2f6   :  { %3495 = vmatprep.subr.mxu1 %v3793_v51 }
 0x2f7   :  { %3496 = vmatpush3.msra.mxu1 %v3793_v51 }
 0x2f8   :  { %1451 = vmatprep.subr.mxu1 %v1322_v13  ;;  %v1283_v13 = vld [vmem:[%s5064_s13 + $0x50] sm:$0xff] }
 0x3a4   :  { %v3464_v20 = vpop.f32.mrf.mxu1 }
 0x3a6   :  { %v646_v35 = vpop.f32.mrf.mxu1 }
 0x3a8   :  { %v3471_v41 = vpop.f32.mrf.mxu1 }
 0x3a9   :  { %v733_v44 = vadd.f32 %v3471_v41, %v3464_v20  ;;  %v1308_v20 = vld [vmem:[%s5064_s13 + $0x118] sm:$0xff]  ;;  %v1307_v41 = vld [vmem:[%s5064_s13 + $0x110] sm:$0xff] }
 0x3aa   :  { %v727_v15 = vpop.f32.mrf.mxu1 }
 0x3ab   :  { %v728_v16 = vadd.f32 %v727_v15, %v646_v35  ;;  %v1305_v35 = vld [vmem:[%s5064_s13 + $0x100] sm:$0xff]  ;;  %v1292_v15 = vld [vmem:[%s5064_s13 + $0x98] sm:$0xff] }
 0x3ac   :  { %v3485_v17 = vpop.f32.mrf.mxu1 }
 0x3ad   :  { %v934_v28 = vadd.f32 %v3485_v17, %v733_v44  ;;  %v1290_v44 = vld [vmem:[%s5064_s13 + $0x88] sm:$0xff]  ;;  %v1291_v17 = vld [vmem:[%s5064_s13 + $0x90] sm:$0xff] }
 0x3ae   :  { %v924_v18 = vpop.f32.mrf.mxu1 }
 0x3af   :  { %v933_v25 = vadd.f32 %v924_v18, %v728_v16  ;;  %v1289_v16 = vld [vmem:[%s5064_s13 + $0x80] sm:$0xff]  ;;  %v1276_v18 = vld [vmem:[%s5064_s13 + $0x18] sm:$0xff] }
 0x3b4   :  { %v3492_v19 = vpop.f32.mrf.mxu1 }
 0x3b5   :  { %v1028_v22 = vsub.f32 %v3492_v19, %v3803_v58  ;;  %v1275_v19 = vld [vmem:[%s5064_s13 + $0x10] sm:$0xff] }
 0x3b6   :  { %v1018_v23 = vpop.f32.mrf.mxu1 }
 0x3b7   :  { %v1027_v50 = vsub.f32 %v1018_v23, %v3801_v56  ;;  %v1032_v24 = vsel %vm435_vm1, %v1028_v22, -inf  ;;  %v1326_v23 = vld [vmem:[%s5064_s13 + $0x1a8] sm:$0xff] }
 0x3b8   :  { %1033 = vmax.xlane.f32.xlu1 %v1032_v24 }
 0x3b9   :  { %v1029_v51 = vsel %vm435_vm1, %v1027_v50, -inf }
 0x3ba   :  { %1030 = vmax.xlane.f32.xlu0 %v1029_v51 }
 0x441   :  { %v1034_v27 = vpop.xlane.xlu1 %1033 }
 0x442   :  { %v1036_v29 = vsub.f32 %v1028_v22, %v1034_v27  ;;  %v3552_v22 = vmov 0.0  }
 0x443   :  { %v1031_v30 = vpop.xlane.xlu0 %1030 }
 0x444   :  { %v1039_v31 = vmul.f32 1.442695, %v1036_v29  ;;  %v1035_v32 = vsub.f32 %v1027_v50, %v1031_v30  ;;  %v1328_v50 = vld [vmem:[%s5064_s13 + $0x1b8] sm:$0xff] }
 0x446   :  { %3536 = vpow2.f32 %v1039_v31  ;;  %v1037_v33 = vmul.f32 1.442695, %v1035_v32 }
 0x448   :  { %3538 = vpow2.f32 %v1037_v33 }
 0x453   :  { %v3537_v34 = vpop.eup %3536 }
 0x454   :  { %v1044_v58 = vsel %vm435_vm1, %v3537_v34, 0.0 }
 0x455   :  { %v3539_v36 = vpop.eup %3538  ;;  %1045 = vadd.xlane.f32.xlu1 %v1044_v58  ;;  %v3030_v58 = vld [vmem:[%s5065_s11] ss:$0 sm:$0xff] }
 0x456   :  { %v1041_v56 = vsel %vm435_vm1, %v3539_v36, 0.0 }
 0x457   :  { %1042 = vadd.xlane.f32.xlu0 %v1041_v56 }
 0x4de   :  { %v1046_v38 = vpop.xlane.xlu1 %1045 }
 0x4df   :  { %3540 = vrcp.f32 %v1046_v38 }
 0x4e0   :  { %v1043_v39 = vpop.xlane.xlu0 %1042 }
 0x4e1   :  { %3542 = vrcp.f32 %v1043_v39  ;;  %v1325_v39 = vld [vmem:[%s5064_s13 + $0x1a0] sm:$0xff] }
 0x4ec   :  { %v3541_v40 = vpop.eup %3540 }
 0x4ed   :  { %v1050_v45 = vmul.f32 %v3541_v40, %v3537_v34  ;;  %v1327_v40 = vld [vmem:[%s5064_s13 + $0x1b0] sm:$0xff] }
 0x4ee   :  { %v3543_v42 = vpop.eup %3542 }
 0x4ef   :  { %v1049_v43 = vmul.f32 %v3543_v42, %v3539_v36 }
 0x4f1   :  { %3497 = vmatprep.mubr.msk.f32.mxu1 %vm435_vm1, %v1049_v43  ;;  %v1310_v43 = vld [vmem:[%s5064_s13 + $0x128] sm:$0xff] }
 0x4f2   :  { %3498 = vmatmul.mubr.msk.f32.vlgmr.msra.gmra.mxu1 %vm435_vm1, %v1050_v45  ;;  %v1312_v45 = vld [vmem:[%s5064_s13 + $0x138] sm:$0xff] }
 0x4f3   :  { %1452 = vmatpush1.msra.mxu1 %v1321_v21  ;;  %1491 = vmatprep.mubr.f32.mxu1 %v3552_v22  ;;  %v1336_v21 = vld [vmem:[%s5064_s13 + $0x1f8] sm:$0xff] }
 0x4f4   :  { %1453 = vmatprep.subr.mxu1 %v1306_v26  ;;  %v1335_v26 = vld [vmem:[%s5064_s13 + $0x1f0] sm:$0xff] }
 0x4f5   :  { %1454 = vmatpush1.msra.mxu1 %v1305_v35  ;;  %v1320_v35 = vld [vmem:[%s5064_s13 + $0x178] sm:$0xff] }
 0x4f6   :  { %1455 = vmatprep.subr.mxu1 %v1290_v44  ;;  %v1319_v44 = vld [vmem:[%s5064_s13 + $0x170] sm:$0xff] }
 0x4f7   :  { %1456 = vmatpush1.msra.mxu1 %v1289_v16  ;;  %v1304_v16 = vld [vmem:[%s5064_s13 + $0xf8] sm:$0xff] }
 0x5b2   :  { %v3499_v52 = vpop.f32.mrf.mxu1 }
 0x5b3   :  { %v1133_v55 = vadd.f32 %v3499_v52, %v934_v28  ;;  %v1274_v28 = vld [vmem:[%s5064_s13 + $0x8] sm:$0xff] }
 0x5b4   :  { %v1123_v53 = vpop.f32.mrf.mxu1  ;;  %1457 = vmatprep.subr.mxu1 %v1274_v28  ;;  %v1294_v52 = vld [vmem:[%s5064_s13 + $0xa8] sm:$0xff]  ;;  %v1303_v28 = vld [vmem:[%s5064_s13 + $0xf0] sm:$0xff] }
 0x5b5   :  { %v1132_v54 = vadd.f32 %v1123_v53, %v933_v25  ;;  %v1273_v25 = vld [vmem:[%s5064_s13] sm:$0xff]  ;;  %v1296_v53 = vld [vmem:[%s5064_s13 + $0xb8] sm:$0xff] }
 0x5b6   :  { %1458 = vmatpush1.msra.mxu1 %v1273_v25  ;;  %v1288_v25 = vld [vmem:[%s5064_s13 + $0x78] sm:$0xff] }
 0x5b7   :  { %3508 = vmatprep.mubr.msk.f32.mxu0 %vm77_vm0, %v1132_v54  ;;  %1605 = vmatprep.subr.mxu1 %v1326_v23  ;;  %v1293_v54 = vld [vmem:[%s5064_s13 + $0xa0] sm:$0xff]  ;;  %v1287_v23 = vld [vmem:[%s5064_s13 + $0x70] sm:$0xff] }
 0x5b8   :  { %3509 = vmatmul.mubr.msk.f32.vlgmr.msra.gmra.mxu0 %vm77_vm0, %v1133_v55  ;;  %v1295_v55 = vld [vmem:[%s5064_s13 + $0xb0] sm:$0xff] }
 0x5b9   :  { %1529 = vmatpush1.msra.mxu0 %v1323_v48  ;;  %1568 = vmatprep.mubr.f32.mxu0 %v3552_v22  ;;  %v1333_v48 = vld [vmem:[%s5064_s13 + $0x1e0] sm:$0xff] }
 0x5ba   :  { %1530 = vmatprep.subr.mxu0 %v1308_v20  ;;  %v1318_v20 = vld [vmem:[%s5064_s13 + $0x168] sm:$0xff] }
 0x5bb   :  { %1531 = vmatpush1.msra.mxu0 %v1307_v41  ;;  %v1317_v41 = vld [vmem:[%s5064_s13 + $0x160] sm:$0xff] }
 0x5bc   :  { %1532 = vmatprep.subr.mxu0 %v1292_v15  ;;  %v1302_v15 = vld [vmem:[%s5064_s13 + $0xe8] sm:$0xff] }
 0x5bd   :  { %1533 = vmatpush1.msra.mxu0 %v1291_v17  ;;  %v1301_v17 = vld [vmem:[%s5064_s13 + $0xe0] sm:$0xff] }
 0x5be   :  { %1534 = vmatprep.subr.mxu0 %v1276_v18  ;;  %v1286_v18 = vld [vmem:[%s5064_s13 + $0x68] sm:$0xff] }
 0x5bf   :  { %1535 = vmatpush1.msra.mxu0 %v1275_v19  ;;  %v1285_v19 = vld [vmem:[%s5064_s13 + $0x60] sm:$0xff] }
 0x5c0   :  { %1682 = vmatprep.subr.mxu0 %v1328_v50  ;;  %v2106_v50 = vld [vmem:[%s5087_s26 + $0xf8] sm:$0xff] }
 0x678   :  { %v3510_v59 = vpop.f32.mrf.mxu0 }
 0x679   :  { %v1223_v60 = vadd.f32 %v3510_v59, %v3027_v57  ;;  %v1280_v59 = vld [vmem:[%s5064_s13 + $0x38] sm:$0xff] }
 0x67a   :  { %v1217_v61 = vpop.f32.mrf.mxu0 }
 0x67b   :  { %v1218_v62 = vadd.f32 %v3027_v57, %v1217_v61  ;;  %v1227_v63 = vadd.f32 %v1223_v60, %v3685_v9  ;;  %v1278_v57 = vld [vmem:[%s5064_s13 + $0x28] sm:$0xff]  ;;  %v1277_v60 = vld [vmem:[%s5064_s13 + $0x20] sm:$0xff]  ;;  %v1279_v61 = vld [vmem:[%s5064_s13 + $0x30] sm:$0xff] }
 0x67d   :  { %v1231_v0 = vsel %vm77_vm0, %v1227_v63, 0.0  ;;  %v1226_v1 = vadd.f32 %v1218_v62, %v3680_v8  ;;  %v1330_v62 = vld [vmem:[%s5064_s13 + $0x1c8] sm:$0xff] }
 0x67e   :  { %1232 = vadd.xlane.f32.xlu1 %v1231_v0  ;;  %v1329_v0 = vld [vmem:[%s5064_s13 + $0x1c0] sm:$0xff] }
 0x67f   :  { %v1228_v2 = vsel %vm77_vm0, %v1226_v1, 0.0 }
 0x680   :  { %1229 = vadd.xlane.f32.xlu0 %v1228_v2  ;;  %v1314_v2 = vld [vmem:[%s5064_s13 + $0x148] sm:$0xff] }
 0x707   :  { %v1233_v3 = vpop.xlane.xlu1 %1232 }
 0x708   :  { %v1236_v4 = vmul.f32 0.03125, %v1233_v3  ;;  %v1316_v3 = vld [vmem:[%s5064_s13 + $0x158] sm:$0xff] }
 0x709   :  { %v1230_v5 = vpop.xlane.xlu0 %1229 }
 0x70a   :  { %v3881_v6 = vsub.f32 %v1227_v63, %v1236_v4  ;;  %v1235_v7 = vmul.f32 0.03125, %v1230_v5  ;;  %v1332_v63 = vld [vmem:[%s5064_s13 + $0x1d8] sm:$0xff]  ;;  %v1313_v4 = vld [vmem:[%s5064_s13 + $0x140] sm:$0xff]  ;;  %v1315_v5 = vld [vmem:[%s5064_s13 + $0x150] sm:$0xff] }
 0x70c   :  { %v1237_v10 = vsub.f32 %v1226_v1, %v1235_v7  ;;  %v1240_v11 = vmul.f32 %v3881_v6, %v3881_v6  ;;  %v1331_v1 = vld [vmem:[%s5064_s13 + $0x1d0] sm:$0xff]  ;;  %v1300_v7 = vld [vmem:[%s5064_s13 + $0xd8] sm:$0xff] }
 0x70e   :  { %v1244_v9 = vsel %vm77_vm0, %v1240_v11, 0.0  ;;  %v1239_v12 = vmul.f32 %v1237_v10, %v1237_v10  ;;  %v1299_v11 = vld [vmem:[%s5064_s13 + $0xd0] sm:$0xff] }
 0x70f   :  { %1245 = vadd.xlane.f32.xlu1 %v1244_v9  ;;  %v1282_v9 = vld [vmem:[%s5064_s13 + $0x48] sm:$0xff] }
 0x710   :  { %v1241_v8 = vsel %vm77_vm0, %v1239_v12, 0.0  ;;  %v1284_v12 = vld [vmem:[%s5064_s13 + $0x58] sm:$0xff] }
 0x711   :  { %1242 = vadd.xlane.f32.xlu0 %v1241_v8  ;;  %v1281_v8 = vld [vmem:[%s5064_s13 + $0x40] sm:$0xff] }
 0x798   :  { %v1246_v24 = vpop.xlane.xlu1 %1245 }
 0x799   :  { %v1248_v51 = vmul.f32 0.03125, %v1246_v24  ;;  %v2138_v24 = vld [vmem:[%s5087_s26 + $0x1f8] sm:$0xff] }
 0x79a   :  { %v1243_v27 = vpop.xlane.xlu0 %1242 }
 0x79b   :  { %v1250_v29 = vadd.f32 1e-05, %v1248_v51  ;;  %v1247_v30 = vmul.f32 0.03125, %v1243_v27  ;;  %v2090_v51 = vld [vmem:[%s5087_s26 + $0x78] sm:$0xff] }
 0x79c   :  { %v2122_v27 = vld [vmem:[%s5087_s26 + $0x178] sm:$0xff] }
 0x79d   :  { %v1249_v31 = vadd.f32 1e-05, %v1247_v30  ;;  %3544 = vrsqrt.f32 %v1250_v29  ;;  %v2105_v29 = vld [vmem:[%s5087_s26 + $0xf0] sm:$0xff] }
 0x79e   :  { %v2137_v30 = vld [vmem:[%s5087_s26 + $0x1f0] sm:$0xff] }
 0x79f   :  { %3546 = vrsqrt.f32 %v1249_v31  ;;  %v2089_v31 = vld [vmem:[%s5087_s26 + $0x70] sm:$0xff] }
 0x7aa   :  { %v3545_v32 = vpop.eup %3544 }
 0x7ab   :  { %v1254_v36 = vmul.f32 %v3545_v32, %v3881_v6  ;;  %v1298_v6 = vld [vmem:[%s5064_s13 + $0xc8] sm:$0xff] }
 0x7ac   :  { %v3547_v33 = vpop.eup %3546  ;;  %v2104_v32 = vld [vmem:[%s5087_s26 + $0xe8] sm:$0xff] }
 0x7ad   :  { %v1253_v34 = vmul.f32 %v3547_v33, %v1237_v10  ;;  %v1263_v42 = vmul.f32 %v3030_v58, %v1254_v36  ;;  %v1297_v10 = vld [vmem:[%s5064_s13 + $0xc0] sm:$0xff]  ;;  %v2136_v33 = vld [vmem:[%s5087_s26 + $0x1e8] sm:$0xff] }
 0x7ae   :  { %v2103_v36 = vld [vmem:[%s5087_s26 + $0xe0] sm:$0xff] }
 0x7af   :  { %v1262_v56 = vmul.f32 %v3030_v58, %v1253_v34  ;;  %v3974_v49 = vadd.f32 %v3031_v37, %v1263_v42  ;;  %v2088_v34 = vld [vmem:[%s5087_s26 + $0x68] sm:$0xff]  ;;  %v2134_v42 = vld [vmem:[%s5087_s26 + $0x1d8] sm:$0xff] }
 0x7b0   :  { %v2120_v58 = vld [vmem:[%s5087_s26 + $0x168] sm:$0xff] }
 0x7b1   :  { %v3950_v38 = vadd.f32 %v3031_v37, %v1262_v56  ;;  %v2135_v56 = vld [vmem:[%s5087_s26 + $0x1e0] sm:$0xff] }
 0x7b2   :  { %v2087_v37 = vld [vmem:[%s5087_s26 + $0x60] sm:$0xff] }
 0x7b3   :  { %3032 = vmatmul.mubr.msk.f32.vlgmr.msra.gmra.mxu1 %vm77_vm0, %v3950_v38  ;;  %3034 = vmatmul.mubr.msk.f32.vlgmr.msra.gmra.mxu0 %vm77_vm0, %v3950_v38 }
 0x7b4   :  { %1606 = vmatpush1.msra.mxu1 %v1325_v39  ;;  %1683 = vmatpush1.msra.mxu0 %v1327_v40  ;;  %v2119_v39 = vld [vmem:[%s5087_s26 + $0x160] sm:$0xff]  ;;  %v2102_v40 = vld [vmem:[%s5087_s26 + $0xd8] sm:$0xff] }
 0x7b5   :  { %1607 = vmatprep.subr.mxu1 %v1310_v43  ;;  %1684 = vmatprep.subr.mxu0 %v1312_v45  ;;  %v2086_v43 = vld [vmem:[%s5087_s26 + $0x58] sm:$0xff] }
 0x7b6   :  { %1497 = vmatprep.mubr.f32.mxu1 %v3552_v22  ;;  %1574 = vmatprep.mubr.f32.mxu0 %v3552_v22  ;;  %v2118_v45 = vld [vmem:[%s5087_s26 + $0x158] sm:$0xff] }
 0x7b7   :  { %1608 = vmatpush1.msra.mxu1 %v1309_v46  ;;  %1685 = vmatpush1.msra.mxu0 %v1311_v47  ;;  %v2101_v46 = vld [vmem:[%s5087_s26 + $0xd0] sm:$0xff] }
 0x7b8   :  { %3033 = vmatmul.mubr.msk.f32.gmra.mxu1 %vm77_vm0, %v3974_v49  ;;  %3035 = vmatmul.mubr.msk.f32.gmra.mxu0 %vm77_vm0, %v3974_v49  ;;  %v2133_v47 = vld [vmem:[%s5087_s26 + $0x1d0] sm:$0xff] }
 0x7b9   :  { %1609 = vmatprep.subr.mxu1 %v1294_v52  ;;  %1686 = vmatprep.subr.mxu0 %v1296_v53  ;;  %v2085_v52 = vld [vmem:[%s5087_s26 + $0x50] sm:$0xff] }
 0x7ba   :  { %1610 = vmatpush1.msra.mxu1 %v1293_v54  ;;  %1687 = vmatpush1.msra.mxu0 %v1295_v55  ;;  %v2117_v53 = vld [vmem:[%s5087_s26 + $0x150] sm:$0xff]  ;;  %v2100_v54 = vld [vmem:[%s5087_s26 + $0xc8] sm:$0xff] }
 0x7bb   :  { %1611 = vmatprep.subr.mxu1 %v1278_v57  ;;  %1688 = vmatprep.subr.mxu0 %v1280_v59  ;;  %v2132_v55 = vld [vmem:[%s5087_s26 + $0x1c8] sm:$0xff] }
 0x7bc   :  { %1612 = vmatpush1.msra.mxu1 %v1277_v60  ;;  %1645 = vmatprep.mubr.f32.mxu1 %v3552_v22  ;;  %v2084_v57 = vld [vmem:[%s5087_s26 + $0x48] sm:$0xff]  ;;  %v2099_v60 = vld [vmem:[%s5087_s26 + $0xc0] sm:$0xff] }
 0x7bd   :  { %1689 = vmatpush1.msra.mxu0 %v1279_v61  ;;  %1722 = vmatprep.mubr.f32.mxu0 %v3552_v22  ;;  %v2116_v59 = vld [vmem:[%s5087_s26 + $0x148] sm:$0xff]  ;;  %v2131_v61 = vld [vmem:[%s5087_s26 + $0x1c0] sm:$0xff] }
 0x7be   :  { %3036 = vmatmul.mubr.msk.f32.vlgmr.msra.gmra.mxu1 %vm77_vm0, %v3950_v38  ;;  %3038 = vmatmul.mubr.msk.f32.vlgmr.msra.gmra.mxu0 %vm77_vm0, %v3950_v38 }
 0x7bf   :  { %1759 = vmatprep.subr.mxu1 %v1330_v62  ;;  %1836 = vmatprep.subr.mxu0 %v1332_v63  ;;  %v2083_v62 = vld [vmem:[%s5087_s26 + $0x40] sm:$0xff] }
 0x7c0   :  { %1760 = vmatpush1.msra.mxu1 %v1329_v0  ;;  %1837 = vmatpush1.msra.mxu0 %v1331_v1  ;;  %v2115_v63 = vld [vmem:[%s5087_s26 + $0x140] sm:$0xff]  ;;  %v2098_v0 = vld [vmem:[%s5087_s26 + $0xb8] sm:$0xff] }
 0x7c1   :  { %1761 = vmatprep.subr.mxu1 %v1314_v2  ;;  %1838 = vmatprep.subr.mxu0 %v1316_v3  ;;  %v2130_v1 = vld [vmem:[%s5087_s26 + $0x1b8] sm:$0xff] }
 0x7c2   :  { %1651 = vmatprep.mubr.f32.mxu1 %v3552_v22  ;;  %1728 = vmatprep.mubr.f32.mxu0 %v3552_v22  ;;  %v2082_v2 = vld [vmem:[%s5087_s26 + $0x38] sm:$0xff] }
 0x7c3   :  { %1762 = vmatpush1.msra.mxu1 %v1313_v4  ;;  %1839 = vmatpush1.msra.mxu0 %v1315_v5  ;;  %v2114_v3 = vld [vmem:[%s5087_s26 + $0x138] sm:$0xff]  ;;  %v2097_v4 = vld [vmem:[%s5087_s26 + $0xb0] sm:$0xff] }
 0x7c4   :  { %3037 = vmatmul.mubr.msk.f32.gmra.mxu1 %vm77_vm0, %v3974_v49  ;;  %3039 = vmatmul.mubr.msk.f32.gmra.mxu0 %vm77_vm0, %v3974_v49  ;;  %v2129_v5 = vld [vmem:[%s5087_s26 + $0x1b0] sm:$0xff] }
 0x7c5   :  { %1763 = vmatprep.subr.mxu1 %v1298_v6  ;;  %1840 = vmatprep.subr.mxu0 %v1300_v7  ;;  %v2081_v6 = vld [vmem:[%s5087_s26 + $0x30] sm:$0xff] }
 0x7c6   :  { %1764 = vmatpush1.msra.mxu1 %v1297_v10  ;;  %1841 = vmatpush1.msra.mxu0 %v1299_v11  ;;  %v2113_v7 = vld [vmem:[%s5087_s26 + $0x130] sm:$0xff]  ;;  %v2096_v10 = vld [vmem:[%s5087_s26 + $0xa8] sm:$0xff] }
 0x7c7   :  { %1765 = vmatprep.subr.mxu1 %v1282_v9  ;;  %1842 = vmatprep.subr.mxu0 %v1284_v12  ;;  %v2128_v11 = vld [vmem:[%s5087_s26 + $0x1a8] sm:$0xff] }
 0x7c8   :  { %1766 = vmatpush1.msra.mxu1 %v1281_v8  ;;  %1799 = vmatprep.mubr.f32.mxu1 %v3552_v22  ;;  %v2080_v9 = vld [vmem:[%s5087_s26 + $0x28] sm:$0xff]  ;;  %v2095_v8 = vld [vmem:[%s5087_s26 + $0xa0] sm:$0xff] }
 0x7c9   :  { %1843 = vmatpush1.msra.mxu0 %v1283_v13  ;;  %1876 = vmatprep.mubr.f32.mxu0 %v3552_v22  ;;  %v2112_v12 = vld [vmem:[%s5087_s26 + $0x128] sm:$0xff]  ;;  %v2127_v13 = vld [vmem:[%s5087_s26 + $0x1a0] sm:$0xff] }
 0x7ca   :  { %3040 = vmatmul.mubr.msk.f32.vlgmr.msra.gmra.mxu1 %vm77_vm0, %v3950_v38  ;;  %3042 = vmatmul.mubr.msk.f32.vlgmr.msra.gmra.mxu0 %vm77_vm0, %v3950_v38 }
 0x7cb   :  { %1913 = vmatprep.subr.mxu1 %v1334_v14  ;;  %1990 = vmatprep.subr.mxu0 %v1336_v21  ;;  %v2079_v14 = vld [vmem:[%s5087_s26 + $0x20] sm:$0xff] }
 0x7cc   :  { %1914 = vmatpush1.msra.mxu1 %v1333_v48  ;;  %1991 = vmatpush1.msra.mxu0 %v1335_v26  ;;  %v2111_v21 = vld [vmem:[%s5087_s26 + $0x120] sm:$0xff]  ;;  %v2094_v48 = vld [vmem:[%s5087_s26 + $0x98] sm:$0xff] }
 0x7cd   :  { %1915 = vmatprep.subr.mxu1 %v1318_v20  ;;  %1992 = vmatprep.subr.mxu0 %v1320_v35  ;;  %v2126_v26 = vld [vmem:[%s5087_s26 + $0x198] sm:$0xff] }
 0x7ce   :  { %1805 = vmatprep.mubr.f32.mxu1 %v3552_v22  ;;  %1882 = vmatprep.mubr.f32.mxu0 %v3552_v22  ;;  %v2078_v20 = vld [vmem:[%s5087_s26 + $0x18] sm:$0xff] }
 0x7cf   :  { %1916 = vmatpush1.msra.mxu1 %v1317_v41  ;;  %1993 = vmatpush1.msra.mxu0 %v1319_v44  ;;  %v2110_v35 = vld [vmem:[%s5087_s26 + $0x118] sm:$0xff]  ;;  %v2093_v41 = vld [vmem:[%s5087_s26 + $0x90] sm:$0xff] }
 0x7d0   :  { %3041 = vmatmul.mubr.msk.f32.gmra.mxu1 %vm77_vm0, %v3974_v49  ;;  %3043 = vmatmul.mubr.msk.f32.gmra.mxu0 %vm77_vm0, %v3974_v49  ;;  %v2125_v44 = vld [vmem:[%s5087_s26 + $0x190] sm:$0xff] }
 0x7d1   :  { %1917 = vmatprep.subr.mxu1 %v1302_v15  ;;  %1994 = vmatprep.subr.mxu0 %v1304_v16  ;;  %v2077_v15 = vld [vmem:[%s5087_s26 + $0x10] sm:$0xff] }
 0x7d2   :  { %1918 = vmatpush1.msra.mxu1 %v1301_v17  ;;  %1995 = vmatpush1.msra.mxu0 %v1303_v28  ;;  %v2109_v16 = vld [vmem:[%s5087_s26 + $0x110] sm:$0xff]  ;;  %v2092_v17 = vld [vmem:[%s5087_s26 + $0x88] sm:$0xff] }
 0x7d3   :  { %1919 = vmatprep.subr.mxu1 %v1286_v18  ;;  %1996 = vmatprep.subr.mxu0 %v1288_v25  ;;  %v2124_v28 = vld [vmem:[%s5087_s26 + $0x188] sm:$0xff] }
 0x7d4   :  { %1920 = vmatpush1.msra.mxu1 %v1285_v19  ;;  %1953 = vmatprep.mubr.f32.mxu1 %v3552_v22  ;;  %v2076_v18 = vld [vmem:[%s5087_s26 + $0x8] sm:$0xff]  ;;  %v2091_v19 = vld [vmem:[%s5087_s26 + $0x80] sm:$0xff] }
 0x7d5   :  { %1997 = vmatpush1.msra.mxu0 %v1287_v23  ;;  %2030 = vmatprep.mubr.f32.mxu0 %v3552_v22  ;;  %v2108_v25 = vld [vmem:[%s5087_s26 + $0x108] sm:$0xff]  ;;  %v2123_v23 = vld [vmem:[%s5087_s26 + $0x180] sm:$0xff] }
 0x7d6   :  { %3044 = vmatmul.mubr.msk.f32.vlgmr.msra.gmra.mxu1 %vm77_vm0, %v3950_v38  ;;  %3046 = vmatmul.mubr.msk.f32.vlgmr.msra.gmra.mxu0 %vm77_vm0, %v3950_v38 }
 0x7d7   :  { %1959 = vmatprep.mubr.f32.mxu1 %v3552_v22  ;;  %2036 = vmatprep.mubr.f32.mxu0 %v3552_v22  ;;  %v2121_v22 = vld [vmem:[%s5087_s26 + $0x170] sm:$0xff] }
 0x7d8   :  { %3107 = vmatprep.subr.mxu1 %v2106_v50  ;;  %3145 = vmatprep.subr.mxu0 %v2138_v24  ;;  %v2075_v50 = vld [vmem:[%s5087_s26] sm:$0xff] }
 0x7d9   :  { %3108 = vmatpush3.msra.mxu1 %v2090_v51  ;;  %3146 = vmatpush3.msra.mxu0 %v2122_v27  ;;  %v2107_v24 = vld [vmem:[%s5087_s26 + $0x100] sm:$0xff]  ;;  %v2170_v51 = vld [vmem:[%s5087_s26 + $0x2f8] sm:$0xff] }
 0x7da   :  { %3045 = vmatmul.mubr.msk.f32.gmra.mxu1 %vm77_vm0, %v3974_v49  ;;  %3047 = vmatmul.mubr.msk.f32.gmra.mxu0 %vm77_vm0, %v3974_v49  ;;  %v2202_v27 = vld [vmem:[%s5087_s26 + $0x3f8] sm:$0xff] }
 0x7db   :  { %3109 = vmatprep.subr.mxu1 %v2105_v29  ;;  %3147 = vmatprep.subr.mxu0 %v2137_v30  ;;  %v1341_v29 = vlaneseq }
 0x7dc   :  { %3110 = vmatpush3.msra.mxu1 %v2089_v31  ;;  %3148 = vmatpush3.msra.mxu0 %v2121_v22 }
 0x7dd   :  { %3111 = vmatprep.subr.mxu1 %v2104_v32  ;;  %3149 = vmatprep.subr.mxu0 %v2136_v33  ;;  %v4336_v30 = vshrl.u32 %v1341_v29, 7  ;;  %v4343_v32 = vld [vmem:[%s5068_s14 + $0x8] sm:$0xff]  ;;  %v2151_v29 = vld [vmem:[%s5087_s26 + $0x260] sm:$0xff] }
 0x7de   :  { %3112 = vmatpush3.msra.mxu1 %v2088_v34  ;;  %3150 = vmatpush3.msra.mxu0 %v2120_v58 }
 0x7df   :  { %3113 = vmatprep.subr.mxu1 %v2103_v36  ;;  %3151 = vmatprep.subr.mxu0 %v2135_v56  ;;  %v1359_v31 = vsub.s32 4, %v4336_v30  ;;  %v1367_v22 = vsub.s32 6, %v4336_v30  ;;  %v1343_v58 = vsub.s32 0, %v4336_v30  ;;  %v1351_v36 = vsub.s32 2, %v4336_v30  ;;  %v4360_v56 = vld [vmem:[%s5068_s14] sm:$0xff] }
 0x7e0   :  { %3114 = vmatpush3.msra.mxu1 %v2087_v37  ;;  %3152 = vmatpush3.msra.mxu0 %v2119_v39  ;;  %v1347_v37 = vsub.s32 1, %v4336_v30  ;;  %v1355_v39 = vsub.s32 3, %v4336_v30 }
 0x7e1   :  { %3115 = vmatprep.subr.mxu1 %v2102_v40  ;;  %3153 = vmatprep.subr.mxu0 %v2134_v42  ;;  %v4348_v33 = vrot.slane %v4343_v32, %v1359_v31  ;;  %v4353_v34 = vrot.slane %v4343_v32, %v1367_v22  ;;  %v1344_v40 = vrot.slane %v4360_v56, %v1343_v58 }
 0x7e2   :  { %3116 = vmatpush3.msra.mxu1 %v2086_v43  ;;  %3154 = vmatpush3.msra.mxu0 %v2118_v45  ;;  %v1352_v42 = vrot.slane %v4360_v56, %v1351_v36  ;;  %v1348_v43 = vrot.slane %v4360_v56, %v1347_v37  ;;  %v1356_v45 = vrot.slane %v4360_v56, %v1355_v39 }
 0x7e3   :  { %3117 = vmatprep.subr.mxu1 %v2101_v46  ;;  %3155 = vmatprep.subr.mxu0 %v2133_v47 }
 0x7e4   :  { %3118 = vmatpush3.msra.mxu1 %v2085_v52  ;;  %3156 = vmatpush3.msra.mxu0 %v2117_v53 }
 0x7e5   :  { %3119 = vmatprep.subr.mxu1 %v2100_v54  ;;  %3157 = vmatprep.subr.mxu0 %v2132_v55 }
 0x7e6   :  { %3120 = vmatpush3.msra.mxu1 %v2084_v57  ;;  %3158 = vmatpush3.msra.mxu0 %v2116_v59 }
 0x7e7   :  { %3121 = vmatprep.subr.mxu1 %v2099_v60  ;;  %3159 = vmatprep.subr.mxu0 %v2131_v61 }
 0x7e8   :  { %3122 = vmatpush3.msra.mxu1 %v2083_v62  ;;  %3160 = vmatpush3.msra.mxu0 %v2115_v63 }
 0x7e9   :  { %3123 = vmatprep.subr.mxu1 %v2098_v0  ;;  %3161 = vmatprep.subr.mxu0 %v2130_v1 }
 0x7ea   :  { %3124 = vmatpush3.msra.mxu1 %v2082_v2  ;;  %3162 = vmatpush3.msra.mxu0 %v2114_v3  ;;  %v2154_v2 = vld [vmem:[%s5087_s26 + $0x278] sm:$0xff] }
 0x7eb   :  { %3125 = vmatprep.subr.mxu1 %v2097_v4  ;;  %3163 = vmatprep.subr.mxu0 %v2129_v5  ;;  %v2186_v3 = vld [vmem:[%s5087_s26 + $0x378] sm:$0xff]  ;;  %v1363_v4 = vsub.s32 5, %v4336_v30  ;;  %v1371_v5 = vsub.s32 7, %v4336_v30 }
 0x7ec   :  { %3126 = vmatpush3.msra.mxu1 %v2081_v6  ;;  %3164 = vmatpush3.msra.mxu0 %v2113_v7  ;;  %v2314_v30 = vld [vmem:[%s5087_s26 + $0x778] sm:$0xff] }
 0x7ed   :  { %3127 = vmatprep.subr.mxu1 %v2096_v10  ;;  %3165 = vmatprep.subr.mxu0 %v2128_v11  ;;  %v2169_v11 = vld [vmem:[%s5087_s26 + $0x2f0] sm:$0xff] }
 0x7ee   :  { %3128 = vmatpush3.msra.mxu1 %v2080_v9  ;;  %3166 = vmatpush3.msra.mxu0 %v2112_v12  ;;  %v2201_v9 = vld [vmem:[%s5087_s26 + $0x3f0] sm:$0xff] }
 0x7ef   :  { %3129 = vmatprep.subr.mxu1 %v2095_v8  ;;  %3167 = vmatprep.subr.mxu0 %v2127_v13 }
 0x7f0   :  { %3130 = vmatpush3.msra.mxu1 %v2079_v14  ;;  %3168 = vmatpush3.msra.mxu0 %v2111_v21  ;;  %v2153_v14 = vld [vmem:[%s5087_s26 + $0x270] sm:$0xff] }
 0x7f1   :  { %3131 = vmatprep.subr.mxu1 %v2094_v48  ;;  %3169 = vmatprep.subr.mxu0 %v2126_v26  ;;  %v2185_v21 = vld [vmem:[%s5087_s26 + $0x370] sm:$0xff] }
 0x7f2   :  { %3132 = vmatpush3.msra.mxu1 %v2078_v20  ;;  %3170 = vmatpush3.msra.mxu0 %v2110_v35  ;;  %v4399_v20 = vrot.slane %v4360_v56, %v1363_v4  ;;  %v4404_v35 = vrot.slane %v4360_v56, %v1371_v5 }
 0x7f3   :  { %3133 = vmatprep.subr.mxu1 %v2093_v41  ;;  %3171 = vmatprep.subr.mxu0 %v2125_v44  ;;  %v2168_v41 = vld [vmem:[%s5087_s26 + $0x2e8] sm:$0xff] }
 0x7f4   :  { %3134 = vmatpush3.msra.mxu1 %v2077_v15  ;;  %3172 = vmatpush3.msra.mxu0 %v2109_v16  ;;  %v2200_v44 = vld [vmem:[%s5087_s26 + $0x3e8] sm:$0xff] }
 0x7f5   :  { %3135 = vmatprep.subr.mxu1 %v2092_v17  ;;  %3173 = vmatprep.subr.mxu0 %v2124_v28 }
 0x7f6   :  { %3136 = vmatpush3.msra.mxu1 %v2076_v18  ;;  %3174 = vmatpush3.msra.mxu0 %v2108_v25  ;;  %v2152_v18 = vld [vmem:[%s5087_s26 + $0x268] sm:$0xff] }
 0x7f7   :  { %3137 = vmatprep.subr.mxu1 %v2091_v19  ;;  %3175 = vmatprep.subr.mxu0 %v2123_v23  ;;  %v2184_v25 = vld [vmem:[%s5087_s26 + $0x368] sm:$0xff] }
 0x7f8   :  { %3138 = vmatpush3.msra.mxu1 %v2075_v50  ;;  %3176 = vmatpush3.msra.mxu0 %v2107_v24  ;;  %v2167_v50 = vld [vmem:[%s5087_s26 + $0x2e0] sm:$0xff] }
 0x7f9   :  { %3183 = vmatprep.subr.mxu1 %v2170_v51  ;;  %3221 = vmatprep.subr.mxu0 %v2202_v27  ;;  %v2199_v24 = vld [vmem:[%s5087_s26 + $0x3e0] sm:$0xff] }
 0x873   :  { %v1493_v46 = vpop.f32.mrf.mxu1  ;;  %v1570_v47 = vpop.f32.mrf.mxu0 }
 0x874   :  { %v1494_v52 = vadd.f32 %v1493_v46, %v1344_v40  ;;  %v1571_v53 = vadd.f32 %v1570_v47, %v1352_v42  ;;  %v2198_v46 = vld [vmem:[%s5087_s26 + $0x3d8] sm:$0xff] }
 0x875   :  { %v1495_v54 = vpop.f32.mrf.mxu1  ;;  %v1572_v55 = vpop.f32.mrf.mxu0  ;;  %v2150_v47 = vld [vmem:[%s5087_s26 + $0x258] sm:$0xff] }
 0x876   :  { %v1496_v57 = vadd.f32 %v1495_v54, %v1348_v43  ;;  %v1573_v59 = vadd.f32 %v1572_v55, %v1356_v45  ;;  %v2043_v0 = vmax.f32 %v1494_v52, 0.0  ;;  %v2045_v1 = vmax.f32 %v1571_v53, 0.0  ;;  %v2182_v52 = vld [vmem:[%s5087_s26 + $0x358] sm:$0xff]  ;;  %v2165_v53 = vld [vmem:[%s5087_s26 + $0x2d0] sm:$0xff] }
 0x877   :  { %v2197_v54 = vld [vmem:[%s5087_s26 + $0x3d0] sm:$0xff] }
 0x878   :  { %v2044_v60 = vmax.f32 %v1496_v57, 0.0  ;;  %v2046_v61 = vmax.f32 %v1573_v59, 0.0  ;;  %v1499_v62 = vpop.f32.mrf.mxu1  ;;  %v1576_v63 = vpop.f32.mrf.mxu0  ;;  %v2149_v55 = vld [vmem:[%s5087_s26 + $0x250] sm:$0xff]  ;;  %v2164_v59 = vld [vmem:[%s5087_s26 + $0x2c8] sm:$0xff] }
 0x879   :  { %v1500_v6 = vadd.f32 %v1499_v62, %v1344_v40  ;;  %v1577_v12 = vadd.f32 %v1576_v63, %v1352_v42  ;;  %v2183_v40 = vld [vmem:[%s5087_s26 + $0x360] sm:$0xff]  ;;  %v2166_v42 = vld [vmem:[%s5087_s26 + $0x2d8] sm:$0xff]  ;;  %v2181_v57 = vld [vmem:[%s5087_s26 + $0x350] sm:$0xff] }
 0x87a   :  { %v1501_v7 = vpop.f32.mrf.mxu1  ;;  %v1578_v10 = vpop.f32.mrf.mxu0  ;;  %2402 = vmatprep.mubr.f32.mxu1 %v2044_v60  ;;  %2477 = vmatprep.mubr.f32.mxu0 %v2046_v61  ;;  %v2196_v60 = vld [vmem:[%s5087_s26 + $0x3c8] sm:$0xff]  ;;  %v2163_v63 = vld [vmem:[%s5087_s26 + $0x2c0] sm:$0xff] }
 0x87b   :  { %v1502_v8 = vadd.f32 %v1501_v7, %v1348_v43  ;;  %v1579_v13 = vadd.f32 %v1578_v10, %v1356_v45  ;;  %2403 = vmatmul.mubr.f32.vlgmr.msra.gmra.mxu1 %v2043_v0  ;;  %2478 = vmatmul.mubr.f32.vlgmr.msra.gmra.mxu0 %v2045_v1  ;;  %v2059_v17 = vmax.f32 %v1500_v6, 0.0  ;;  %v2061_v28 = vmax.f32 %v1577_v12, 0.0  ;;  %v2148_v61 = vld [vmem:[%s5087_s26 + $0x248] sm:$0xff]  ;;  %v2195_v0 = vld [vmem:[%s5087_s26 + $0x3c0] sm:$0xff]  ;;  %v2194_v6 = vld [vmem:[%s5087_s26 + $0x3b8] sm:$0xff] }
 0x87c   :  { %3184 = vmatpush3.msra.mxu1 %v2154_v2  ;;  %3222 = vmatpush3.msra.mxu0 %v2186_v3  ;;  %v2180_v62 = vld [vmem:[%s5087_s26 + $0x348] sm:$0xff]  ;;  %v2147_v1 = vld [vmem:[%s5087_s26 + $0x240] sm:$0xff]  ;;  %v2162_v3 = vld [vmem:[%s5087_s26 + $0x2b8] sm:$0xff] }
 0x87d   :  { %v2060_v48 = vmax.f32 %v1502_v8, 0.0  ;;  %v2062_v26 = vmax.f32 %v1579_v13, 0.0  ;;  %3185 = vmatprep.subr.mxu1 %v2169_v11  ;;  %3223 = vmatprep.subr.mxu0 %v2201_v9  ;;  %v2179_v2 = vld [vmem:[%s5087_s26 + $0x340] sm:$0xff]  ;;  %v2146_v7 = vld [vmem:[%s5087_s26 + $0x238] sm:$0xff]  ;;  %v2161_v11 = vld [vmem:[%s5087_s26 + $0x2b0] sm:$0xff] }
 0x87e   :  { %v4412_v15 = vpop.f32.mrf.mxu1  ;;  %v4414_v16 = vpop.f32.mrf.mxu0  ;;  %3186 = vmatpush3.msra.mxu1 %v2153_v14  ;;  %3224 = vmatpush3.msra.mxu0 %v2185_v21  ;;  %v2178_v10 = vld [vmem:[%s5087_s26 + $0x338] sm:$0xff]  ;;  %v2193_v9 = vld [vmem:[%s5087_s26 + $0x3b0] sm:$0xff]  ;;  %v2160_v13 = vld [vmem:[%s5087_s26 + $0x2a8] sm:$0xff] }
 0x87f   :  { %2407 = vmatprep.mubr.f32.mxu1 %v2060_v48  ;;  %2482 = vmatprep.mubr.f32.mxu0 %v2062_v26  ;;  %v2145_v12 = vld [vmem:[%s5087_s26 + $0x230] sm:$0xff]  ;;  %v2192_v14 = vld [vmem:[%s5087_s26 + $0x3a8] sm:$0xff] }
 0x880   :  { %v1649_v19 = vpop.f32.mrf.mxu1  ;;  %v1726_v23 = vpop.f32.mrf.mxu0  ;;  %3187 = vmatprep.subr.mxu1 %v2168_v41  ;;  %3225 = vmatprep.subr.mxu0 %v2200_v44  ;;  %v2177_v8 = vld [vmem:[%s5087_s26 + $0x330] sm:$0xff]  ;;  %v2144_v21 = vld [vmem:[%s5087_s26 + $0x228] sm:$0xff]  ;;  %v2159_v41 = vld [vmem:[%s5087_s26 + $0x2a0] sm:$0xff] }
 0x881   :  { %v1650_v51 = vadd.f32 %v1649_v19, %v4399_v20  ;;  %v1727_v27 = vadd.f32 %v1726_v23, %v4404_v35  ;;  %2408 = vmatmul.mubr.f32.gmra.mxu1 %v2059_v17  ;;  %2483 = vmatmul.mubr.f32.gmra.mxu0 %v2061_v28  ;;  %v2176_v48 = vld [vmem:[%s5087_s26 + $0x328] sm:$0xff]  ;;  %v2191_v44 = vld [vmem:[%s5087_s26 + $0x3a0] sm:$0xff]  ;;  %v2190_v19 = vld [vmem:[%s5087_s26 + $0x398] sm:$0xff]  ;;  %v1360_v23 = vrot.slane %v4360_v56, %v1359_v31 }
 0x882   :  { %3188 = vmatpush3.msra.mxu1 %v2152_v18  ;;  %3226 = vmatpush3.msra.mxu0 %v2184_v25  ;;  %v2143_v28 = vld [vmem:[%s5087_s26 + $0x220] sm:$0xff]  ;;  %v2158_v25 = vld [vmem:[%s5087_s26 + $0x298] sm:$0xff]  ;;  %v2157_v31 = vld [vmem:[%s5087_s26 + $0x290] sm:$0xff] }
 0x883   :  { %v2048_v43 = vmax.f32 %v1650_v51, 0.0  ;;  %v2050_v45 = vmax.f32 %v1727_v27, 0.0  ;;  %3189 = vmatprep.subr.mxu1 %v2167_v50  ;;  %3227 = vmatprep.subr.mxu0 %v2199_v24  ;;  %v2175_v18 = vld [vmem:[%s5087_s26 + $0x320] sm:$0xff]  ;;  %v1368_v50 = vrot.slane %v4360_v56, %v1367_v22  ;;  %v2142_v24 = vld [vmem:[%s5087_s26 + $0x218] sm:$0xff]  ;;  %v2189_v22 = vld [vmem:[%s5087_s26 + $0x390] sm:$0xff] }
 0x884   :  { %3190 = vmatpush3.msra.mxu1 %v2151_v29  ;;  %3228 = vmatpush3.msra.mxu0 %v2183_v40  ;;  %v4520_v26 = vpop.f32.mrf.mxu1  ;;  %v1730_v17 = vpop.f32.mrf.mxu0  ;;  %v2174_v51 = vld [vmem:[%s5087_s26 + $0x318] sm:$0xff]  ;;  %v2141_v29 = vld [vmem:[%s5087_s26 + $0x210] sm:$0xff] }
 0x885   :  { %3191 = vmatprep.subr.mxu1 %v2166_v42  ;;  %2552 = vmatprep.mubr.f32.mxu1 %v2048_v43  ;;  %v2173_v40 = vld [vmem:[%s5087_s26 + $0x310] sm:$0xff]  ;;  %v2156_v42 = vld [vmem:[%s5087_s26 + $0x288] sm:$0xff] }
 0x886   :  { %3229 = vmatprep.subr.mxu0 %v2198_v46  ;;  %2627 = vmatprep.mubr.f32.mxu0 %v2050_v45  ;;  %v1655_v27 = vpop.f32.mrf.mxu1  ;;  %v1732_v56 = vpop.f32.mrf.mxu0  ;;  %v2188_v43 = vld [vmem:[%s5087_s26 + $0x388] sm:$0xff]  ;;  %v1648_v45 = vadd.f32 %v4412_v15, %v1360_v23  ;;  %v1725_v46 = vadd.f32 %v4414_v16, %v1368_v50  ;;  %v2155_v15 = vld [vmem:[%s5087_s26 + $0x280] sm:$0xff] }
 0x887   :  { %3192 = vmatpush3.msra.mxu1 %v2150_v47  ;;  %3230 = vmatpush3.msra.mxu0 %v2182_v52  ;;  %v2140_v47 = vld [vmem:[%s5087_s26 + $0x208] sm:$0xff]  ;;  %v2187_v16 = vld [vmem:[%s5087_s26 + $0x380] sm:$0xff] }
 0x888   :  { %3193 = vmatprep.subr.mxu1 %v2165_v53  ;;  %3231 = vmatprep.subr.mxu0 %v2197_v54  ;;  %v2172_v52 = vld [vmem:[%s5087_s26 + $0x308] sm:$0xff]  ;;  %v1656_v54 = vadd.f32 %v1655_v27, %v4399_v20  ;;  %v4599_v20 = vrot.slane %v4343_v32, %v1347_v37  ;;  %v1654_v37 = vadd.f32 %v4520_v26, %v1360_v23  ;;  %v2215_v23 = vld [vmem:[%s5087_s26 + $0x460] sm:$0xff]  ;;  %v2214_v27 = vld [vmem:[%s5087_s26 + $0x458] sm:$0xff] }
 0x889   :  { %3194 = vmatpush3.msra.mxu1 %v2149_v55  ;;  %3232 = vmatpush3.msra.mxu0 %v2181_v57  ;;  %v1733_v55 = vadd.f32 %v1732_v56, %v4404_v35  ;;  %v2234_v35 = vld [vmem:[%s5087_s26 + $0x4f8] sm:$0xff]  ;;  %v2232_v26 = vld [vmem:[%s5087_s26 + $0x4e8] sm:$0xff]  ;;  %v2261_v56 = vld [vmem:[%s5087_s26 + $0x5d0] sm:$0xff] }
 0x88a   :  { %3195 = vmatprep.subr.mxu1 %v2164_v59  ;;  %3233 = vmatprep.subr.mxu0 %v2196_v60  ;;  %v4578_v53 = vpop.f32.mrf.mxu1  ;;  %v4588_v57 = vpop.f32.mrf.mxu0  ;;  %v2139_v59 = vld [vmem:[%s5087_s26 + $0x200] sm:$0xff] }
 0x88b   :  { %3196 = vmatpush3.msra.mxu1 %v2148_v61  ;;  %3234 = vmatpush3.msra.mxu0 %v2180_v62  ;;  %v2171_v60 = vld [vmem:[%s5087_s26 + $0x300] sm:$0xff]  ;;  %v2047_v61 = vmax.f32 %v1648_v45, 0.0  ;;  %v2049_v62 = vmax.f32 %v1725_v46, 0.0  ;;  %v2212_v45 = vld [vmem:[%s5087_s26 + $0x448] sm:$0xff] }
 0x88c   :  { %3197 = vmatprep.subr.mxu1 %v2163_v63  ;;  %3235 = vmatprep.subr.mxu0 %v2195_v0  ;;  %v2266_v63 = vld [vmem:[%s5087_s26 + $0x5f8] sm:$0xff]  ;;  %v1803_v0 = vpop.f32.mrf.mxu1  ;;  %v2244_v46 = vld [vmem:[%s5087_s26 + $0x548] sm:$0xff] }
 0x88d   :  { %3198 = vmatpush3.msra.mxu1 %v2147_v1  ;;  %3236 = vmatpush3.msra.mxu0 %v2179_v2  ;;  %v4610_v1 = vrot.slane %v4343_v32, %v1355_v39  ;;  %v1731_v2 = vadd.f32 %v1730_v17, %v1368_v50  ;;  %v2233_v39 = vld [vmem:[%s5087_s26 + $0x4f0] sm:$0xff]  ;;  %v2247_v50 = vld [vmem:[%s5087_s26 + $0x560] sm:$0xff] }
 0x88e   :  { %3199 = vmatprep.subr.mxu1 %v2162_v3  ;;  %3237 = vmatprep.subr.mxu0 %v2194_v6  ;;  %v2064_v3 = vmax.f32 %v1656_v54, 0.0  ;;  %v2066_v6 = vmax.f32 %v1733_v55, 0.0  ;;  %v2226_v54 = vld [vmem:[%s5087_s26 + $0x4b8] sm:$0xff] }
 0x88f   :  { %3200 = vmatpush3.msra.mxu1 %v2146_v7  ;;  %3238 = vmatpush3.msra.mxu0 %v2178_v10  ;;  %v1880_v7 = vpop.f32.mrf.mxu0  ;;  %v2218_v10 = vld [vmem:[%s5087_s26 + $0x478] sm:$0xff] }
 0x890   :  { %3201 = vmatprep.subr.mxu1 %v2161_v11  ;;  %3239 = vmatprep.subr.mxu0 %v2193_v9  ;;  %v2250_v11 = vld [vmem:[%s5087_s26 + $0x578] sm:$0xff]  ;;  %v2265_v9 = vld [vmem:[%s5087_s26 + $0x5f0] sm:$0xff] }
 0x891   :  { %3202 = vmatpush3.msra.mxu1 %v2145_v12  ;;  %3240 = vmatpush3.msra.mxu0 %v2177_v8  ;;  %v1804_v12 = vadd.f32 %v1803_v0, %v4599_v20  ;;  %v2217_v8 = vld [vmem:[%s5087_s26 + $0x470] sm:$0xff]  ;;  %v2258_v55 = vld [vmem:[%s5087_s26 + $0x5b8] sm:$0xff]  ;;  %v2224_v0 = vld [vmem:[%s5087_s26 + $0x4a8] sm:$0xff] }
 0x892   :  { %3203 = vmatprep.subr.mxu1 %v2160_v13  ;;  %3241 = vmatprep.subr.mxu0 %v2192_v14  ;;  %v2249_v13 = vld [vmem:[%s5087_s26 + $0x570] sm:$0xff]  ;;  %v1881_v14 = vadd.f32 %v1880_v7, %v4610_v1  ;;  %v2223_v7 = vld [vmem:[%s5087_s26 + $0x4a0] sm:$0xff] }
 0x893   :  { %3204 = vmatpush3.msra.mxu1 %v2144_v21  ;;  %3242 = vmatpush3.msra.mxu0 %v2176_v48  ;;  %v2063_v21 = vmax.f32 %v1654_v37, 0.0  ;;  %v2065_v48 = vmax.f32 %v1731_v2, 0.0  ;;  %v2052_v17 = vmax.f32 %v1804_v12, 0.0  ;;  %v2256_v37 = vld [vmem:[%s5087_s26 + $0x5a8] sm:$0xff]  ;;  %v2222_v12 = vld [vmem:[%s5087_s26 + $0x498] sm:$0xff] }
 0x894   :  { %3205 = vmatprep.subr.mxu1 %v2159_v41  ;;  %3243 = vmatprep.subr.mxu0 %v2191_v44  ;;  %v2264_v41 = vld [vmem:[%s5087_s26 + $0x5e8] sm:$0xff] }
 0x895   :  { %3206 = vmatpush3.msra.mxu1 %v2143_v28  ;;  %3244 = vmatpush3.msra.mxu0 %v2175_v18  ;;  %v2216_v44 = vld [vmem:[%s5087_s26 + $0x468] sm:$0xff]  ;;  %v2054_v18 = vmax.f32 %v1881_v14, 0.0  ;;  %v1384_v14 = vrot.slane %v4343_v32, %v1351_v36  ;;  %v2253_v36 = vld [vmem:[%s5087_s26 + $0x590] sm:$0xff] }
 0x896   :  { %3207 = vmatprep.subr.mxu1 %v2158_v25  ;;  %3245 = vmatprep.subr.mxu0 %v2190_v19  ;;  %v2248_v28 = vld [vmem:[%s5087_s26 + $0x568] sm:$0xff]  ;;  %v2231_v25 = vld [vmem:[%s5087_s26 + $0x4e0] sm:$0xff] }
 0x897   :  { %3208 = vmatpush3.msra.mxu1 %v2142_v24  ;;  %3246 = vmatpush3.msra.mxu0 %v2174_v51  ;;  %v2263_v19 = vld [vmem:[%s5087_s26 + $0x5e0] sm:$0xff]  ;;  %v2230_v24 = vld [vmem:[%s5087_s26 + $0x4d8] sm:$0xff]  ;;  %v2208_v2 = vld [vmem:[%s5087_s26 + $0x428] sm:$0xff] }
 0x898   :  { %3209 = vmatprep.subr.mxu1 %v2157_v31  ;;  %3247 = vmatprep.subr.mxu0 %v2189_v22  ;;  %v2262_v51 = vld [vmem:[%s5087_s26 + $0x5d8] sm:$0xff]  ;;  %v2229_v22 = vld [vmem:[%s5087_s26 + $0x4d0] sm:$0xff] }
 0x899   :  { %3210 = vmatpush3.msra.mxu1 %v2141_v29  ;;  %3248 = vmatpush3.msra.mxu0 %v2173_v40  ;;  %v2246_v31 = vld [vmem:[%s5087_s26 + $0x558] sm:$0xff]  ;;  %v2213_v29 = vld [vmem:[%s5087_s26 + $0x450] sm:$0xff] }
 0x89a   :  { %3211 = vmatprep.subr.mxu1 %v2156_v42  ;;  %3249 = vmatprep.subr.mxu0 %v2188_v43  ;;  %v2245_v40 = vld [vmem:[%s5087_s26 + $0x550] sm:$0xff]  ;;  %v2228_v42 = vld [vmem:[%s5087_s26 + $0x4c8] sm:$0xff] }
 0x89b   :  { %3212 = vmatpush3.msra.mxu1 %v2140_v47  ;;  %3250 = vmatpush3.msra.mxu0 %v2172_v52  ;;  %v2260_v43 = vld [vmem:[%s5087_s26 + $0x5c8] sm:$0xff]  ;;  %v2227_v47 = vld [vmem:[%s5087_s26 + $0x4c0] sm:$0xff] }
 0x89c   :  { %3213 = vmatprep.subr.mxu1 %v2155_v15  ;;  %3251 = vmatprep.subr.mxu0 %v2187_v16  ;;  %v2259_v52 = vld [vmem:[%s5087_s26 + $0x5c0] sm:$0xff] }
 0x89d   :  { %3214 = vmatpush3.msra.mxu1 %v2139_v59  ;;  %3252 = vmatpush3.msra.mxu0 %v2171_v60  ;;  %v2211_v15 = vld [vmem:[%s5087_s26 + $0x440] sm:$0xff]  ;;  %v2210_v59 = vld [vmem:[%s5087_s26 + $0x438] sm:$0xff] }
 0x89e   :  { %2553 = vmatmul.mubr.f32.vlgmr.msra.gmra.mxu1 %v2047_v61  ;;  %2628 = vmatmul.mubr.f32.vlgmr.msra.gmra.mxu0 %v2049_v62  ;;  %v2243_v16 = vld [vmem:[%s5087_s26 + $0x540] sm:$0xff]  ;;  %v2242_v60 = vld [vmem:[%s5087_s26 + $0x538] sm:$0xff]  ;;  %v2225_v61 = vld [vmem:[%s5087_s26 + $0x4b0] sm:$0xff] }
 0x89f   :  { %3259 = vmatprep.subr.mxu1 %v2234_v35  ;;  %3297 = vmatprep.subr.mxu0 %v2266_v63  ;;  %v2257_v62 = vld [vmem:[%s5087_s26 + $0x5b0] sm:$0xff] }
 0x8a0   :  { %2557 = vmatprep.mubr.f32.mxu1 %v2064_v3  ;;  %2632 = vmatprep.mubr.f32.mxu0 %v2066_v6  ;;  %v2209_v35 = vld [vmem:[%s5087_s26 + $0x430] sm:$0xff]  ;;  %v2240_v3 = vld [vmem:[%s5087_s26 + $0x528] sm:$0xff]  ;;  %v4741_v6 = vpop.f32.mrf.mxu1 }
 0x8a1   :  { %3260 = vmatpush3.msra.mxu1 %v2218_v10  ;;  %3298 = vmatpush3.msra.mxu0 %v2250_v11  ;;  %v2241_v63 = vld [vmem:[%s5087_s26 + $0x530] sm:$0xff]  ;;  %v2255_v10 = vld [vmem:[%s5087_s26 + $0x5a0] sm:$0xff]  ;;  %v1884_v11 = vpop.f32.mrf.mxu0 }
 0x8a2   :  { %3261 = vmatprep.subr.mxu1 %v2233_v39  ;;  %3299 = vmatprep.subr.mxu0 %v2265_v9  ;;  %v2207_v39 = vld [vmem:[%s5087_s26 + $0x420] sm:$0xff] }
 0x8a3   :  { %3262 = vmatpush3.msra.mxu1 %v2217_v8  ;;  %3300 = vmatpush3.msra.mxu0 %v2249_v13  ;;  %v2239_v9 = vld [vmem:[%s5087_s26 + $0x520] sm:$0xff]  ;;  %v2254_v8 = vld [vmem:[%s5087_s26 + $0x598] sm:$0xff]  ;;  %v1376_v13 = vrot.slane %v4343_v32, %v1343_v58  ;;  %v2221_v58 = vld [vmem:[%s5087_s26 + $0x490] sm:$0xff] }
 0x8a4   :  { %2558 = vmatmul.mubr.f32.gmra.mxu1 %v2063_v21  ;;  %2633 = vmatmul.mubr.f32.gmra.mxu0 %v2065_v48  ;;  %v2206_v21 = vld [vmem:[%s5087_s26 + $0x418] sm:$0xff] }
 0x8a5   :  { %3263 = vmatprep.subr.mxu1 %v2232_v26  ;;  %3301 = vmatprep.subr.mxu0 %v2264_v41  ;;  %v2238_v48 = vld [vmem:[%s5087_s26 + $0x518] sm:$0xff]  ;;  %v1809_v26 = vpop.f32.mrf.mxu1  ;;  %v1886_v41 = vpop.f32.mrf.mxu0 }
 0x8a6   :  { %3264 = vmatpush3.msra.mxu1 %v2216_v44  ;;  %2702 = vmatprep.mubr.f32.mxu1 %v2052_v17  ;;  %v2205_v44 = vld [vmem:[%s5087_s26 + $0x410] sm:$0xff] }
 0x8a7   :  { %3302 = vmatpush3.msra.mxu0 %v2248_v28  ;;  %2777 = vmatprep.mubr.f32.mxu0 %v2054_v18  ;;  %v2237_v17 = vld [vmem:[%s5087_s26 + $0x510] sm:$0xff]  ;;  %v2220_v28 = vld [vmem:[%s5087_s26 + $0x488] sm:$0xff] }
 0x8a8   :  { %3265 = vmatprep.subr.mxu1 %v2231_v25  ;;  %3303 = vmatprep.subr.mxu0 %v2263_v19  ;;  %v2252_v18 = vld [vmem:[%s5087_s26 + $0x588] sm:$0xff]  ;;  %v1802_v25 = vadd.f32 %v4578_v53, %v1376_v13  ;;  %v1879_v19 = vadd.f32 %v4588_v57, %v1384_v14  ;;  %v2219_v53 = vld [vmem:[%s5087_s26 + $0x480] sm:$0xff] }
 0x8a9   :  { %3266 = vmatpush3.msra.mxu1 %v2215_v23  ;;  %3304 = vmatpush3.msra.mxu0 %v2247_v50  ;;  %v2204_v23 = vld [vmem:[%s5087_s26 + $0x408] sm:$0xff]  ;;  %v2251_v57 = vld [vmem:[%s5087_s26 + $0x580] sm:$0xff] }
 0x8aa   :  { %3267 = vmatprep.subr.mxu1 %v2230_v24  ;;  %3305 = vmatprep.subr.mxu0 %v2262_v51  ;;  %v2236_v50 = vld [vmem:[%s5087_s26 + $0x508] sm:$0xff]  ;;  %v4799_v24 = vpop.f32.mrf.mxu1  ;;  %v1810_v51 = vadd.f32 %v1809_v26, %v4599_v20  ;;  %v4820_v20 = vrot.slane %v4343_v32, %v1363_v4  ;;  %v1808_v4 = vadd.f32 %v4741_v6, %v1376_v13  ;;  %v2295_v6 = vld [vmem:[%s5087_s26 + $0x6e0] sm:$0xff]  ;;  %v2293_v13 = vld [vmem:[%s5087_s26 + $0x6d0] sm:$0xff] }
 0x8ab   :  { %3268 = vmatpush3.msra.mxu1 %v2214_v27  ;;  %3306 = vmatpush3.msra.mxu0 %v2246_v31  ;;  %v1887_v27 = vadd.f32 %v1886_v41, %v4610_v1  ;;  %v4809_v31 = vpop.f32.mrf.mxu0  ;;  %v2298_v1 = vld [vmem:[%s5087_s26 + $0x6f8] sm:$0xff]  ;;  %v2292_v26 = vld [vmem:[%s5087_s26 + $0x6c8] sm:$0xff] }
 0x8ac   :  { %3269 = vmatprep.subr.mxu1 %v2229_v22  ;;  %3307 = vmatprep.subr.mxu0 %v2261_v56  ;;  %v2203_v22 = vld [vmem:[%s5087_s26 + $0x400] sm:$0xff]  ;;  %v2308_v41 = vld [vmem:[%s5087_s26 + $0x748] sm:$0xff] }
 0x8ad   :  { %3270 = vmatpush3.msra.mxu1 %v2213_v29  ;;  %3308 = vmatpush3.msra.mxu0 %v2245_v40  ;;  %v2235_v56 = vld [vmem:[%s5087_s26 + $0x500] sm:$0xff]  ;;  %v2051_v29 = vmax.f32 %v1802_v25, 0.0  ;;  %v2053_v40 = vmax.f32 %v1879_v19, 0.0  ;;  %v2290_v25 = vld [vmem:[%s5087_s26 + $0x6b8] sm:$0xff] }
 0x8ae   :  { %3271 = vmatprep.subr.mxu1 %v2228_v42  ;;  %3309 = vmatprep.subr.mxu0 %v2260_v43  ;;  %v2330_v42 = vld [vmem:[%s5087_s26 + $0x7f8] sm:$0xff]  ;;  %v1957_v43 = vpop.f32.mrf.mxu1 }
 0x8af   :  { %3272 = vmatpush3.msra.mxu1 %v2212_v45  ;;  %3310 = vmatpush3.msra.mxu0 %v2244_v46  ;;  %v4831_v45 = vrot.slane %v4343_v32, %v1371_v5  ;;  %v1885_v46 = vadd.f32 %v1884_v11, %v1384_v14  ;;  %v2297_v32 = vld [vmem:[%s5087_s26 + $0x6f0] sm:$0xff]  ;;  %v2311_v11 = vld [vmem:[%s5087_s26 + $0x760] sm:$0xff]  ;;  %v2322_v19 = vld [vmem:[%s5087_s26 + $0x7b8] sm:$0xff] }
 0x8b0   :  { %3273 = vmatprep.subr.mxu1 %v2227_v47  ;;  %3311 = vmatprep.subr.mxu0 %v2259_v52  ;;  %v2068_v47 = vmax.f32 %v1810_v51, 0.0  ;;  %v2070_v52 = vmax.f32 %v1887_v27, 0.0  ;;  %v2329_v5 = vld [vmem:[%s5087_s26 + $0x7f0] sm:$0xff] }
 0x8b1   :  { %3274 = vmatpush3.msra.mxu1 %v2211_v15  ;;  %3312 = vmatpush3.msra.mxu0 %v2243_v16  ;;  %v2034_v15 = vpop.f32.mrf.mxu0  ;;  %v2282_v16 = vld [vmem:[%s5087_s26 + $0x678] sm:$0xff]  ;;  %v2325_v14 = vld [vmem:[%s5087_s26 + $0x7d0] sm:$0xff] }
 0x8b2   :  { %3275 = vmatprep.subr.mxu1 %v2226_v54  ;;  %3313 = vmatprep.subr.mxu0 %v2258_v55  ;;  %v1958_v54 = vadd.f32 %v1957_v43, %v4820_v20  ;;  %v2281_v55 = vld [vmem:[%s5087_s26 + $0x670] sm:$0xff]  ;;  %v1961_v43 = vpop.f32.mrf.mxu1 }
 0x8b3   :  { %3276 = vmatpush3.msra.mxu1 %v2210_v59  ;;  %3314 = vmatpush3.msra.mxu0 %v2242_v60  ;;  %v2313_v59 = vld [vmem:[%s5087_s26 + $0x770] sm:$0xff]  ;;  %v2035_v60 = vadd.f32 %v2034_v15, %v4831_v45  ;;  %v2318_v15 = vld [vmem:[%s5087_s26 + $0x798] sm:$0xff] }
 0x8b4   :  { %3277 = vmatprep.subr.mxu1 %v2225_v61  ;;  %3315 = vmatprep.subr.mxu0 %v2257_v62  ;;  %v2067_v61 = vmax.f32 %v1808_v4, 0.0  ;;  %v2069_v62 = vmax.f32 %v1885_v46, 0.0  ;;  %v2273_v51 = vld [vmem:[%s5087_s26 + $0x630] sm:$0xff]  ;;  %v2038_v4 = vpop.f32.mrf.mxu0  ;;  %v2271_v46 = vld [vmem:[%s5087_s26 + $0x620] sm:$0xff] }
 0x8b5   :  { %3278 = vmatpush3.msra.mxu1 %v2209_v35  ;;  %3316 = vmatpush3.msra.mxu0 %v2241_v63  ;;  %v2296_v35 = vld [vmem:[%s5087_s26 + $0x6e8] sm:$0xff]  ;;  %v2305_v27 = vld [vmem:[%s5087_s26 + $0x730] sm:$0xff] }
 0x8b6   :  { %3279 = vmatprep.subr.mxu1 %v2224_v0  ;;  %3317 = vmatprep.subr.mxu0 %v2256_v37  ;;  %v2328_v63 = vld [vmem:[%s5087_s26 + $0x7e8] sm:$0xff]  ;;  %v2056_v37 = vmax.f32 %v1958_v54, 0.0  ;;  %v1963_v54 = vpop.f32.mrf.mxu1 }
 0x8b7   :  { %3280 = vmatpush3.msra.mxu1 %v2208_v2  ;;  %3318 = vmatpush3.msra.mxu0 %v2240_v3  ;;  %v2280_v0 = vld [vmem:[%s5087_s26 + $0x668] sm:$0xff]  ;;  %v2058_v3 = vmax.f32 %v2035_v60, 0.0  ;;  %v2301_v60 = vld [vmem:[%s5087_s26 + $0x710] sm:$0xff] }
 0x8b8   :  { %3281 = vmatprep.subr.mxu1 %v2223_v7  ;;  %3319 = vmatprep.subr.mxu0 %v2255_v10  ;;  %v2312_v2 = vld [vmem:[%s5087_s26 + $0x768] sm:$0xff]  ;;  %v2327_v7 = vld [vmem:[%s5087_s26 + $0x7e0] sm:$0xff] }
 0x8b9   :  { %3282 = vmatpush3.msra.mxu1 %v2207_v39  ;;  %3320 = vmatpush3.msra.mxu0 %v2239_v9  ;;  %v2279_v10 = vld [vmem:[%s5087_s26 + $0x660] sm:$0xff]  ;;  %v2294_v39 = vld [vmem:[%s5087_s26 + $0x6d8] sm:$0xff] }
 0x8ba   :  { %3283 = vmatprep.subr.mxu1 %v2222_v12  ;;  %3321 = vmatprep.subr.mxu0 %v2254_v8  ;;  %v2326_v9 = vld [vmem:[%s5087_s26 + $0x7d8] sm:$0xff] }
 0x8bb   :  { %3284 = vmatpush3.msra.mxu1 %v2206_v21  ;;  %3322 = vmatpush3.msra.mxu0 %v2238_v48  ;;  %v2278_v12 = vld [vmem:[%s5087_s26 + $0x658] sm:$0xff]  ;;  %v2277_v21 = vld [vmem:[%s5087_s26 + $0x650] sm:$0xff] }
 0x8bc   :  { %3285 = vmatprep.subr.mxu1 %v2221_v58  ;;  %3323 = vmatprep.subr.mxu0 %v2253_v36  ;;  %v2310_v8 = vld [vmem:[%s5087_s26 + $0x758] sm:$0xff]  ;;  %v2309_v48 = vld [vmem:[%s5087_s26 + $0x750] sm:$0xff]  ;;  %v2324_v58 = vld [vmem:[%s5087_s26 + $0x7c8] sm:$0xff] }
 0x8bd   :  { %3286 = vmatpush3.msra.mxu1 %v2205_v44  ;;  %3324 = vmatpush3.msra.mxu0 %v2237_v17  ;;  %v2276_v36 = vld [vmem:[%s5087_s26 + $0x648] sm:$0xff]  ;;  %v2291_v44 = vld [vmem:[%s5087_s26 + $0x6c0] sm:$0xff] }
 0x8be   :  { %3287 = vmatprep.subr.mxu1 %v2220_v28  ;;  %3325 = vmatprep.subr.mxu0 %v2252_v18  ;;  %v2323_v17 = vld [vmem:[%s5087_s26 + $0x7c0] sm:$0xff] }
 0x8bf   :  { %3288 = vmatpush3.msra.mxu1 %v2204_v23  ;;  %3326 = vmatpush3.msra.mxu0 %v2236_v50  ;;  %v2275_v28 = vld [vmem:[%s5087_s26 + $0x640] sm:$0xff]  ;;  %v2274_v23 = vld [vmem:[%s5087_s26 + $0x638] sm:$0xff] }
 0x8c0   :  { %3289 = vmatprep.subr.mxu1 %v2219_v53  ;;  %3327 = vmatprep.subr.mxu0 %v2251_v57  ;;  %v2307_v18 = vld [vmem:[%s5087_s26 + $0x740] sm:$0xff]  ;;  %v2306_v50 = vld [vmem:[%s5087_s26 + $0x738] sm:$0xff]  ;;  %v2289_v53 = vld [vmem:[%s5087_s26 + $0x6b0] sm:$0xff] }
 0x8c1   :  { %3290 = vmatpush3.msra.mxu1 %v2203_v22  ;;  %3328 = vmatpush3.msra.mxu0 %v2235_v56  ;;  %v2321_v57 = vld [vmem:[%s5087_s26 + $0x7b0] sm:$0xff]  ;;  %v2288_v22 = vld [vmem:[%s5087_s26 + $0x6a8] sm:$0xff] }
 0x8c2   :  { %2703 = vmatmul.mubr.f32.vlgmr.msra.gmra.mxu1 %v2051_v29  ;;  %2778 = vmatmul.mubr.f32.vlgmr.msra.gmra.mxu0 %v2053_v40  ;;  %v2320_v56 = vld [vmem:[%s5087_s26 + $0x7a8] sm:$0xff] }
 0x8c3   :  { %3335 = vmatprep.subr.mxu1 %v2298_v1  ;;  %3373 = vmatprep.subr.mxu0 %v2330_v42  ;;  %v2272_v29 = vld [vmem:[%s5087_s26 + $0x628] sm:$0xff]  ;;  %v2287_v1 = vld [vmem:[%s5087_s26 + $0x6a0] sm:$0xff] }
 0x8c4   :  { %2707 = vmatprep.mubr.f32.mxu1 %v2068_v47  ;;  %2782 = vmatprep.mubr.f32.mxu0 %v2070_v52  ;;  %v2304_v40 = vld [vmem:[%s5087_s26 + $0x728] sm:$0xff]  ;;  %v2319_v42 = vld [vmem:[%s5087_s26 + $0x7a0] sm:$0xff]  ;;  %v2286_v52 = vld [vmem:[%s5087_s26 + $0x698] sm:$0xff] }
 0x8c5   :  { %3336 = vmatpush3.msra.mxu1 %v2282_v16  ;;  %3374 = vmatpush3.msra.mxu0 %v2314_v30  ;;  %v2303_v47 = vld [vmem:[%s5087_s26 + $0x720] sm:$0xff]  ;;  %v2270_v16 = vld [vmem:[%s5087_s26 + $0x618] sm:$0xff] }
 0x8c6   :  { %3337 = vmatprep.subr.mxu1 %v2297_v32  ;;  %3375 = vmatprep.subr.mxu0 %v2329_v5  ;;  %v2302_v30 = vld [vmem:[%s5087_s26 + $0x718] sm:$0xff]  ;;  %v2285_v32 = vld [vmem:[%s5087_s26 + $0x690] sm:$0xff] }
 0x8c7   :  { %3338 = vmatpush3.msra.mxu1 %v2281_v55  ;;  %3376 = vmatpush3.msra.mxu0 %v2313_v59  ;;  %v2317_v5 = vld [vmem:[%s5087_s26 + $0x790] sm:$0xff]  ;;  %v2040_v55 = vpop.f32.mrf.mxu0 }
 0x8c8   :  { %2708 = vmatmul.mubr.f32.gmra.mxu1 %v2067_v61  ;;  %2783 = vmatmul.mubr.f32.gmra.mxu0 %v2069_v62  ;;  %v2269_v59 = vld [vmem:[%s5087_s26 + $0x610] sm:$0xff]  ;;  %v2284_v61 = vld [vmem:[%s5087_s26 + $0x688] sm:$0xff] }
 0x8c9   :  { %3339 = vmatprep.subr.mxu1 %v2296_v35  ;;  %3377 = vmatprep.subr.mxu0 %v2328_v63  ;;  %v2316_v62 = vld [vmem:[%s5087_s26 + $0x788] sm:$0xff]  ;;  %v1956_v35 = vadd.f32 %v4799_v24, %v4348_v33  ;;  %v2033_v63 = vadd.f32 %v4809_v31, %v4353_v34  ;;  %v2283_v24 = vld [vmem:[%s5087_s26 + $0x680] sm:$0xff] }
 0x8ca   :  { %3340 = vmatpush3.msra.mxu1 %v2280_v0  ;;  %2852 = vmatprep.mubr.f32.mxu1 %v2056_v37  ;;  %v2268_v0 = vld [vmem:[%s5087_s26 + $0x608] sm:$0xff]  ;;  %v2315_v31 = vld [vmem:[%s5087_s26 + $0x780] sm:$0xff] }
 0x8cb   :  { %3378 = vmatpush3.msra.mxu0 %v2312_v2  ;;  %2927 = vmatprep.mubr.f32.mxu0 %v2058_v3  ;;  %v2300_v37 = vld [vmem:[%s5087_s26 + $0x708] sm:$0xff]  ;;  %v1964_v2 = vadd.f32 %v1963_v54, %v4820_v20  ;;  %v2041_v3 = vadd.f32 %v2040_v55, %v4831_v45  ;;  %v2299_v20 = vld [vmem:[%s5087_s26 + $0x700] sm:$0xff]  ;;  %v2055_v45 = vmax.f32 %v1956_v35, 0.0 }
 0x8cc   :  { %3341 = vmatprep.subr.mxu1 %v2295_v6  ;;  %3379 = vmatprep.subr.mxu0 %v2327_v7  ;;  %v2267_v6 = vld [vmem:[%s5087_s26 + $0x600] sm:$0xff]  ;;  %v2057_v7 = vmax.f32 %v2033_v63, 0.0 }
 0x8cd   :  { %3342 = vmatpush3.msra.mxu1 %v2279_v10  ;;  %3380 = vmatpush3.msra.mxu0 %v2311_v11  ;;  %v1962_v10 = vadd.f32 %v1961_v43, %v4348_v33  ;;  %v2039_v11 = vadd.f32 %v2038_v4, %v4353_v34 }
 0x8ce   :  { %3343 = vmatprep.subr.mxu1 %v2294_v39  ;;  %3381 = vmatprep.subr.mxu0 %v2326_v9  ;;  %v2072_v39 = vmax.f32 %v1964_v2, 0.0  ;;  %v2074_v9 = vmax.f32 %v2041_v3, 0.0 }
 0x8cf   :  { %3344 = vmatpush3.msra.mxu1 %v2278_v12  ;;  %3382 = vmatpush3.msra.mxu0 %v2310_v8  ;;  %v2071_v12 = vmax.f32 %v1962_v10, 0.0  ;;  %v2073_v8 = vmax.f32 %v2039_v11, 0.0 }
 0x8d0   :  { %3345 = vmatprep.subr.mxu1 %v2293_v13  ;;  %3383 = vmatprep.subr.mxu0 %v2325_v14 }
 0x8d1   :  { %3346 = vmatpush3.msra.mxu1 %v2277_v21  ;;  %3384 = vmatpush3.msra.mxu0 %v2309_v48 }
 0x8d2   :  { %3347 = vmatprep.subr.mxu1 %v2292_v26  ;;  %3385 = vmatprep.subr.mxu0 %v2324_v58 }
 0x8d3   :  { %3348 = vmatpush3.msra.mxu1 %v2276_v36  ;;  %3386 = vmatpush3.msra.mxu0 %v2308_v41 }
 0x8d4   :  { %3349 = vmatprep.subr.mxu1 %v2291_v44  ;;  %3387 = vmatprep.subr.mxu0 %v2323_v17 }
 0x8d5   :  { %3350 = vmatpush3.msra.mxu1 %v2275_v28  ;;  %3388 = vmatpush3.msra.mxu0 %v2307_v18 }
 0x8d6   :  { %3351 = vmatprep.subr.mxu1 %v2290_v25  ;;  %3389 = vmatprep.subr.mxu0 %v2322_v19 }
 0x8d7   :  { %3352 = vmatpush3.msra.mxu1 %v2274_v23  ;;  %3390 = vmatpush3.msra.mxu0 %v2306_v50  ;;  %v3048_v23 = vld [vmem:[%s5069_s16] ss:$0 sm:$0xff] }
 0x8d8   :  { %3353 = vmatprep.subr.mxu1 %v2289_v53  ;;  %3391 = vmatprep.subr.mxu0 %v2321_v57 }
 0x8d9   :  { %3354 = vmatpush3.msra.mxu1 %v2273_v51  ;;  %3392 = vmatpush3.msra.mxu0 %v2305_v27 }
 0x8da   :  { %3355 = vmatprep.subr.mxu1 %v2288_v22  ;;  %3393 = vmatprep.subr.mxu0 %v2320_v56 }
 0x8db   :  { %3356 = vmatpush3.msra.mxu1 %v2272_v29  ;;  %3394 = vmatpush3.msra.mxu0 %v2304_v40 }
 0x8dc   :  { %3357 = vmatprep.subr.mxu1 %v2287_v1  ;;  %3395 = vmatprep.subr.mxu0 %v2319_v42 }
 0x8dd   :  { %3358 = vmatpush3.msra.mxu1 %v2271_v46  ;;  %3396 = vmatpush3.msra.mxu0 %v2303_v47 }
 0x8de   :  { %3359 = vmatprep.subr.mxu1 %v2286_v52  ;;  %3397 = vmatprep.subr.mxu0 %v2318_v15 }
 0x8df   :  { %3360 = vmatpush3.msra.mxu1 %v2270_v16  ;;  %3398 = vmatpush3.msra.mxu0 %v2302_v30 }
 0x8e0   :  { %3361 = vmatprep.subr.mxu1 %v2285_v32  ;;  %3399 = vmatprep.subr.mxu0 %v2317_v5 }
 0x8e1   :  { %3362 = vmatpush3.msra.mxu1 %v2269_v59  ;;  %3400 = vmatpush3.msra.mxu0 %v2301_v60 }
 0x8e2   :  { %3363 = vmatprep.subr.mxu1 %v2284_v61  ;;  %3401 = vmatprep.subr.mxu0 %v2316_v62 }
 0x8e3   :  { %3364 = vmatpush3.msra.mxu1 %v2268_v0  ;;  %3402 = vmatpush3.msra.mxu0 %v2300_v37 }
 0x8e4   :  { %3365 = vmatprep.subr.mxu1 %v2283_v24  ;;  %3403 = vmatprep.subr.mxu0 %v2315_v31 }
 0x8e5   :  { %3366 = vmatpush3.msra.mxu1 %v2267_v6  ;;  %3404 = vmatpush3.msra.mxu0 %v2299_v20 }
 0x8e6   :  { %2853 = vmatmul.mubr.f32.vlgmr.msra.gmra.mxu1 %v2055_v45  ;;  %2928 = vmatmul.mubr.f32.vlgmr.msra.gmra.mxu0 %v2057_v7 }
 0x8e7   :  { %2857 = vmatprep.mubr.f32.mxu1 %v2072_v39  ;;  %2932 = vmatprep.mubr.f32.mxu0 %v2074_v9 }
 0x8ea   :  { %2858 = vmatmul.mubr.f32.gmra.mxu1 %v2071_v12  ;;  %2933 = vmatmul.mubr.f32.gmra.mxu0 %v2073_v8 }
 0x93b   :  { %v3139_v13 = vpop.f32.mrf.mxu1  ;;  %v3177_v14 = vpop.f32.mrf.mxu0 }
 0x93d   :  { %v3140_v21 = vpop.f32.mrf.mxu1  ;;  %v3178_v33 = vpop.f32.mrf.mxu0 }
 0x93e   :  { %v3141_v19 = vadd.f32 %v3140_v21, %v3139_v13  ;;  %v3179_v56 = vadd.f32 %v3178_v33, %v3177_v14 }
 0x940   :  { %v2405_v51 = vadd.f32 %v3141_v19, %v3048_v23 }
 0x941   :  { %v3142_v48 = vpop.f32.mrf.mxu1  ;;  %v3180_v34 = vpop.f32.mrf.mxu0 }
 0x942   :  { %v2480_v1 = vadd.f32 %v3179_v56, %v2405_v51 }
 0x943   :  { %v3143_v26 = vpop.f32.mrf.mxu1  ;;  %v3181_v58 = vpop.f32.mrf.mxu0 }
 0x944   :  { %v3144_v27 = vadd.f32 %v3143_v26, %v3142_v48  ;;  %v3182_v4 = vadd.f32 %v3181_v58, %v3180_v34 }
 0x946   :  { %v2410_v42 = vadd.f32 %v3144_v27, %v3048_v23 }
 0x948   :  { %v2485_v15 = vadd.f32 %v3182_v4, %v2410_v42 }
 0x95e   :  { %v3215_v36 = vpop.f32.mrf.mxu1  ;;  %v3253_v41 = vpop.f32.mrf.mxu0 }
 0x960   :  { %v3216_v44 = vpop.f32.mrf.mxu1  ;;  %v3254_v17 = vpop.f32.mrf.mxu0 }
 0x961   :  { %v3217_v29 = vadd.f32 %v3216_v44, %v3215_v36  ;;  %v3255_v16 = vadd.f32 %v3254_v17, %v3253_v41 }
 0x963   :  { %v2555_v46 = vadd.f32 %v3217_v29, %v2480_v1  ;;  %v3050_v29 = vld [vmem:[%s5071_s18] ss:$0 sm:$0xff] }
 0x964   :  { %v3218_v28 = vpop.f32.mrf.mxu1  ;;  %v3256_v18 = vpop.f32.mrf.mxu0 }
 0x965   :  { %v2630_v5 = vadd.f32 %v3255_v16, %v2555_v46 }
 0x966   :  { %v3219_v25 = vpop.f32.mrf.mxu1  ;;  %v3257_v50 = vpop.f32.mrf.mxu0 }
 0x967   :  { %v3220_v47 = vadd.f32 %v3219_v25, %v3218_v28  ;;  %v3258_v59 = vadd.f32 %v3257_v50, %v3256_v18 }
 0x969   :  { %v2560_v54 = vadd.f32 %v3220_v47, %v2485_v15 }
 0x96b   :  { %v2635_v63 = vadd.f32 %v3258_v59, %v2560_v54 }
 0x982   :  { %v3291_v53 = vpop.f32.mrf.mxu1  ;;  %v3329_v57 = vpop.f32.mrf.mxu0 }
 0x984   :  { %v3292_v22 = vpop.f32.mrf.mxu1  ;;  %v3330_v40 = vpop.f32.mrf.mxu0 }
 0x985   :  { %v3293_v30 = vadd.f32 %v3292_v22, %v3291_v53  ;;  %v3331_v0 = vadd.f32 %v3330_v40, %v3329_v57  ;;  %v3049_v22 = vld [vmem:[%s5070_s17] ss:$0 sm:$0xff] }
 0x987   :  { %v2705_v60 = vadd.f32 %v3293_v30, %v2630_v5 }
 0x988   :  { %v3294_v43 = vpop.f32.mrf.mxu1  ;;  %v3332_v52 = vpop.f32.mrf.mxu0 }
 0x989   :  { %v2780_v3 = vadd.f32 %v3331_v0, %v2705_v60 }
 0x98a   :  { %v3295_v32 = vpop.f32.mrf.mxu1  ;;  %v3333_v55 = vpop.f32.mrf.mxu0 }
 0x98b   :  { %v3296_v61 = vadd.f32 %v3295_v32, %v3294_v43  ;;  %v3334_v45 = vadd.f32 %v3333_v55, %v3332_v52 }
 0x98d   :  { %v2710_v24 = vadd.f32 %v3296_v61, %v2635_v63 }
 0x98f   :  { %v2785_v9 = vadd.f32 %v3334_v45, %v2710_v24 }
 0x9a6   :  { %v3367_v62 = vpop.f32.mrf.mxu1  ;;  %v3405_v35 = vpop.f32.mrf.mxu0 }
 0x9a8   :  { %v3368_v37 = vpop.f32.mrf.mxu1  ;;  %v3406_v2 = vpop.f32.mrf.mxu0 }
 0x9a9   :  { %v3369_v31 = vadd.f32 %v3368_v37, %v3367_v62  ;;  %v3407_v10 = vadd.f32 %v3406_v2, %v3405_v35 }
 0x9aa   :  { %v3370_v6 = vpop.f32.mrf.mxu1  ;;  %v3408_v20 = vpop.f32.mrf.mxu0 }
 0x9ab   :  { %v2855_v7 = vadd.f32 %v3369_v31, %v2780_v3 }
 0x9ac   :  { %v3371_v11 = vpop.f32.mrf.mxu1  ;;  %v3409_v39 = vpop.f32.mrf.mxu0 }
 0x9ad   :  { %v2930_v12 = vadd.f32 %v3407_v10, %v2855_v7  ;;  %v3372_v8 = vadd.f32 %v3371_v11, %v3370_v6  ;;  %v3410_v14 = vadd.f32 %v3409_v39, %v3408_v20 }
 0x9af   :  { %v2860_v13 = vadd.f32 %v3372_v8, %v2785_v9  ;;  %v2938_v21 = vadd.f32 %v2930_v12, %v3950_v38 }
 0x9b1   :  { %v2935_v33 = vadd.f32 %v3410_v14, %v2860_v13  ;;  %v2940_v48 = vsel %vm77_vm0, %v2938_v21, 0.0 }
 0x9b2   :  { %2941 = vadd.xlane.f32.xlu0 %v2940_v48 }
 0x9b3   :  { %v2939_v34 = vadd.f32 %v2935_v33, %v3974_v49 }
 0x9b5   :  { %v2943_v26 = vsel %vm77_vm0, %v2939_v34, 0.0 }
 0x9b6   :  { %2944 = vadd.xlane.f32.xlu1 %v2943_v26 }
 0xa3b   :  { %v2942_v58 = vpop.xlane.xlu0 %2941 }
 0xa3c   :  { %v2946_v36 = vmul.f32 0.03125, %v2942_v58 }
 0xa3e   :  { %v2948_v41 = vsub.f32 %v2938_v21, %v2946_v36 }
 0xa3f   :  { %v2945_v44 = vpop.xlane.xlu1 %2944 }
 0xa40   :  { %v2947_v17 = vmul.f32 0.03125, %v2945_v44  ;;  %v2950_v28 = vmul.f32 %v2948_v41, %v2948_v41 }
 0xa42   :  { %v2949_v18 = vsub.f32 %v2939_v34, %v2947_v17  ;;  %v2952_v25 = vsel %vm77_vm0, %v2950_v28, 0.0 }
 0xa43   :  { %2953 = vadd.xlane.f32.xlu0 %v2952_v25 }
 0xa44   :  { %v2951_v38 = vmul.f32 %v2949_v18, %v2949_v18 }
 0xa46   :  { %v2955_v19 = vsel %vm77_vm0, %v2951_v38, 0.0 }
 0xa47   :  { %2956 = vadd.xlane.f32.xlu1 %v2955_v19 }
 0xacc   :  { %v2954_v23 = vpop.xlane.xlu0 %2953 }
 0xacd   :  { %v2958_v50 = vmul.f32 0.03125, %v2954_v23 }
 0xacf   :  { %v2960_v49 = vadd.f32 1e-05, %v2958_v50 }
 0xad0   :  { %v2957_v53 = vpop.xlane.xlu1 %2956 }
 0xad1   :  { %3548 = vrsqrt.f32 %v2960_v49  ;;  %v2959_v57 = vmul.f32 0.03125, %v2957_v53 }
 0xad3   :  { %v2961_v51 = vadd.f32 1e-05, %v2959_v57 }
 0xad5   :  { %3550 = vrsqrt.f32 %v2961_v51 }
 0xade   :  { %v3549_v27 = vpop.eup %3548 }
 0xadf   :  { %v2964_v56 = vmul.f32 %v3549_v27, %v2948_v41 }
 0xae1   :  { %v2973_v40 = vmul.f32 %v3049_v22, %v2964_v56 }
 0xae2   :  { %v3551_v1 = vpop.eup %3550 }
 0xae3   :  { %v2982_v42 = vadd.f32 %v3050_v29, %v2973_v40  ;;  %v2965_v43 = vmul.f32 %v3551_v1, %v2949_v18 }
 0xae5   :  { %2984 = vst.msk [vmem:[%s5072_s19] sm:$0xff] %vm77_vm0, %v2982_v42  ;;  %v2974_v4 = vmul.f32 %v3049_v22, %v2965_v43 }
 0xae7   :  { %v2983_v46 = vadd.f32 %v3050_v29, %v2974_v4 }
 0xae9   :  { %2985 = vst.msk [vmem:[%s5072_s19 + $0x8] sm:$0xff] %vm77_vm0, %v2983_v46 }

</bundles_post_ra>
